<compile_context>
chip_gen: v6e
topology: v6e:2x2x1
jax: 0.10.0
libtpu: 0.0.40
codegen_flags: <defaults>
</compile_context>

<pallas_src>
import functools

import jax
import jax.numpy as jnp
from jax import lax
from jax.experimental import pallas as pl
from jax.experimental.pallas import tpu as pltpu

IN_CH = 16
MID_CH = 64
OUT_CH = 32
KS = 3  # 3x3 kernels, padding=1 (SAME)


def _shift_lanes(a, d):
    """b[:, p] = a[:, p + d] for 0 <= p + d < N, else 0.  (d is a static int)"""
    if d == 0:
        return a
    n = a.shape[-1]
    z = jnp.zeros(a.shape[:-1] + (abs(d),), dtype=a.dtype)
    if d > 0:
        return jnp.concatenate([a[:, d:], z], axis=-1)
    return jnp.concatenate([z, a[:, : n + d]], axis=-1)


def _conv3x3(a, w_taps, not_col0, not_collast, width):
    """3x3 SAME conv on a channel-major activation slab.

    a:       (Cin, H*W) bf16, row-major flattened spatial
    w_taps:  list of 9 (Cout, Cin) bf16 tap matrices, tap t = ky*3 + kx
    returns  (Cout, H*W) f32 (pre-bias, pre-activation)
    """
    # Pre-masked sources: a dx=+1 tap must never read source column 0 (that
    # lane belongs to the next row after the flattened shift); dx=-1 must
    # never read source column W-1.  dy out-of-range is handled by the
    # zero-fill of _shift_lanes, so no other masking is required.
    zeros = jnp.zeros_like(a)
    src = {
        -1: jnp.where(not_collast, a, zeros),
        0: a,
        1: jnp.where(not_col0, a, zeros),
    }
    acc = None
    for t in range(KS * KS):
        ky, kx = divmod(t, KS)
        dy, dx = ky - 1, kx - 1
        shifted = _shift_lanes(src[dx], dy * width + dx)
        part = jnp.dot(w_taps[t], shifted, preferred_element_type=jnp.float32)
        acc = part if acc is None else acc + part
    return acc


def _simple_cnn_kernel(x_ref, w1_ref, b1_ref, w2_ref, b2_ref, o_ref, *, width):
    """Fused conv3x3 -> ReLU -> conv3x3 -> ReLU for a block of batch elements.

    x_ref:  (Bblk, IN_CH, H*W)    f32  channel-major, lane-dense
    w1_ref: (9, MID_CH, IN_CH)    bf16 per-tap conv1 matrices (t = ky*3+kx)
    b1_ref: (MID_CH, 1)           f32
    w2_ref: (9, OUT_CH, MID_CH)   bf16 per-tap conv2 matrices
    b2_ref: (OUT_CH, 1)           f32
    o_ref:  (Bblk, OUT_CH, H*W)   f32  NCHW-ordered, 256-lane dense stores
    """
    bblk, _, hw = x_ref.shape

    # Lane (flattened spatial) column masks -- computed once per step.
    lane = lax.broadcasted_iota(jnp.int32, (1, hw), 1)
    col = lane % width
    not_col0 = col != 0
    not_collast = col != (width - 1)

    # Hoist constant weight/bias loads out of the per-batch loop.
    w1 = [w1_ref[t] for t in range(KS * KS)]
    w2 = [w2_ref[t] for t in range(KS * KS)]
    b1 = b1_ref[...]
    b2 = b2_ref[...]

    for b in range(bblk):  # static unroll over the batch block
        x = x_ref[b].astype(jnp.bfloat16)                        # (16, HW)
        a1 = _conv3x3(x, w1, not_col0, not_collast, width)       # (64, HW) f32
        h1 = jnp.maximum(a1 + b1, 0.0).astype(jnp.bfloat16)      # (64, HW) bf16
        a2 = _conv3x3(h1, w2, not_col0, not_collast, width)      # (32, HW) f32
        o_ref[b] = jnp.maximum(a2 + b2, 0.0).astype(o_ref.dtype)


def _pick_batch_block(batch, max_block=8):
    """Batch elements per grid step.  One bigger step beats several ~1us steps
    for this latency-bound kernel; per-element VMEM footprint is well under
    1 MiB, so blocks up to max_block are safe on v5e/v6e/v7x."""
    return min(batch, max_block) if batch > 0 else 1


def simple_cnn_forward(x_nchw, w1_oihw, b1, w2_oihw, b2, *, batch_block=None):
    """x_nchw: (B, 16, H, W) float32; weights in PyTorch OIHW layout.
    Returns (B, 32, H, W) float32."""
    batch, cin, height, width = x_nchw.shape
    assert cin == IN_CH
    hw = height * width

    bblk = batch_block if batch_block is not None else _pick_batch_block(batch)
    n_steps = -(-batch // bblk)
    bpad = n_steps * bblk

    # Input glue: metadata-only reshape (+ batch pad only if needed).
    x = x_nchw.reshape(batch, IN_CH, hw)
    if bpad != batch:
        x = jnp.pad(x, ((0, bpad - batch), (0, 0), (0, 0)))

    # Weight glue (tiny, one-time): OIHW -> 9 per-tap (Cout, Cin) matrices,
    # tap index t = ky*3 + kx, so w_taps[t] == w_oihw[:, :, ky, kx].
    w1_taps = jnp.transpose(w1_oihw, (2, 3, 0, 1)).reshape(
        KS * KS, MID_CH, IN_CH).astype(jnp.bfloat16)
    w2_taps = jnp.transpose(w2_oihw, (2, 3, 0, 1)).reshape(
        KS * KS, OUT_CH, MID_CH).astype(jnp.bfloat16)
    b1_2d = b1.reshape(MID_CH, 1).astype(jnp.float32)
    b2_2d = b2.reshape(OUT_CH, 1).astype(jnp.float32)

    kernel = functools.partial(_simple_cnn_kernel, width=width)

    out = pl.pallas_call(
        kernel,
        out_shape=jax.ShapeDtypeStruct((bpad, OUT_CH, hw), jnp.float32),
        grid_spec=pltpu.PrefetchScalarGridSpec(
            num_scalar_prefetch=0,
            grid=(n_steps,),
            in_specs=[
                pl.BlockSpec((bblk, IN_CH, hw), lambda i: (i, 0, 0)),
                pl.BlockSpec((KS * KS, MID_CH, IN_CH), lambda i: (0, 0, 0)),
                pl.BlockSpec((MID_CH, 1), lambda i: (0, 0)),
                pl.BlockSpec((KS * KS, OUT_CH, MID_CH), lambda i: (0, 0, 0)),
                pl.BlockSpec((OUT_CH, 1), lambda i: (0, 0)),
            ],
            out_specs=pl.BlockSpec((bblk, OUT_CH, hw), lambda i: (i, 0, 0)),
        ),
        compiler_params=pltpu.CompilerParams(
            dimension_semantics=("parallel",)),
    )(x, w1_taps, b1_2d, w2_taps, b2_2d)

    # Output is already NCHW-ordered; pure metadata reshape.
    return out[:batch].reshape(batch, OUT_CH, height, width)


def _reference_forward(x_nchw, w1_oihw, b1, w2_oihw, b2):
    """Pure-JAX reference with matching numerics: bf16 operands, f32 accum."""
    xb = x_nchw.astype(jnp.bfloat16)
    w1b = w1_oihw.astype(jnp.bfloat16)
    w2b = w2_oihw.astype(jnp.bfloat16)
    h = lax.conv_general_dilated(
        xb, w1b, window_strides=(1, 1), padding="SAME",
        dimension_numbers=("NCHW", "OIHW", "NCHW"),
        preferred_element_type=jnp.float32)
    h = jnp.maximum(h + b1[None, :, None, None], 0.0)
    o = lax.conv_general_dilated(
        h.astype(jnp.bfloat16), w2b, window_strides=(1, 1), padding="SAME",
        dimension_numbers=("NCHW", "OIHW", "NCHW"),
        preferred_element_type=jnp.float32)
    return jnp.maximum(o + b2[None, :, None, None], 0.0)


if __name__ == "__main__":
    key = jax.random.PRNGKey(0)
    k_x, k_w1, k_b1, k_w2, k_b2 = jax.random.split(key, 5)

    B, H, W = 2, 16, 16
    x = jax.random.normal(k_x, (B, IN_CH, H, W), dtype=jnp.float32)

    # Parameters in PyTorch nn.Conv2d layout (OIHW), fan-in scaled.
    w1 = jax.random.normal(k_w1, (MID_CH, IN_CH, KS, KS), jnp.float32) * (
        1.0 / (KS * KS * IN_CH) ** 0.5)
    b1 = jax.random.normal(k_b1, (MID_CH,), jnp.float32) * 0.01
    w2 = jax.random.normal(k_w2, (OUT_CH, MID_CH, KS, KS), jnp.float32) * (
        1.0 / (KS * KS * MID_CH) ** 0.5)
    b2 = jax.random.normal(k_b2, (OUT_CH,), jnp.float32) * 0.01

    out = jax.block_until_ready(simple_cnn_forward(x, w1, b1, w2, b2))

    ref = _reference_forward(x, w1, b1, w2, b2)
    assert out.shape == (B, OUT_CH, H, W), out.shape
    assert jnp.allclose(out, ref, atol=2e-2, rtol=2e-2), float(
        jnp.max(jnp.abs(out - ref)))

    print("KERNEL_OK")
</pallas_src>

<mosaic_0001>
module attributes {stable_mosaic.version = 11 : i64} {
  func.func @_simple_cnn_kernel(%arg0: i32, %arg1: memref<2x16x256xf32, #tpu.memory_space<vmem>>, %arg2: memref<9x64x16xbf16, #tpu.memory_space<vmem>>, %arg3: memref<64x1xf32, #tpu.memory_space<vmem>>, %arg4: memref<9x32x64xbf16, #tpu.memory_space<vmem>>, %arg5: memref<32x1xf32, #tpu.memory_space<vmem>>, %arg6: memref<2x32x256xf32, #tpu.memory_space<vmem>>) attributes {dimension_semantics = [#tpu.dimension_semantics<parallel>], iteration_bounds = array<i64: 1>, scalar_prefetch = 0 : i64, scratch_operands = 0 : i64, tpu.core_type = #tpu.core_type<tc>, window_params = [{transform_indices = @transform_0, window_bounds = array<i64: 2, 16, 256>}, {pipeline_mode = #tpu.pipeline_mode<synchronous>, transform_indices = @transform_1, window_bounds = array<i64: 9, 64, 16>}, {pipeline_mode = #tpu.pipeline_mode<synchronous>, transform_indices = @transform_2, window_bounds = array<i64: 64, 1>}, {pipeline_mode = #tpu.pipeline_mode<synchronous>, transform_indices = @transform_3, window_bounds = array<i64: 9, 32, 64>}, {pipeline_mode = #tpu.pipeline_mode<synchronous>, transform_indices = @transform_4, window_bounds = array<i64: 32, 1>}, {transform_indices = @transform_5, window_bounds = array<i64: 2, 32, 256>}]} {
    %0 = tpu.iota {dimensions = array<i32: 1>} : vector<1x256xi32>
    %c16_i32 = arith.constant 16 : i32
    %c0_i32 = arith.constant 0 : i32
    %1 = arith.cmpi eq, %c16_i32, %c0_i32 : i32
    %c1_i32 = arith.constant 1 : i32
    %2 = arith.select %1, %c1_i32, %c16_i32 : i32
    %3 = vector.broadcast %2 : i32 to vector<1x256xi32>
    %4 = arith.remsi %0, %3 : vector<1x256xi32>
    %c0_i32_0 = arith.constant 0 : i32
    %5 = vector.broadcast %c0_i32_0 : i32 to vector<1x256xi32>
    %6 = arith.cmpi ne, %4, %5 : vector<1x256xi32>
    %c0_i32_1 = arith.constant 0 : i32
    %7 = vector.broadcast %c0_i32_1 : i32 to vector<1x256xi32>
    %8 = arith.cmpi slt, %4, %7 : vector<1x256xi32>
    %c0_i32_2 = arith.constant 0 : i32
    %9 = arith.cmpi slt, %2, %c0_i32_2 : i32
    %10 = vector.broadcast %9 : i1 to vector<1x256xi1>
    %11 = vector.broadcast %10 : vector<1x256xi1> to vector<1x256xi1>
    %12 = arith.xori %8, %11 : vector<1x256xi1>
    %13 = arith.andi %12, %6 : vector<1x256xi1>
    %14 = vector.broadcast %2 : i32 to vector<1x256xi32>
    %15 = arith.addi %4, %14 : vector<1x256xi32>
    %16 = arith.select %13, %15, %4 : vector<1x256xi1>, vector<1x256xi32>
    %c0_i32_3 = arith.constant 0 : i32
    %17 = vector.broadcast %c0_i32_3 : i32 to vector<1x256xi32>
    %18 = arith.cmpi ne, %16, %17 : vector<1x256xi32>
    %c15_i32 = arith.constant 15 : i32
    %19 = vector.broadcast %c15_i32 : i32 to vector<1x256xi32>
    %20 = arith.cmpi ne, %16, %19 : vector<1x256xi32>
    %c0 = arith.constant 0 : index
    %c0_4 = arith.constant 0 : index
    %c0_5 = arith.constant 0 : index
    %21 = vector.load %arg2[%c0, %c0_4, %c0_5] : memref<9x64x16xbf16, #tpu.memory_space<vmem>>, vector<1x64x16xbf16>
    %22 = vector.shape_cast %21 : vector<1x64x16xbf16> to vector<64x16xbf16>
    %c1 = arith.constant 1 : index
    %c0_6 = arith.constant 0 : index
    %c0_7 = arith.constant 0 : index
    %23 = vector.load %arg2[%c1, %c0_6, %c0_7] : memref<9x64x16xbf16, #tpu.memory_space<vmem>>, vector<1x64x16xbf16>
    %24 = vector.shape_cast %23 : vector<1x64x16xbf16> to vector<64x16xbf16>
    %c2 = arith.constant 2 : index
    %c0_8 = arith.constant 0 : index
    %c0_9 = arith.constant 0 : index
    %25 = vector.load %arg2[%c2, %c0_8, %c0_9] : memref<9x64x16xbf16, #tpu.memory_space<vmem>>, vector<1x64x16xbf16>
    %26 = vector.shape_cast %25 : vector<1x64x16xbf16> to vector<64x16xbf16>
    %c3 = arith.constant 3 : index
    %c0_10 = arith.constant 0 : index
    %c0_11 = arith.constant 0 : index
    %27 = vector.load %arg2[%c3, %c0_10, %c0_11] : memref<9x64x16xbf16, #tpu.memory_space<vmem>>, vector<1x64x16xbf16>
    %28 = vector.shape_cast %27 : vector<1x64x16xbf16> to vector<64x16xbf16>
    %c4 = arith.constant 4 : index
    %c0_12 = arith.constant 0 : index
    %c0_13 = arith.constant 0 : index
    %29 = vector.load %arg2[%c4, %c0_12, %c0_13] : memref<9x64x16xbf16, #tpu.memory_space<vmem>>, vector<1x64x16xbf16>
    %30 = vector.shape_cast %29 : vector<1x64x16xbf16> to vector<64x16xbf16>
    %c5 = arith.constant 5 : index
    %c0_14 = arith.constant 0 : index
    %c0_15 = arith.constant 0 : index
    %31 = vector.load %arg2[%c5, %c0_14, %c0_15] : memref<9x64x16xbf16, #tpu.memory_space<vmem>>, vector<1x64x16xbf16>
    %32 = vector.shape_cast %31 : vector<1x64x16xbf16> to vector<64x16xbf16>
    %c6 = arith.constant 6 : index
    %c0_16 = arith.constant 0 : index
    %c0_17 = arith.constant 0 : index
    %33 = vector.load %arg2[%c6, %c0_16, %c0_17] : memref<9x64x16xbf16, #tpu.memory_space<vmem>>, vector<1x64x16xbf16>
    %34 = vector.shape_cast %33 : vector<1x64x16xbf16> to vector<64x16xbf16>
    %c7 = arith.constant 7 : index
    %c0_18 = arith.constant 0 : index
    %c0_19 = arith.constant 0 : index
    %35 = vector.load %arg2[%c7, %c0_18, %c0_19] : memref<9x64x16xbf16, #tpu.memory_space<vmem>>, vector<1x64x16xbf16>
    %36 = vector.shape_cast %35 : vector<1x64x16xbf16> to vector<64x16xbf16>
    %c8 = arith.constant 8 : index
    %c0_20 = arith.constant 0 : index
    %c0_21 = arith.constant 0 : index
    %37 = vector.load %arg2[%c8, %c0_20, %c0_21] : memref<9x64x16xbf16, #tpu.memory_space<vmem>>, vector<1x64x16xbf16>
    %38 = vector.shape_cast %37 : vector<1x64x16xbf16> to vector<64x16xbf16>
    %c0_22 = arith.constant 0 : index
    %c0_23 = arith.constant 0 : index
    %c0_24 = arith.constant 0 : index
    %39 = vector.load %arg4[%c0_22, %c0_23, %c0_24] : memref<9x32x64xbf16, #tpu.memory_space<vmem>>, vector<1x32x64xbf16>
    %40 = vector.shape_cast %39 : vector<1x32x64xbf16> to vector<32x64xbf16>
    %c1_25 = arith.constant 1 : index
    %c0_26 = arith.constant 0 : index
    %c0_27 = arith.constant 0 : index
    %41 = vector.load %arg4[%c1_25, %c0_26, %c0_27] : memref<9x32x64xbf16, #tpu.memory_space<vmem>>, vector<1x32x64xbf16>
    %42 = vector.shape_cast %41 : vector<1x32x64xbf16> to vector<32x64xbf16>
    %c2_28 = arith.constant 2 : index
    %c0_29 = arith.constant 0 : index
    %c0_30 = arith.constant 0 : index
    %43 = vector.load %arg4[%c2_28, %c0_29, %c0_30] : memref<9x32x64xbf16, #tpu.memory_space<vmem>>, vector<1x32x64xbf16>
    %44 = vector.shape_cast %43 : vector<1x32x64xbf16> to vector<32x64xbf16>
    %c3_31 = arith.constant 3 : index
    %c0_32 = arith.constant 0 : index
    %c0_33 = arith.constant 0 : index
    %45 = vector.load %arg4[%c3_31, %c0_32, %c0_33] : memref<9x32x64xbf16, #tpu.memory_space<vmem>>, vector<1x32x64xbf16>
    %46 = vector.shape_cast %45 : vector<1x32x64xbf16> to vector<32x64xbf16>
    %c4_34 = arith.constant 4 : index
    %c0_35 = arith.constant 0 : index
    %c0_36 = arith.constant 0 : index
    %47 = vector.load %arg4[%c4_34, %c0_35, %c0_36] : memref<9x32x64xbf16, #tpu.memory_space<vmem>>, vector<1x32x64xbf16>
    %48 = vector.shape_cast %47 : vector<1x32x64xbf16> to vector<32x64xbf16>
    %c5_37 = arith.constant 5 : index
    %c0_38 = arith.constant 0 : index
    %c0_39 = arith.constant 0 : index
    %49 = vector.load %arg4[%c5_37, %c0_38, %c0_39] : memref<9x32x64xbf16, #tpu.memory_space<vmem>>, vector<1x32x64xbf16>
    %50 = vector.shape_cast %49 : vector<1x32x64xbf16> to vector<32x64xbf16>
    %c6_40 = arith.constant 6 : index
    %c0_41 = arith.constant 0 : index
    %c0_42 = arith.constant 0 : index
    %51 = vector.load %arg4[%c6_40, %c0_41, %c0_42] : memref<9x32x64xbf16, #tpu.memory_space<vmem>>, vector<1x32x64xbf16>
    %52 = vector.shape_cast %51 : vector<1x32x64xbf16> to vector<32x64xbf16>
    %c7_43 = arith.constant 7 : index
    %c0_44 = arith.constant 0 : index
    %c0_45 = arith.constant 0 : index
    %53 = vector.load %arg4[%c7_43, %c0_44, %c0_45] : memref<9x32x64xbf16, #tpu.memory_space<vmem>>, vector<1x32x64xbf16>
    %54 = vector.shape_cast %53 : vector<1x32x64xbf16> to vector<32x64xbf16>
    %c8_46 = arith.constant 8 : index
    %c0_47 = arith.constant 0 : index
    %c0_48 = arith.constant 0 : index
    %55 = vector.load %arg4[%c8_46, %c0_47, %c0_48] : memref<9x32x64xbf16, #tpu.memory_space<vmem>>, vector<1x32x64xbf16>
    %56 = vector.shape_cast %55 : vector<1x32x64xbf16> to vector<32x64xbf16>
    %c0_49 = arith.constant 0 : index
    %c0_50 = arith.constant 0 : index
    %57 = vector.load %arg3[%c0_49, %c0_50] : memref<64x1xf32, #tpu.memory_space<vmem>>, vector<64x1xf32>
    %c0_51 = arith.constant 0 : index
    %c0_52 = arith.constant 0 : index
    %58 = vector.load %arg5[%c0_51, %c0_52] : memref<32x1xf32, #tpu.memory_space<vmem>>, vector<32x1xf32>
    %c0_53 = arith.constant 0 : index
    %c0_54 = arith.constant 0 : index
    %c0_55 = arith.constant 0 : index
    %59 = vector.load %arg1[%c0_53, %c0_54, %c0_55] : memref<2x16x256xf32, #tpu.memory_space<vmem>>, vector<1x16x256xf32>
    %60 = vector.shape_cast %59 : vector<1x16x256xf32> to vector<16x256xf32>
    %61 = arith.truncf %60 : vector<16x256xf32> to vector<16x256xbf16>
    %cst = arith.constant 0.000000e+00 : bf16
    %62 = vector.broadcast %cst : bf16 to vector<16x256xbf16>
    %63 = vector.shape_cast %20 : vector<1x256xi1> to vector<1x256xi1>
    %64 = vector.broadcast %63 : vector<1x256xi1> to vector<16x256xi1>
    %65 = arith.select %64, %61, %62 : vector<16x256xi1>, vector<16x256xbf16>
    %66 = vector.shape_cast %18 : vector<1x256xi1> to vector<1x256xi1>
    %67 = vector.broadcast %66 : vector<1x256xi1> to vector<16x256xi1>
    %68 = arith.select %67, %61, %62 : vector<16x256xi1>, vector<16x256xbf16>
    %cst_56 = arith.constant 0.000000e+00 : bf16
    %69 = vector.broadcast %cst_56 : bf16 to vector<16x17xbf16>
    %70 = vector.extract_strided_slice %65 {offsets = [0, 0], sizes = [16, 239], strides = [1, 1]} : vector<16x256xbf16> to vector<16x239xbf16>
    %71 = tpu.concatenate %69, %70 in 1 : vector<16x17xbf16>, vector<16x239xbf16> -> vector<16x256xbf16>
    %cst_57 = arith.constant dense<0.000000e+00> : vector<64x256xf32>
    %72 = tpu.matmul %22, %71, %cst_57 {dimension_numbers = #tpu.dot_dimension_numbers<[1], [0], [0], [1], [0, 0, 1, 1], [], []>} : vector<64x16xbf16>, vector<16x256xbf16>, vector<64x256xf32> -> vector<64x256xf32>
    %cst_58 = arith.constant 0.000000e+00 : bf16
    %73 = vector.broadcast %cst_58 : bf16 to vector<16x16xbf16>
    %74 = vector.extract_strided_slice %61 {offsets = [0, 0], sizes = [16, 240], strides = [1, 1]} : vector<16x256xbf16> to vector<16x240xbf16>
    %75 = tpu.concatenate %73, %74 in 1 : vector<16x16xbf16>, vector<16x240xbf16> -> vector<16x256xbf16>
    %cst_59 = arith.constant dense<0.000000e+00> : vector<64x256xf32>
    %76 = tpu.matmul %24, %75, %cst_59 {dimension_numbers = #tpu.dot_dimension_numbers<[1], [0], [0], [1], [0, 0, 1, 1], [], []>} : vector<64x16xbf16>, vector<16x256xbf16>, vector<64x256xf32> -> vector<64x256xf32>
    %77 = arith.addf %72, %76 : vector<64x256xf32>
    %cst_60 = arith.constant 0.000000e+00 : bf16
    %78 = vector.broadcast %cst_60 : bf16 to vector<16x15xbf16>
    %79 = vector.extract_strided_slice %68 {offsets = [0, 0], sizes = [16, 241], strides = [1, 1]} : vector<16x256xbf16> to vector<16x241xbf16>
    %80 = tpu.concatenate %78, %79 in 1 : vector<16x15xbf16>, vector<16x241xbf16> -> vector<16x256xbf16>
    %cst_61 = arith.constant dense<0.000000e+00> : vector<64x256xf32>
    %81 = tpu.matmul %26, %80, %cst_61 {dimension_numbers = #tpu.dot_dimension_numbers<[1], [0], [0], [1], [0, 0, 1, 1], [], []>} : vector<64x16xbf16>, vector<16x256xbf16>, vector<64x256xf32> -> vector<64x256xf32>
    %82 = arith.addf %77, %81 : vector<64x256xf32>
    %cst_62 = arith.constant 0.000000e+00 : bf16
    %83 = vector.broadcast %cst_62 : bf16 to vector<16x1xbf16>
    %84 = vector.extract_strided_slice %65 {offsets = [0, 0], sizes = [16, 255], strides = [1, 1]} : vector<16x256xbf16> to vector<16x255xbf16>
    %85 = tpu.concatenate %83, %84 in 1 : vector<16x1xbf16>, vector<16x255xbf16> -> vector<16x256xbf16>
    %cst_63 = arith.constant dense<0.000000e+00> : vector<64x256xf32>
    %86 = tpu.matmul %28, %85, %cst_63 {dimension_numbers = #tpu.dot_dimension_numbers<[1], [0], [0], [1], [0, 0, 1, 1], [], []>} : vector<64x16xbf16>, vector<16x256xbf16>, vector<64x256xf32> -> vector<64x256xf32>
    %87 = arith.addf %82, %86 : vector<64x256xf32>
    %cst_64 = arith.constant dense<0.000000e+00> : vector<64x256xf32>
    %88 = tpu.matmul %30, %61, %cst_64 {dimension_numbers = #tpu.dot_dimension_numbers<[1], [0], [0], [1], [0, 0, 1, 1], [], []>} : vector<64x16xbf16>, vector<16x256xbf16>, vector<64x256xf32> -> vector<64x256xf32>
    %89 = arith.addf %87, %88 : vector<64x256xf32>
    %cst_65 = arith.constant 0.000000e+00 : bf16
    %90 = vector.broadcast %cst_65 : bf16 to vector<16x1xbf16>
    %91 = vector.extract_strided_slice %68 {offsets = [0, 1], sizes = [16, 255], strides = [1, 1]} : vector<16x256xbf16> to vector<16x255xbf16>
    %92 = tpu.concatenate %91, %90 in 1 : vector<16x255xbf16>, vector<16x1xbf16> -> vector<16x256xbf16>
    %cst_66 = arith.constant dense<0.000000e+00> : vector<64x256xf32>
    %93 = tpu.matmul %32, %92, %cst_66 {dimension_numbers = #tpu.dot_dimension_numbers<[1], [0], [0], [1], [0, 0, 1, 1], [], []>} : vector<64x16xbf16>, vector<16x256xbf16>, vector<64x256xf32> -> vector<64x256xf32>
    %94 = arith.addf %89, %93 : vector<64x256xf32>
    %cst_67 = arith.constant 0.000000e+00 : bf16
    %95 = vector.broadcast %cst_67 : bf16 to vector<16x15xbf16>
    %96 = vector.extract_strided_slice %65 {offsets = [0, 15], sizes = [16, 241], strides = [1, 1]} : vector<16x256xbf16> to vector<16x241xbf16>
    %97 = tpu.concatenate %96, %95 in 1 : vector<16x241xbf16>, vector<16x15xbf16> -> vector<16x256xbf16>
    %cst_68 = arith.constant dense<0.000000e+00> : vector<64x256xf32>
    %98 = tpu.matmul %34, %97, %cst_68 {dimension_numbers = #tpu.dot_dimension_numbers<[1], [0], [0], [1], [0, 0, 1, 1], [], []>} : vector<64x16xbf16>, vector<16x256xbf16>, vector<64x256xf32> -> vector<64x256xf32>
    %99 = arith.addf %94, %98 : vector<64x256xf32>
    %cst_69 = arith.constant 0.000000e+00 : bf16
    %100 = vector.broadcast %cst_69 : bf16 to vector<16x16xbf16>
    %101 = vector.extract_strided_slice %61 {offsets = [0, 16], sizes = [16, 240], strides = [1, 1]} : vector<16x256xbf16> to vector<16x240xbf16>
    %102 = tpu.concatenate %101, %100 in 1 : vector<16x240xbf16>, vector<16x16xbf16> -> vector<16x256xbf16>
    %cst_70 = arith.constant dense<0.000000e+00> : vector<64x256xf32>
    %103 = tpu.matmul %36, %102, %cst_70 {dimension_numbers = #tpu.dot_dimension_numbers<[1], [0], [0], [1], [0, 0, 1, 1], [], []>} : vector<64x16xbf16>, vector<16x256xbf16>, vector<64x256xf32> -> vector<64x256xf32>
    %104 = arith.addf %99, %103 : vector<64x256xf32>
    %cst_71 = arith.constant 0.000000e+00 : bf16
    %105 = vector.broadcast %cst_71 : bf16 to vector<16x17xbf16>
    %106 = vector.extract_strided_slice %68 {offsets = [0, 17], sizes = [16, 239], strides = [1, 1]} : vector<16x256xbf16> to vector<16x239xbf16>
    %107 = tpu.concatenate %106, %105 in 1 : vector<16x239xbf16>, vector<16x17xbf16> -> vector<16x256xbf16>
    %cst_72 = arith.constant dense<0.000000e+00> : vector<64x256xf32>
    %108 = tpu.matmul %38, %107, %cst_72 {dimension_numbers = #tpu.dot_dimension_numbers<[1], [0], [0], [1], [0, 0, 1, 1], [], []>} : vector<64x16xbf16>, vector<16x256xbf16>, vector<64x256xf32> -> vector<64x256xf32>
    %109 = arith.addf %104, %108 : vector<64x256xf32>
    %110 = vector.broadcast %57 : vector<64x1xf32> to vector<64x256xf32>
    %111 = arith.addf %109, %110 : vector<64x256xf32>
    %cst_73 = arith.constant 0.000000e+00 : f32
    %112 = vector.broadcast %cst_73 : f32 to vector<64x256xf32>
    %113 = arith.maximumf %111, %112 : vector<64x256xf32>
    %114 = arith.truncf %113 : vector<64x256xf32> to vector<64x256xbf16>
    %cst_74 = arith.constant 0.000000e+00 : bf16
    %115 = vector.broadcast %cst_74 : bf16 to vector<64x256xbf16>
    %116 = vector.shape_cast %20 : vector<1x256xi1> to vector<1x256xi1>
    %117 = vector.broadcast %116 : vector<1x256xi1> to vector<64x256xi1>
    %118 = arith.select %117, %114, %115 : vector<64x256xi1>, vector<64x256xbf16>
    %119 = vector.shape_cast %18 : vector<1x256xi1> to vector<1x256xi1>
    %120 = vector.broadcast %119 : vector<1x256xi1> to vector<64x256xi1>
    %121 = arith.select %120, %114, %115 : vector<64x256xi1>, vector<64x256xbf16>
    %cst_75 = arith.constant 0.000000e+00 : bf16
    %122 = vector.broadcast %cst_75 : bf16 to vector<64x17xbf16>
    %123 = vector.extract_strided_slice %118 {offsets = [0, 0], sizes = [64, 239], strides = [1, 1]} : vector<64x256xbf16> to vector<64x239xbf16>
    %124 = tpu.concatenate %122, %123 in 1 : vector<64x17xbf16>, vector<64x239xbf16> -> vector<64x256xbf16>
    %cst_76 = arith.constant dense<0.000000e+00> : vector<32x256xf32>
    %125 = tpu.matmul %40, %124, %cst_76 {dimension_numbers = #tpu.dot_dimension_numbers<[1], [0], [0], [1], [0, 0, 1, 1], [], []>} : vector<32x64xbf16>, vector<64x256xbf16>, vector<32x256xf32> -> vector<32x256xf32>
    %cst_77 = arith.constant 0.000000e+00 : bf16
    %126 = vector.broadcast %cst_77 : bf16 to vector<64x16xbf16>
    %127 = vector.extract_strided_slice %114 {offsets = [0, 0], sizes = [64, 240], strides = [1, 1]} : vector<64x256xbf16> to vector<64x240xbf16>
    %128 = tpu.concatenate %126, %127 in 1 : vector<64x16xbf16>, vector<64x240xbf16> -> vector<64x256xbf16>
    %cst_78 = arith.constant dense<0.000000e+00> : vector<32x256xf32>
    %129 = tpu.matmul %42, %128, %cst_78 {dimension_numbers = #tpu.dot_dimension_numbers<[1], [0], [0], [1], [0, 0, 1, 1], [], []>} : vector<32x64xbf16>, vector<64x256xbf16>, vector<32x256xf32> -> vector<32x256xf32>
    %130 = arith.addf %125, %129 : vector<32x256xf32>
    %cst_79 = arith.constant 0.000000e+00 : bf16
    %131 = vector.broadcast %cst_79 : bf16 to vector<64x15xbf16>
    %132 = vector.extract_strided_slice %121 {offsets = [0, 0], sizes = [64, 241], strides = [1, 1]} : vector<64x256xbf16> to vector<64x241xbf16>
    %133 = tpu.concatenate %131, %132 in 1 : vector<64x15xbf16>, vector<64x241xbf16> -> vector<64x256xbf16>
    %cst_80 = arith.constant dense<0.000000e+00> : vector<32x256xf32>
    %134 = tpu.matmul %44, %133, %cst_80 {dimension_numbers = #tpu.dot_dimension_numbers<[1], [0], [0], [1], [0, 0, 1, 1], [], []>} : vector<32x64xbf16>, vector<64x256xbf16>, vector<32x256xf32> -> vector<32x256xf32>
    %135 = arith.addf %130, %134 : vector<32x256xf32>
    %cst_81 = arith.constant 0.000000e+00 : bf16
    %136 = vector.broadcast %cst_81 : bf16 to vector<64x1xbf16>
    %137 = vector.extract_strided_slice %118 {offsets = [0, 0], sizes = [64, 255], strides = [1, 1]} : vector<64x256xbf16> to vector<64x255xbf16>
    %138 = tpu.concatenate %136, %137 in 1 : vector<64x1xbf16>, vector<64x255xbf16> -> vector<64x256xbf16>
    %cst_82 = arith.constant dense<0.000000e+00> : vector<32x256xf32>
    %139 = tpu.matmul %46, %138, %cst_82 {dimension_numbers = #tpu.dot_dimension_numbers<[1], [0], [0], [1], [0, 0, 1, 1], [], []>} : vector<32x64xbf16>, vector<64x256xbf16>, vector<32x256xf32> -> vector<32x256xf32>
    %140 = arith.addf %135, %139 : vector<32x256xf32>
    %cst_83 = arith.constant dense<0.000000e+00> : vector<32x256xf32>
    %141 = tpu.matmul %48, %114, %cst_83 {dimension_numbers = #tpu.dot_dimension_numbers<[1], [0], [0], [1], [0, 0, 1, 1], [], []>} : vector<32x64xbf16>, vector<64x256xbf16>, vector<32x256xf32> -> vector<32x256xf32>
    %142 = arith.addf %140, %141 : vector<32x256xf32>
    %cst_84 = arith.constant 0.000000e+00 : bf16
    %143 = vector.broadcast %cst_84 : bf16 to vector<64x1xbf16>
    %144 = vector.extract_strided_slice %121 {offsets = [0, 1], sizes = [64, 255], strides = [1, 1]} : vector<64x256xbf16> to vector<64x255xbf16>
    %145 = tpu.concatenate %144, %143 in 1 : vector<64x255xbf16>, vector<64x1xbf16> -> vector<64x256xbf16>
    %cst_85 = arith.constant dense<0.000000e+00> : vector<32x256xf32>
    %146 = tpu.matmul %50, %145, %cst_85 {dimension_numbers = #tpu.dot_dimension_numbers<[1], [0], [0], [1], [0, 0, 1, 1], [], []>} : vector<32x64xbf16>, vector<64x256xbf16>, vector<32x256xf32> -> vector<32x256xf32>
    %147 = arith.addf %142, %146 : vector<32x256xf32>
    %cst_86 = arith.constant 0.000000e+00 : bf16
    %148 = vector.broadcast %cst_86 : bf16 to vector<64x15xbf16>
    %149 = vector.extract_strided_slice %118 {offsets = [0, 15], sizes = [64, 241], strides = [1, 1]} : vector<64x256xbf16> to vector<64x241xbf16>
    %150 = tpu.concatenate %149, %148 in 1 : vector<64x241xbf16>, vector<64x15xbf16> -> vector<64x256xbf16>
    %cst_87 = arith.constant dense<0.000000e+00> : vector<32x256xf32>
    %151 = tpu.matmul %52, %150, %cst_87 {dimension_numbers = #tpu.dot_dimension_numbers<[1], [0], [0], [1], [0, 0, 1, 1], [], []>} : vector<32x64xbf16>, vector<64x256xbf16>, vector<32x256xf32> -> vector<32x256xf32>
    %152 = arith.addf %147, %151 : vector<32x256xf32>
    %cst_88 = arith.constant 0.000000e+00 : bf16
    %153 = vector.broadcast %cst_88 : bf16 to vector<64x16xbf16>
    %154 = vector.extract_strided_slice %114 {offsets = [0, 16], sizes = [64, 240], strides = [1, 1]} : vector<64x256xbf16> to vector<64x240xbf16>
    %155 = tpu.concatenate %154, %153 in 1 : vector<64x240xbf16>, vector<64x16xbf16> -> vector<64x256xbf16>
    %cst_89 = arith.constant dense<0.000000e+00> : vector<32x256xf32>
    %156 = tpu.matmul %54, %155, %cst_89 {dimension_numbers = #tpu.dot_dimension_numbers<[1], [0], [0], [1], [0, 0, 1, 1], [], []>} : vector<32x64xbf16>, vector<64x256xbf16>, vector<32x256xf32> -> vector<32x256xf32>
    %157 = arith.addf %152, %156 : vector<32x256xf32>
    %cst_90 = arith.constant 0.000000e+00 : bf16
    %158 = vector.broadcast %cst_90 : bf16 to vector<64x17xbf16>
    %159 = vector.extract_strided_slice %121 {offsets = [0, 17], sizes = [64, 239], strides = [1, 1]} : vector<64x256xbf16> to vector<64x239xbf16>
    %160 = tpu.concatenate %159, %158 in 1 : vector<64x239xbf16>, vector<64x17xbf16> -> vector<64x256xbf16>
    %cst_91 = arith.constant dense<0.000000e+00> : vector<32x256xf32>
    %161 = tpu.matmul %56, %160, %cst_91 {dimension_numbers = #tpu.dot_dimension_numbers<[1], [0], [0], [1], [0, 0, 1, 1], [], []>} : vector<32x64xbf16>, vector<64x256xbf16>, vector<32x256xf32> -> vector<32x256xf32>
    %162 = arith.addf %157, %161 : vector<32x256xf32>
    %163 = vector.broadcast %58 : vector<32x1xf32> to vector<32x256xf32>
    %164 = arith.addf %162, %163 : vector<32x256xf32>
    %cst_92 = arith.constant 0.000000e+00 : f32
    %165 = vector.broadcast %cst_92 : f32 to vector<32x256xf32>
    %166 = arith.maximumf %164, %165 : vector<32x256xf32>
    %c0_93 = arith.constant 0 : index
    %c0_94 = arith.constant 0 : index
    %c0_95 = arith.constant 0 : index
    %167 = vector.load %arg6[%c0_93, %c0_94, %c0_95] : memref<2x32x256xf32, #tpu.memory_space<vmem>>, vector<1x32x256xf32>
    %168 = vector.shape_cast %167 : vector<1x32x256xf32> to vector<32x256xf32>
    %169 = vector.shape_cast %166 : vector<32x256xf32> to vector<1x32x256xf32>
    tpu.vector_store %arg6[%c0_93, %c0_94, %c0_95], %169 {strides = array<i32>} : memref<2x32x256xf32, #tpu.memory_space<vmem>>, vector<1x32x256xf32>,
    %c1_96 = arith.constant 1 : index
    %c0_97 = arith.constant 0 : index
    %c0_98 = arith.constant 0 : index
    %170 = vector.load %arg1[%c1_96, %c0_97, %c0_98] : memref<2x16x256xf32, #tpu.memory_space<vmem>>, vector<1x16x256xf32>
    %171 = vector.shape_cast %170 : vector<1x16x256xf32> to vector<16x256xf32>
    %172 = arith.truncf %171 : vector<16x256xf32> to vector<16x256xbf16>
    %cst_99 = arith.constant 0.000000e+00 : bf16
    %173 = vector.broadcast %cst_99 : bf16 to vector<16x256xbf16>
    %174 = vector.shape_cast %20 : vector<1x256xi1> to vector<1x256xi1>
    %175 = vector.broadcast %174 : vector<1x256xi1> to vector<16x256xi1>
    %176 = arith.select %175, %172, %173 : vector<16x256xi1>, vector<16x256xbf16>
    %177 = vector.shape_cast %18 : vector<1x256xi1> to vector<1x256xi1>
    %178 = vector.broadcast %177 : vector<1x256xi1> to vector<16x256xi1>
    %179 = arith.select %178, %172, %173 : vector<16x256xi1>, vector<16x256xbf16>
    %cst_100 = arith.constant 0.000000e+00 : bf16
    %180 = vector.broadcast %cst_100 : bf16 to vector<16x17xbf16>
    %181 = vector.extract_strided_slice %176 {offsets = [0, 0], sizes = [16, 239], strides = [1, 1]} : vector<16x256xbf16> to vector<16x239xbf16>
    %182 = tpu.concatenate %180, %181 in 1 : vector<16x17xbf16>, vector<16x239xbf16> -> vector<16x256xbf16>
    %cst_101 = arith.constant dense<0.000000e+00> : vector<64x256xf32>
    %183 = tpu.matmul %22, %182, %cst_101 {dimension_numbers = #tpu.dot_dimension_numbers<[1], [0], [0], [1], [0, 0, 1, 1], [], []>} : vector<64x16xbf16>, vector<16x256xbf16>, vector<64x256xf32> -> vector<64x256xf32>
    %cst_102 = arith.constant 0.000000e+00 : bf16
    %184 = vector.broadcast %cst_102 : bf16 to vector<16x16xbf16>
    %185 = vector.extract_strided_slice %172 {offsets = [0, 0], sizes = [16, 240], strides = [1, 1]} : vector<16x256xbf16> to vector<16x240xbf16>
    %186 = tpu.concatenate %184, %185 in 1 : vector<16x16xbf16>, vector<16x240xbf16> -> vector<16x256xbf16>
    %cst_103 = arith.constant dense<0.000000e+00> : vector<64x256xf32>
    %187 = tpu.matmul %24, %186, %cst_103 {dimension_numbers = #tpu.dot_dimension_numbers<[1], [0], [0], [1], [0, 0, 1, 1], [], []>} : vector<64x16xbf16>, vector<16x256xbf16>, vector<64x256xf32> -> vector<64x256xf32>
    %188 = arith.addf %183, %187 : vector<64x256xf32>
    %cst_104 = arith.constant 0.000000e+00 : bf16
    %189 = vector.broadcast %cst_104 : bf16 to vector<16x15xbf16>
    %190 = vector.extract_strided_slice %179 {offsets = [0, 0], sizes = [16, 241], strides = [1, 1]} : vector<16x256xbf16> to vector<16x241xbf16>
    %191 = tpu.concatenate %189, %190 in 1 : vector<16x15xbf16>, vector<16x241xbf16> -> vector<16x256xbf16>
    %cst_105 = arith.constant dense<0.000000e+00> : vector<64x256xf32>
    %192 = tpu.matmul %26, %191, %cst_105 {dimension_numbers = #tpu.dot_dimension_numbers<[1], [0], [0], [1], [0, 0, 1, 1], [], []>} : vector<64x16xbf16>, vector<16x256xbf16>, vector<64x256xf32> -> vector<64x256xf32>
    %193 = arith.addf %188, %192 : vector<64x256xf32>
    %cst_106 = arith.constant 0.000000e+00 : bf16
    %194 = vector.broadcast %cst_106 : bf16 to vector<16x1xbf16>
    %195 = vector.extract_strided_slice %176 {offsets = [0, 0], sizes = [16, 255], strides = [1, 1]} : vector<16x256xbf16> to vector<16x255xbf16>
    %196 = tpu.concatenate %194, %195 in 1 : vector<16x1xbf16>, vector<16x255xbf16> -> vector<16x256xbf16>
    %cst_107 = arith.constant dense<0.000000e+00> : vector<64x256xf32>
    %197 = tpu.matmul %28, %196, %cst_107 {dimension_numbers = #tpu.dot_dimension_numbers<[1], [0], [0], [1], [0, 0, 1, 1], [], []>} : vector<64x16xbf16>, vector<16x256xbf16>, vector<64x256xf32> -> vector<64x256xf32>
    %198 = arith.addf %193, %197 : vector<64x256xf32>
    %cst_108 = arith.constant dense<0.000000e+00> : vector<64x256xf32>
    %199 = tpu.matmul %30, %172, %cst_108 {dimension_numbers = #tpu.dot_dimension_numbers<[1], [0], [0], [1], [0, 0, 1, 1], [], []>} : vector<64x16xbf16>, vector<16x256xbf16>, vector<64x256xf32> -> vector<64x256xf32>
    %200 = arith.addf %198, %199 : vector<64x256xf32>
    %cst_109 = arith.constant 0.000000e+00 : bf16
    %201 = vector.broadcast %cst_109 : bf16 to vector<16x1xbf16>
    %202 = vector.extract_strided_slice %179 {offsets = [0, 1], sizes = [16, 255], strides = [1, 1]} : vector<16x256xbf16> to vector<16x255xbf16>
    %203 = tpu.concatenate %202, %201 in 1 : vector<16x255xbf16>, vector<16x1xbf16> -> vector<16x256xbf16>
    %cst_110 = arith.constant dense<0.000000e+00> : vector<64x256xf32>
    %204 = tpu.matmul %32, %203, %cst_110 {dimension_numbers = #tpu.dot_dimension_numbers<[1], [0], [0], [1], [0, 0, 1, 1], [], []>} : vector<64x16xbf16>, vector<16x256xbf16>, vector<64x256xf32> -> vector<64x256xf32>
    %205 = arith.addf %200, %204 : vector<64x256xf32>
    %cst_111 = arith.constant 0.000000e+00 : bf16
    %206 = vector.broadcast %cst_111 : bf16 to vector<16x15xbf16>
    %207 = vector.extract_strided_slice %176 {offsets = [0, 15], sizes = [16, 241], strides = [1, 1]} : vector<16x256xbf16> to vector<16x241xbf16>
    %208 = tpu.concatenate %207, %206 in 1 : vector<16x241xbf16>, vector<16x15xbf16> -> vector<16x256xbf16>
    %cst_112 = arith.constant dense<0.000000e+00> : vector<64x256xf32>
    %209 = tpu.matmul %34, %208, %cst_112 {dimension_numbers = #tpu.dot_dimension_numbers<[1], [0], [0], [1], [0, 0, 1, 1], [], []>} : vector<64x16xbf16>, vector<16x256xbf16>, vector<64x256xf32> -> vector<64x256xf32>
    %210 = arith.addf %205, %209 : vector<64x256xf32>
    %cst_113 = arith.constant 0.000000e+00 : bf16
    %211 = vector.broadcast %cst_113 : bf16 to vector<16x16xbf16>
    %212 = vector.extract_strided_slice %172 {offsets = [0, 16], sizes = [16, 240], strides = [1, 1]} : vector<16x256xbf16> to vector<16x240xbf16>
    %213 = tpu.concatenate %212, %211 in 1 : vector<16x240xbf16>, vector<16x16xbf16> -> vector<16x256xbf16>
    %cst_114 = arith.constant dense<0.000000e+00> : vector<64x256xf32>
    %214 = tpu.matmul %36, %213, %cst_114 {dimension_numbers = #tpu.dot_dimension_numbers<[1], [0], [0], [1], [0, 0, 1, 1], [], []>} : vector<64x16xbf16>, vector<16x256xbf16>, vector<64x256xf32> -> vector<64x256xf32>
    %215 = arith.addf %210, %214 : vector<64x256xf32>
    %cst_115 = arith.constant 0.000000e+00 : bf16
    %216 = vector.broadcast %cst_115 : bf16 to vector<16x17xbf16>
    %217 = vector.extract_strided_slice %179 {offsets = [0, 17], sizes = [16, 239], strides = [1, 1]} : vector<16x256xbf16> to vector<16x239xbf16>
    %218 = tpu.concatenate %217, %216 in 1 : vector<16x239xbf16>, vector<16x17xbf16> -> vector<16x256xbf16>
    %cst_116 = arith.constant dense<0.000000e+00> : vector<64x256xf32>
    %219 = tpu.matmul %38, %218, %cst_116 {dimension_numbers = #tpu.dot_dimension_numbers<[1], [0], [0], [1], [0, 0, 1, 1], [], []>} : vector<64x16xbf16>, vector<16x256xbf16>, vector<64x256xf32> -> vector<64x256xf32>
    %220 = arith.addf %215, %219 : vector<64x256xf32>
    %221 = vector.broadcast %57 : vector<64x1xf32> to vector<64x256xf32>
    %222 = arith.addf %220, %221 : vector<64x256xf32>
    %cst_117 = arith.constant 0.000000e+00 : f32
    %223 = vector.broadcast %cst_117 : f32 to vector<64x256xf32>
    %224 = arith.maximumf %222, %223 : vector<64x256xf32>
    %225 = arith.truncf %224 : vector<64x256xf32> to vector<64x256xbf16>
    %cst_118 = arith.constant 0.000000e+00 : bf16
    %226 = vector.broadcast %cst_118 : bf16 to vector<64x256xbf16>
    %227 = vector.shape_cast %20 : vector<1x256xi1> to vector<1x256xi1>
    %228 = vector.broadcast %227 : vector<1x256xi1> to vector<64x256xi1>
    %229 = arith.select %228, %225, %226 : vector<64x256xi1>, vector<64x256xbf16>
    %230 = vector.shape_cast %18 : vector<1x256xi1> to vector<1x256xi1>
    %231 = vector.broadcast %230 : vector<1x256xi1> to vector<64x256xi1>
    %232 = arith.select %231, %225, %226 : vector<64x256xi1>, vector<64x256xbf16>
    %cst_119 = arith.constant 0.000000e+00 : bf16
    %233 = vector.broadcast %cst_119 : bf16 to vector<64x17xbf16>
    %234 = vector.extract_strided_slice %229 {offsets = [0, 0], sizes = [64, 239], strides = [1, 1]} : vector<64x256xbf16> to vector<64x239xbf16>
    %235 = tpu.concatenate %233, %234 in 1 : vector<64x17xbf16>, vector<64x239xbf16> -> vector<64x256xbf16>
    %cst_120 = arith.constant dense<0.000000e+00> : vector<32x256xf32>
    %236 = tpu.matmul %40, %235, %cst_120 {dimension_numbers = #tpu.dot_dimension_numbers<[1], [0], [0], [1], [0, 0, 1, 1], [], []>} : vector<32x64xbf16>, vector<64x256xbf16>, vector<32x256xf32> -> vector<32x256xf32>
    %cst_121 = arith.constant 0.000000e+00 : bf16
    %237 = vector.broadcast %cst_121 : bf16 to vector<64x16xbf16>
    %238 = vector.extract_strided_slice %225 {offsets = [0, 0], sizes = [64, 240], strides = [1, 1]} : vector<64x256xbf16> to vector<64x240xbf16>
    %239 = tpu.concatenate %237, %238 in 1 : vector<64x16xbf16>, vector<64x240xbf16> -> vector<64x256xbf16>
    %cst_122 = arith.constant dense<0.000000e+00> : vector<32x256xf32>
    %240 = tpu.matmul %42, %239, %cst_122 {dimension_numbers = #tpu.dot_dimension_numbers<[1], [0], [0], [1], [0, 0, 1, 1], [], []>} : vector<32x64xbf16>, vector<64x256xbf16>, vector<32x256xf32> -> vector<32x256xf32>
    %241 = arith.addf %236, %240 : vector<32x256xf32>
    %cst_123 = arith.constant 0.000000e+00 : bf16
    %242 = vector.broadcast %cst_123 : bf16 to vector<64x15xbf16>
    %243 = vector.extract_strided_slice %232 {offsets = [0, 0], sizes = [64, 241], strides = [1, 1]} : vector<64x256xbf16> to vector<64x241xbf16>
    %244 = tpu.concatenate %242, %243 in 1 : vector<64x15xbf16>, vector<64x241xbf16> -> vector<64x256xbf16>
    %cst_124 = arith.constant dense<0.000000e+00> : vector<32x256xf32>
    %245 = tpu.matmul %44, %244, %cst_124 {dimension_numbers = #tpu.dot_dimension_numbers<[1], [0], [0], [1], [0, 0, 1, 1], [], []>} : vector<32x64xbf16>, vector<64x256xbf16>, vector<32x256xf32> -> vector<32x256xf32>
    %246 = arith.addf %241, %245 : vector<32x256xf32>
    %cst_125 = arith.constant 0.000000e+00 : bf16
    %247 = vector.broadcast %cst_125 : bf16 to vector<64x1xbf16>
    %248 = vector.extract_strided_slice %229 {offsets = [0, 0], sizes = [64, 255], strides = [1, 1]} : vector<64x256xbf16> to vector<64x255xbf16>
    %249 = tpu.concatenate %247, %248 in 1 : vector<64x1xbf16>, vector<64x255xbf16> -> vector<64x256xbf16>
    %cst_126 = arith.constant dense<0.000000e+00> : vector<32x256xf32>
    %250 = tpu.matmul %46, %249, %cst_126 {dimension_numbers = #tpu.dot_dimension_numbers<[1], [0], [0], [1], [0, 0, 1, 1], [], []>} : vector<32x64xbf16>, vector<64x256xbf16>, vector<32x256xf32> -> vector<32x256xf32>
    %251 = arith.addf %246, %250 : vector<32x256xf32>
    %cst_127 = arith.constant dense<0.000000e+00> : vector<32x256xf32>
    %252 = tpu.matmul %48, %225, %cst_127 {dimension_numbers = #tpu.dot_dimension_numbers<[1], [0], [0], [1], [0, 0, 1, 1], [], []>} : vector<32x64xbf16>, vector<64x256xbf16>, vector<32x256xf32> -> vector<32x256xf32>
    %253 = arith.addf %251, %252 : vector<32x256xf32>
    %cst_128 = arith.constant 0.000000e+00 : bf16
    %254 = vector.broadcast %cst_128 : bf16 to vector<64x1xbf16>
    %255 = vector.extract_strided_slice %232 {offsets = [0, 1], sizes = [64, 255], strides = [1, 1]} : vector<64x256xbf16> to vector<64x255xbf16>
    %256 = tpu.concatenate %255, %254 in 1 : vector<64x255xbf16>, vector<64x1xbf16> -> vector<64x256xbf16>
    %cst_129 = arith.constant dense<0.000000e+00> : vector<32x256xf32>
    %257 = tpu.matmul %50, %256, %cst_129 {dimension_numbers = #tpu.dot_dimension_numbers<[1], [0], [0], [1], [0, 0, 1, 1], [], []>} : vector<32x64xbf16>, vector<64x256xbf16>, vector<32x256xf32> -> vector<32x256xf32>
    %258 = arith.addf %253, %257 : vector<32x256xf32>
    %cst_130 = arith.constant 0.000000e+00 : bf16
    %259 = vector.broadcast %cst_130 : bf16 to vector<64x15xbf16>
    %260 = vector.extract_strided_slice %229 {offsets = [0, 15], sizes = [64, 241], strides = [1, 1]} : vector<64x256xbf16> to vector<64x241xbf16>
    %261 = tpu.concatenate %260, %259 in 1 : vector<64x241xbf16>, vector<64x15xbf16> -> vector<64x256xbf16>
    %cst_131 = arith.constant dense<0.000000e+00> : vector<32x256xf32>
    %262 = tpu.matmul %52, %261, %cst_131 {dimension_numbers = #tpu.dot_dimension_numbers<[1], [0], [0], [1], [0, 0, 1, 1], [], []>} : vector<32x64xbf16>, vector<64x256xbf16>, vector<32x256xf32> -> vector<32x256xf32>
    %263 = arith.addf %258, %262 : vector<32x256xf32>
    %cst_132 = arith.constant 0.000000e+00 : bf16
    %264 = vector.broadcast %cst_132 : bf16 to vector<64x16xbf16>
    %265 = vector.extract_strided_slice %225 {offsets = [0, 16], sizes = [64, 240], strides = [1, 1]} : vector<64x256xbf16> to vector<64x240xbf16>
    %266 = tpu.concatenate %265, %264 in 1 : vector<64x240xbf16>, vector<64x16xbf16> -> vector<64x256xbf16>
    %cst_133 = arith.constant dense<0.000000e+00> : vector<32x256xf32>
    %267 = tpu.matmul %54, %266, %cst_133 {dimension_numbers = #tpu.dot_dimension_numbers<[1], [0], [0], [1], [0, 0, 1, 1], [], []>} : vector<32x64xbf16>, vector<64x256xbf16>, vector<32x256xf32> -> vector<32x256xf32>
    %268 = arith.addf %263, %267 : vector<32x256xf32>
    %cst_134 = arith.constant 0.000000e+00 : bf16
    %269 = vector.broadcast %cst_134 : bf16 to vector<64x17xbf16>
    %270 = vector.extract_strided_slice %232 {offsets = [0, 17], sizes = [64, 239], strides = [1, 1]} : vector<64x256xbf16> to vector<64x239xbf16>
    %271 = tpu.concatenate %270, %269 in 1 : vector<64x239xbf16>, vector<64x17xbf16> -> vector<64x256xbf16>
    %cst_135 = arith.constant dense<0.000000e+00> : vector<32x256xf32>
    %272 = tpu.matmul %56, %271, %cst_135 {dimension_numbers = #tpu.dot_dimension_numbers<[1], [0], [0], [1], [0, 0, 1, 1], [], []>} : vector<32x64xbf16>, vector<64x256xbf16>, vector<32x256xf32> -> vector<32x256xf32>
    %273 = arith.addf %268, %272 : vector<32x256xf32>
    %274 = vector.broadcast %58 : vector<32x1xf32> to vector<32x256xf32>
    %275 = arith.addf %273, %274 : vector<32x256xf32>
    %cst_136 = arith.constant 0.000000e+00 : f32
    %276 = vector.broadcast %cst_136 : f32 to vector<32x256xf32>
    %277 = arith.maximumf %275, %276 : vector<32x256xf32>
    %c1_137 = arith.constant 1 : index
    %c0_138 = arith.constant 0 : index
    %c0_139 = arith.constant 0 : index
    %278 = vector.load %arg6[%c1_137, %c0_138, %c0_139] : memref<2x32x256xf32, #tpu.memory_space<vmem>>, vector<1x32x256xf32>
    %279 = vector.shape_cast %278 : vector<1x32x256xf32> to vector<32x256xf32>
    %280 = vector.shape_cast %277 : vector<32x256xf32> to vector<1x32x256xf32>
    tpu.vector_store %arg6[%c1_137, %c0_138, %c0_139], %280 {strides = array<i32>} : memref<2x32x256xf32, #tpu.memory_space<vmem>>, vector<1x32x256xf32>,
    return
  }
  func.func @transform_0(%arg0: i32) -> (i32, i32, i32) {
    %c0_i32 = arith.constant 0 : i32
    %c0_i32_0 = arith.constant 0 : i32
    %c0_i32_1 = arith.constant 0 : i32
    return %arg0, %c0_i32, %c0_i32_0 : i32, i32, i32
  }
  func.func @transform_1(%arg0: i32) -> (i32, i32, i32) {
    %c0_i32 = arith.constant 0 : i32
    %c0_i32_0 = arith.constant 0 : i32
    %c0_i32_1 = arith.constant 0 : i32
    %c0_i32_2 = arith.constant 0 : i32
    return %c0_i32, %c0_i32_0, %c0_i32_1 : i32, i32, i32
  }
  func.func @transform_2(%arg0: i32) -> (i32, i32) {
    %c0_i32 = arith.constant 0 : i32
    %c0_i32_0 = arith.constant 0 : i32
    %c0_i32_1 = arith.constant 0 : i32
    return %c0_i32, %c0_i32_0 : i32, i32
  }
  func.func @transform_3(%arg0: i32) -> (i32, i32, i32) {
    %c0_i32 = arith.constant 0 : i32
    %c0_i32_0 = arith.constant 0 : i32
    %c0_i32_1 = arith.constant 0 : i32
    %c0_i32_2 = arith.constant 0 : i32
    return %c0_i32, %c0_i32_0, %c0_i32_1 : i32, i32, i32
  }
  func.func @transform_4(%arg0: i32) -> (i32, i32) {
    %c0_i32 = arith.constant 0 : i32
    %c0_i32_0 = arith.constant 0 : i32
    %c0_i32_1 = arith.constant 0 : i32
    return %c0_i32, %c0_i32_0 : i32, i32
  }
  func.func @transform_5(%arg0: i32) -> (i32, i32, i32) {
    %c0_i32 = arith.constant 0 : i32
    %c0_i32_0 = arith.constant 0 : i32
    %c0_i32_1 = arith.constant 0 : i32
    return %arg0, %c0_i32, %c0_i32_0 : i32, i32, i32
  }
}

</mosaic_0001>

<bundles_post_ra>
// kernel: tpu_custom_call.1
= control target key start
LH: loop header
LB: loop body
LE: loop exit
PB: predicated region body
PF: predicated region fallthrough
CT: control target
= control target key end

     0   :  { %v24_v3 = vlaneseq  ;;  %v6820_v6 = vmov 0   ;;  %s4841_s26 = smov 16   ;;  %s4842_s27 = smov 17   ;;  %s6814_s0 = inlined_call_operand.vmem [shape: f32[2,16,256], index: 0, kind: input, shape index: {}]   ;;  %s6815_s1 = inlined_call_operand.vmem [shape: bf16[9,64,16], index: 1, kind: input, shape index: {}]   ;;  %s6816_s2 = inlined_call_operand.vmem [shape: f32[64,1], index: 2, kind: input, shape index: {}]   ;;  %s6817_s3 = inlined_call_operand.vmem [shape: bf16[9,32,64], index: 3, kind: input, shape index: {}]   ;;  %s6818_s4 = inlined_call_operand.vmem [shape: f32[32,1], index: 4, kind: input, shape index: {}]   ;;  %s6819_s5 = inlined_call_operand.hbm [shape: f32[2,32,256], index: 5, kind: output, shape index: {}]  }
   0x1   :  { %v191_v0 = vld [vmem:[%s6814_s0] sm:$0xff]  ;;  %v193_v1 = vld [vmem:[%s6814_s0 + $0x10] sm:$0xff]  ;;  %v192_v2 = vld [vmem:[%s6814_s0 + $0x8] sm:$0xff]  ;;  %324 = vmatprep.mubr.bf16.mxu0 %v6820_v6  ;;  %429 = vmatprep.mubr.bf16.mxu1 %v6820_v6  ;;  %s4843_s28 = smov 15   ;;  %s4844_s29 = smov 1  }
   0x2   :  { %v4890_v4 = vpack.c.bf16 %v193_v1, %v191_v0  ;;  %v194_v5 = vld [vmem:[%s6814_s0 + $0x18] sm:$0xff]  ;;  %v25_v7 = vand.u32 127, %v24_v3  ;;  %v204_v8 = vshrl.u32 %v24_v3, 7  ;;  %4709 = vset.pattern.permute.xlu1 %v6820_v6  ;;  %4708 = vset.pattern.permute.xlu0 %v6820_v6  ;;  %s4845_s30 = smov 127   ;;  %s4846_s6 = smov 113  }
   0x3   :  { %v4901_v9 = vpack.c.bf16 %v194_v5, %v192_v2  ;;  %s4847_s7 = smov 112   ;;  %s4848_s8 = smov 111  }
   0x4   :  { %249 = vrot.lane.b32.xlu0 %v4890_v4, %s4841_s26  ;;  %v26_v10 = vadd.s32 128, %v25_v7  ;;  %v31_v11 = vand.u32 15, %v25_v7  ;;  %v205_v13 = vsub.s32 0, %v204_v8  ;;  %v209_v14 = vsub.s32 4, %v204_v8 }
   0x6   :  { %v38_v12 = vand.u32 15, %v26_v10  ;;  %vm53_vm0 = vcmp.ne.s32.totalorder %v31_v11, 15  ;;  %vm51_vm1 = vcmp.ne.s32.totalorder %v31_v11, 0 }
   0x8   :  { %251 = vrot.lane.b32.xlu0 %v4901_v9, %s4841_s26  ;;  %vm54_vm2 = vcmp.ne.s32.totalorder %v38_v12, 15  ;;  %vm52_vm3 = vcmp.ne.s32.totalorder %v38_v12, 0 }
   0x9   :  { %vm201_vm4 = vmpackc.low %vm54_vm2, %vm53_vm0 }
   0xa   :  { %v202_v15 = vsel %vm201_vm4, 65537, %v6820_v6  ;;  %vm219_vm5 = vmpackc.low %vm52_vm3, %vm51_vm1 }
   0xb   :  { %v4906_v16 = vrot.slane %v202_v15, %v205_v13  ;;  %v4908_v17 = vrot.slane %v202_v15, %v209_v14  ;;  %v220_v18 = vsel %vm219_vm5, 65537, %v6820_v6 }
   0xc   :  { %v4911_v19 = vrot.slane %v220_v18, %v209_v14  ;;  %v4913_v20 = vrot.slane %v220_v18, %v205_v13 }
   0xd   :  { %6856 = vst [vmem:[#allocation5_spill] sm:$0xff] %v4906_v16  ;;  %6857 = vst [vmem:[#allocation6_spill] sm:$0xff] %v4908_v17  ;;  %vm211_vm6 = vcmp.ne.s16.totalorder %v4906_v16, 0  ;;  %vm212_vm7 = vcmp.ne.s16.totalorder %v4908_v17, 0 }
   0xe   :  { %6858 = vst [vmem:[#allocation7_spill] sm:$0xff] %v4911_v19  ;;  %6859 = vst [vmem:[#allocation8_spill] sm:$0xff] %v4913_v20  ;;  %v213_v21 = vsel %vm211_vm6, %v4890_v4, 0  ;;  %vm229_vm8 = vcmp.ne.s16.totalorder %v4913_v20, 0  ;;  %v214_v23 = vsel %vm212_vm7, %v4901_v9, 0  ;;  %vm6841_vm9 = vcmp.ne.s16.totalorder %v4911_v19, 0 }
   0xf   :  { %235 = vrot.lane.b32.xlu1 %v213_v21, %s4842_s27  ;;  %v231_v22 = vsel %vm229_vm8, %v4890_v4, 0  ;;  %v232_v24 = vsel %vm6841_vm9, %v4901_v9, 0 }
  0x10   :  { %472 = vrot.lane.b32.xlu0 %v231_v22, %s4843_s28 }
  0x13   :  { %237 = vrot.lane.b32.xlu1 %v214_v23, %s4842_s27 }
  0x14   :  { %604 = vrot.lane.b32.xlu0 %v213_v21, %s4844_s29 }
  0x17   :  { %474 = vrot.lane.b32.xlu1 %v232_v24, %s4843_s28 }
  0x18   :  { %857 = vrot.lane.b32.xlu0 %v231_v22, %s4845_s30 }
  0x1b   :  { %606 = vrot.lane.b32.xlu1 %v214_v23, %s4844_s29 }
  0x1c   :  { %989 = vrot.lane.b32.xlu0 %v213_v21, %s4846_s6 }
  0x1f   :  { %859 = vrot.lane.b32.xlu1 %v232_v24, %s4845_s30 }
  0x20   :  { %1121 = vrot.lane.b32.xlu0 %v4890_v4, %s4847_s7 }
  0x23   :  { %991 = vrot.lane.b32.xlu1 %v214_v23, %s4846_s6 }
  0x24   :  { %1253 = vrot.lane.b32.xlu0 %v231_v22, %s4848_s8 }
  0x27   :  { %1123 = vrot.lane.b32.xlu1 %v4901_v9, %s4847_s7 }
  0x2b   :  { %1255 = vrot.lane.b32.xlu1 %v232_v24, %s4848_s8 }
  0x2c   :  { %10 = vsyncpa [#allocation3], 0  ;;  %vm253_vm10 = vcmask 130048   ;;  %v6860_v27 = vmov 0  ;;  %v4710_v29 = vld [vmem:[%s6815_s1 + $0x20] sm:$0xff]   ;;  %vm239_vm12 = vcmask 138240  }
  0x2d   :  { %vm4948_vm11 = vmneg %vm253_vm10  ;;  %v4711_v31 = vld [vmem:[%s6815_s1 + $0x28] sm:$0xff]   ;;  %v6863_v33 = vmov 0  ;;  %vm476_vm14 = vcmask 121856   ;;  %v4712_v35 = vld [vmem:[%s6815_s1] sm:$0xff]   ;;  %v6866_v38 = vmov 0  ;;  %vm608_vm0 = vcmask 7168  }
  0x2e   :  { %v6861_v27 = vsel %vm4948_vm11, 4294967295, %v6860_v27  ;;  %vm4964_vm13 = vmneg %vm239_vm12  ;;  %v4713_v40 = vld [vmem:[%s6815_s1 + $0x30] sm:$0xff]   ;;  %v6869_v43 = vmov 0  ;;  %v4714_v45 = vld [vmem:[%s6815_s1 + $0x8] sm:$0xff]   ;;  %vm861_vm2 = vcmask 1039360   ;;  %vm993_vm3 = vcmask 924672  }
  0x2f   :  { %6862 = vst [vmem:[#allocation9_spill] sm:$0xff] %v6861_v27  ;;  %v6864_v33 = vsel %vm4964_vm13, 4294967295, %v6863_v33  ;;  %vm4977_vm15 = vmneg %vm476_vm14  ;;  %v4715_v47 = vld [vmem:[%s6815_s1 + $0x38] sm:$0xff]   ;;  %v4716_v48 = vld [vmem:[%s6815_s1 + $0x10] sm:$0xff]   ;;  %vm1125_vm4 = vcmask 916480   ;;  %vm6855_vm5 = vcmask 908288  }
  0x30   :  { %6865 = vst [vmem:[#allocation10_spill] sm:$0xff] %v6864_v33  ;;  %v6867_v38 = vsel %vm4977_vm15, 4294967295, %v6866_v38  ;;  %vm4990_vm1 = vmneg %vm608_vm0  ;;  %v186_v49 = vld [vmem:[%s6816_s2 + $0x38] sm:$0xff]  ;;  %v185_v50 = vld [vmem:[%s6816_s2 + $0x30] sm:$0xff] }
  0x31   :  { %6868 = vst [vmem:[#allocation11_spill] sm:$0xff] %v6867_v38  ;;  %v6870_v43 = vsel %vm4990_vm1, 4294967295, %v6869_v43  ;;  %1422 = vperm.xlu1 %4709, %v186_v49   ;;  %1417 = vperm.xlu0 %4708, %v185_v50   ;;  %v183_v51 = vld [vmem:[%s6816_s2 + $0x20] sm:$0xff]  ;;  %v184_v52 = vld [vmem:[%s6816_s2 + $0x28] sm:$0xff]  ;;  %v4718_v55 = vld [vmem:[%s6815_s1 + $0x18] sm:$0xff]  }
  0x32   :  { %6871 = vst [vmem:[#allocation12_spill] sm:$0xff] %v6870_v43  ;;  %v4717_v53 = vld [vmem:[%s6815_s1 + $0x40] sm:$0xff]   ;;  %v4719_v56 = vld [vmem:[%s6815_s1 + $0x48] sm:$0xff]   ;;  %v4721_v61 = vld [vmem:[%s6815_s1 + $0x50] sm:$0xff]  }
  0x33   :  { %v4720_v58 = vld [vmem:[%s6815_s1 + $0x60] sm:$0xff]   ;;  %v4722_v62 = vld [vmem:[%s6815_s1 + $0x68] sm:$0xff]   ;;  %v4723_v63 = vld [vmem:[%s6815_s1 + $0x58] sm:$0xff]  }
  0x34   :  { %v4724_v0 = vld [vmem:[%s6815_s1 + $0x70] sm:$0xff]   ;;  %v4725_v2 = vld [vmem:[%s6815_s1 + $0x80] sm:$0xff]   ;;  %v4726_v5 = vld [vmem:[%s6815_s1 + $0x78] sm:$0xff]  }
  0x35   :  { %1407 = vperm.xlu1 %4709, %v183_v51   ;;  %1412 = vperm.xlu0 %4708, %v184_v52   ;;  %v181_v7 = vld [vmem:[%s6816_s2 + $0x10] sm:$0xff]  ;;  %v182_v8 = vld [vmem:[%s6816_s2 + $0x18] sm:$0xff]  ;;  %v179_v10 = vld [vmem:[%s6816_s2] sm:$0xff] }
  0x36   :  { %v180_v11 = vld [vmem:[%s6816_s2 + $0x8] sm:$0xff]  ;;  %v4728_v13 = vld [vmem:[%s6815_s1 + $0xa0] sm:$0xff]   ;;  %v4729_v15 = vld [vmem:[%s6815_s1 + $0x90] sm:$0xff]  }
  0x37   :  { %v4730_v18 = vld [vmem:[%s6815_s1 + $0xa8] sm:$0xff]   ;;  %v4731_v21 = vld [vmem:[%s6815_s1 + $0x98] sm:$0xff]   ;;  %v4732_v22 = vld [vmem:[%s6815_s1 + $0xb0] sm:$0xff]  }
  0x38   :  { %v4733_v24 = vld [vmem:[%s6815_s1 + $0xc0] sm:$0xff]  }
  0x39   :  { %1397 = vperm.xlu1 %4709, %v181_v7   ;;  %1402 = vperm.xlu0 %4708, %v182_v8  }
  0x3d   :  { %1387 = vperm.xlu1 %4709, %v179_v10   ;;  %1392 = vperm.xlu0 %4708, %v180_v11  }
  0x76   :  { %v250_v25 = vpop.permute.xlu0 %249 }
  0x7a   :  { %v252_v26 = vpop.permute.xlu0 %251 }
  0x7b   :  { %v254_v28 = vsel %vm253_vm10, %v250_v25, %v252_v26  ;;  %v4734_v26 = vld [vmem:[%s6815_s1 + $0xb8] sm:$0xff]  }
  0x7c   :  { %306 = vmatprep.subr.bf16.mxu0 %v254_v28  ;;  %v4735_v28 = vld [vmem:[%s6815_s1 + $0xc8] sm:$0xff]  }
  0x7d   :  { %4416 = vmatpush1.bf16.msk.msra.mxu0 %vm4948_vm11, %v250_v25 }
  0x80   :  { %4417 = vmatmul.mubr.msk.bf16.vlgmr.msra.gmra.mxu0 %vm253_vm10, %v4710_v29  ;;  %v4736_v29 = vld [vmem:[%s6815_s1 + $0xe0] sm:$0xff]  }
  0x81   :  { %334 = vmatprep.mubr.bf16.mxu0 %v6820_v6  ;;  %v236_v30 = vpop.permute.xlu1 %235 }
  0x82   :  { %v473_v36 = vpop.permute.xlu0 %472 }
  0x85   :  { %v238_v32 = vpop.permute.xlu1 %237 }
  0x86   :  { %v240_v34 = vsel %vm239_vm12, %v236_v30, %v238_v32  ;;  %v605_v41 = vpop.permute.xlu0 %604  ;;  %v4739_v32 = vld [vmem:[%s6815_s1 + $0xd8] sm:$0xff]  }
  0x87   :  { %411 = vmatprep.subr.bf16.mxu1 %v240_v34  ;;  %v4740_v34 = vld [vmem:[%s6815_s1 + $0xf0] sm:$0xff]  }
  0x88   :  { %4418 = vmatmul.mubr.msk.bf16.gmra.mxu0 %vm253_vm10, %v4711_v31  ;;  %4426 = vmatpush1.bf16.msk.msra.mxu1 %vm4964_vm13, %v236_v30  ;;  %v4737_v30 = vld [vmem:[%s6815_s1 + $0xd0] sm:$0xff]   ;;  %v4738_v31 = vld [vmem:[%s6815_s1 + $0xe8] sm:$0xff]  }
  0x89   :  { %344 = vmatprep.mubr.bf16.mxu0 %v6820_v6  ;;  %v475_v37 = vpop.permute.xlu1 %474 }
  0x8a   :  { %v477_v39 = vsel %vm476_vm14, %v473_v36, %v475_v37  ;;  %v858_v57 = vpop.permute.xlu0 %857  ;;  %v4743_v37 = vld [vmem:[%s6815_s1 + $0x108] sm:$0xff]  }
  0x8b   :  { %4427 = vmatmul.mubr.msk.bf16.vlgmr.msra.gmra.mxu1 %vm253_vm10, %v4712_v35  ;;  %529 = vmatprep.subr.bf16.mxu0 %v477_v39  ;;  %v4741_v35 = vld [vmem:[%s6815_s1 + $0x100] sm:$0xff]   ;;  %v4744_v39 = vld [vmem:[%s6815_s1 + $0x110] sm:$0xff]  }
  0x8c   :  { %4436 = vmatpush1.bf16.msk.msra.mxu0 %vm4977_vm15, %v473_v36  ;;  %439 = vmatprep.mubr.bf16.mxu1 %v6820_v6  ;;  %v4742_v36 = vld [vmem:[%s6815_s1 + $0xf8] sm:$0xff]  }
  0x8d   :  { %v607_v42 = vpop.permute.xlu1 %606  ;;  %782 = vmatprep.subr.bf16.mxu0 %v4901_v9  ;;  %v4727_v9 = vld [vmem:[%s6815_s1 + $0x88] sm:$0xff]  }
  0x8e   :  { %v609_v44 = vsel %vm608_vm0, %v605_v41, %v607_v42  ;;  %v990_v1 = vpop.permute.xlu0 %989 }
  0x8f   :  { %661 = vmatprep.subr.bf16.mxu1 %v609_v44 }
  0x90   :  { %4419 = vmatmul.mubr.msk.bf16.gmra.mxu0 %vm253_vm10, %v4713_v40  ;;  %4446 = vmatpush1.bf16.msk.msra.mxu1 %vm4990_vm1, %v605_v41  ;;  %v4745_v40 = vld [vmem:[%s6815_s1 + $0x118] sm:$0xff]  }
  0x91   :  { %354 = vmatprep.mubr.bf16.mxu0 %v6820_v6  ;;  %v860_v46 = vpop.permute.xlu1 %859 }
  0x92   :  { %4463 = vmatprep.subr.msk.bf16.mxu1 %vm861_vm2, %v860_v46  ;;  %v862_v59 = vsel %vm861_vm2, %v858_v57, %v860_v46  ;;  %v1122_v12 = vpop.permute.xlu0 %1121 }
  0x93   :  { %4428 = vmatmul.mubr.msk.bf16.gmra.mxu1 %vm253_vm10, %v4714_v45 }
  0x94   :  { %449 = vmatprep.mubr.bf16.mxu1 %v6820_v6 }
  0x95   :  { %v992_v54 = vpop.permute.xlu1 %991 }
  0x96   :  { %v994_v3 = vsel %vm993_vm3, %v990_v1, %v992_v54  ;;  %v1254_v23 = vpop.permute.xlu0 %1253 }
  0x98   :  { %4420 = vmatmul.mubr.msk.bf16.gmra.mxu0 %vm253_vm10, %v4715_v47 }
  0x99   :  { %547 = vmatprep.mubr.bf16.mxu0 %v6820_v6  ;;  %v1124_v60 = vpop.permute.xlu1 %1123 }
  0x9a   :  { %v1126_v14 = vsel %vm1125_vm4, %v1122_v12, %v1124_v60 }
  0x9b   :  { %4429 = vmatmul.mubr.msk.bf16.gmra.mxu1 %vm253_vm10, %v4716_v48 }
  0x9c   :  { %459 = vmatprep.mubr.bf16.mxu1 %v6820_v6 }
  0xa0   :  { %4437 = vmatmul.mubr.msk.bf16.vlgmr.msra.gmra.mxu0 %vm253_vm10, %v4717_v53 }
  0xa1   :  { %557 = vmatprep.mubr.bf16.mxu0 %v6820_v6  ;;  %783 = vmatpush1.bf16.msra.mxu0 %v4890_v4  ;;  %v1256_v4 = vpop.permute.xlu1 %1255 }
  0xa2   :  { %4472 = vmatprep.subr.msk.bf16.mxu0 %vm993_vm3, %v992_v54  ;;  %v1258_v25 = vsel %vm6855_vm5, %v1254_v23, %v1256_v4 }
  0xa3   :  { %4430 = vmatmul.mubr.msk.bf16.gmra.mxu1 %vm253_vm10, %v4718_v55 }
  0xa4   :  { %679 = vmatprep.mubr.bf16.mxu1 %v6820_v6 }
  0xa8   :  { %4438 = vmatmul.mubr.msk.bf16.gmra.mxu0 %vm253_vm10, %v4719_v56 }
  0xa9   :  { %567 = vmatprep.mubr.bf16.mxu0 %v6820_v6 }
  0xab   :  { %4447 = vmatmul.mubr.msk.bf16.vlgmr.msra.gmra.mxu1 %vm253_vm10, %v4720_v58 }
  0xac   :  { %689 = vmatprep.mubr.bf16.mxu1 %v6820_v6  ;;  %915 = vmatpush1.bf16.msra.mxu1 %v862_v59 }
  0xad   :  { %4481 = vmatprep.subr.msk.bf16.mxu1 %vm1125_vm4, %v1124_v60 }
  0xb0   :  { %4439 = vmatmul.mubr.msk.bf16.gmra.mxu0 %vm253_vm10, %v4721_v61 }
  0xb1   :  { %577 = vmatprep.mubr.bf16.mxu0 %v6820_v6 }
  0xb3   :  { %4448 = vmatmul.mubr.msk.bf16.gmra.mxu1 %vm253_vm10, %v4722_v62 }
  0xb4   :  { %699 = vmatprep.mubr.bf16.mxu1 %v6820_v6 }
  0xb8   :  { %4440 = vmatmul.mubr.msk.bf16.gmra.mxu0 %vm253_vm10, %v4723_v63 }
  0xb9   :  { %800 = vmatprep.mubr.bf16.mxu0 %v6820_v6 }
  0xbb   :  { %4449 = vmatmul.mubr.msk.bf16.gmra.mxu1 %vm253_vm10, %v4724_v0 }
  0xbc   :  { %709 = vmatprep.mubr.bf16.mxu1 %v6820_v6 }
  0xc0   :  { %4455 = vmatmul.mubr.msk.bf16.vlgmr.msra.gmra.mxu0 %vm253_vm10, %v4725_v2 }
  0xc1   :  { %810 = vmatprep.mubr.bf16.mxu0 %v6820_v6  ;;  %1047 = vmatpush1.bf16.msra.mxu0 %v994_v3 }
  0xc2   :  { %4490 = vmatprep.subr.msk.bf16.mxu0 %vm6855_vm5, %v1256_v4 }
  0xc3   :  { %4450 = vmatmul.mubr.msk.bf16.gmra.mxu1 %vm253_vm10, %v4726_v5 }
  0xc4   :  { %932 = vmatprep.mubr.bf16.mxu1 %v6820_v6 }
  0xc8   :  { %4456 = vmatmul.mubr.msk.bf16.gmra.mxu0 %vm253_vm10, %v4727_v9 }
  0xc9   :  { %820 = vmatprep.mubr.bf16.mxu0 %v6820_v6 }
  0xcb   :  { %4464 = vmatmul.mubr.msk.bf16.vlgmr.msra.gmra.mxu1 %vm253_vm10, %v4728_v13 }
  0xcc   :  { %942 = vmatprep.mubr.bf16.mxu1 %v6820_v6  ;;  %1179 = vmatpush1.bf16.msra.mxu1 %v1126_v14 }
  0xd0   :  { %4457 = vmatmul.mubr.msk.bf16.gmra.mxu0 %vm253_vm10, %v4729_v15 }
  0xd1   :  { %830 = vmatprep.mubr.bf16.mxu0 %v6820_v6 }
  0xd3   :  { %4465 = vmatmul.mubr.msk.bf16.gmra.mxu1 %vm253_vm10, %v4730_v18 }
  0xd4   :  { %952 = vmatprep.mubr.bf16.mxu1 %v6820_v6 }
  0xd8   :  { %4458 = vmatmul.mubr.msk.bf16.gmra.mxu0 %vm253_vm10, %v4731_v21 }
  0xd9   :  { %1064 = vmatprep.mubr.bf16.mxu0 %v6820_v6 }
  0xdb   :  { %4466 = vmatmul.mubr.msk.bf16.gmra.mxu1 %vm253_vm10, %v4732_v22 }
  0xdc   :  { %962 = vmatprep.mubr.bf16.mxu1 %v6820_v6 }
  0xe0   :  { %4473 = vmatmul.mubr.msk.bf16.vlgmr.msra.gmra.mxu0 %vm253_vm10, %v4733_v24 }
  0xe1   :  { %1074 = vmatprep.mubr.bf16.mxu0 %v6820_v6  ;;  %1311 = vmatpush1.bf16.msra.mxu0 %v1258_v25 }
  0xe3   :  { %4467 = vmatmul.mubr.msk.bf16.gmra.mxu1 %vm253_vm10, %v4734_v26 }
  0xe4   :  { %1196 = vmatprep.mubr.bf16.mxu1 %v6820_v6 }
  0xe8   :  { %4474 = vmatmul.mubr.msk.bf16.gmra.mxu0 %vm253_vm10, %v4735_v28 }
  0xe9   :  { %1084 = vmatprep.mubr.bf16.mxu0 %v6820_v6 }
  0xeb   :  { %4482 = vmatmul.mubr.msk.bf16.vlgmr.msra.gmra.mxu1 %vm253_vm10, %v4736_v29 }
  0xec   :  { %1206 = vmatprep.mubr.bf16.mxu1 %v6820_v6 }
  0xf0   :  { %4475 = vmatmul.mubr.msk.bf16.gmra.mxu0 %vm253_vm10, %v4737_v30 }
  0xf1   :  { %1094 = vmatprep.mubr.bf16.mxu0 %v6820_v6 }
  0xf3   :  { %4483 = vmatmul.mubr.msk.bf16.gmra.mxu1 %vm253_vm10, %v4738_v31 }
  0xf4   :  { %1216 = vmatprep.mubr.bf16.mxu1 %v6820_v6 }
  0xf8   :  { %4476 = vmatmul.mubr.msk.bf16.gmra.mxu0 %vm253_vm10, %v4739_v32 }
  0xf9   :  { %1328 = vmatprep.mubr.bf16.mxu0 %v6820_v6 }
  0xfb   :  { %4484 = vmatmul.mubr.msk.bf16.gmra.mxu1 %vm253_vm10, %v4740_v34 }
  0xfc   :  { %1226 = vmatprep.mubr.bf16.mxu1 %v6820_v6 }
 0x100   :  { %4491 = vmatmul.mubr.msk.bf16.vlgmr.msra.gmra.mxu0 %vm253_vm10, %v4741_v35 }
 0x101   :  { %1338 = vmatprep.mubr.bf16.mxu0 %v6820_v6 }
 0x103   :  { %4485 = vmatmul.mubr.msk.bf16.gmra.mxu1 %vm253_vm10, %v4742_v36 }
 0x104   :  { %1618 = vmatprep.mubr.bf16.mxu1 %v6820_v6 }
 0x108   :  { %4492 = vmatmul.mubr.msk.bf16.gmra.mxu0 %vm253_vm10, %v4743_v37 }
 0x109   :  { %1348 = vmatprep.mubr.bf16.mxu0 %v6820_v6 }
 0x110   :  { %4493 = vmatmul.mubr.msk.bf16.gmra.mxu0 %vm253_vm10, %v4744_v39 }
 0x111   :  { %1358 = vmatprep.mubr.bf16.mxu0 %v6820_v6 }
 0x118   :  { %4494 = vmatmul.mubr.msk.bf16.gmra.mxu0 %vm253_vm10, %v4745_v40 }
 0x119   :  { %1800 = vmatprep.mubr.bf16.mxu0 %v6820_v6 }
 0x140   :  { %v326_v41 = vpop.f32.mrf.mxu0 }
 0x142   :  { %v328_v42 = vpop.f32.mrf.mxu0 }
 0x144   :  { %v330_v44 = vpop.f32.mrf.mxu0 }
 0x146   :  { %v5193_v45 = vpop.f32.mrf.mxu0 }
 0x148   :  { %v336_v46 = vpop.f32.mrf.mxu0 }
 0x14a   :  { %v338_v47 = vpop.f32.mrf.mxu0 }
 0x14b   :  { %v431_v49 = vpop.f32.mrf.mxu1 }
 0x14c   :  { %v340_v48 = vpop.f32.mrf.mxu0  ;;  %v432_v50 = vadd.f32 %v431_v49, %v326_v41 }
 0x14d   :  { %v433_v52 = vpop.f32.mrf.mxu1 }
 0x14e   :  { %v5195_v51 = vpop.f32.mrf.mxu0  ;;  %v434_v53 = vadd.f32 %v433_v52, %v328_v42 }
 0x14f   :  { %v435_v55 = vpop.f32.mrf.mxu1 }
 0x150   :  { %v346_v54 = vpop.f32.mrf.mxu0  ;;  %v436_v56 = vadd.f32 %v435_v55, %v330_v44 }
 0x151   :  { %v5197_v58 = vpop.f32.mrf.mxu1 }
 0x152   :  { %v348_v57 = vpop.f32.mrf.mxu0 }
 0x153   :  { %v441_v60 = vpop.f32.mrf.mxu1 }
 0x154   :  { %v350_v59 = vpop.f32.mrf.mxu0  ;;  %v442_v61 = vadd.f32 %v441_v60, %v336_v46 }
 0x155   :  { %v443_v63 = vpop.f32.mrf.mxu1 }
 0x156   :  { %v5199_v62 = vpop.f32.mrf.mxu0  ;;  %v444_v0 = vadd.f32 %v443_v63, %v338_v47 }
 0x157   :  { %v445_v2 = vpop.f32.mrf.mxu1 }
 0x158   :  { %v356_v1 = vpop.f32.mrf.mxu0  ;;  %v446_v3 = vadd.f32 %v445_v2, %v340_v48 }
 0x159   :  { %v5201_v5 = vpop.f32.mrf.mxu1 }
 0x15a   :  { %v358_v4 = vpop.f32.mrf.mxu0 }
 0x15b   :  { %v451_v8 = vpop.f32.mrf.mxu1 }
 0x15c   :  { %v360_v7 = vpop.f32.mrf.mxu0  ;;  %v452_v9 = vadd.f32 %v451_v8, %v346_v54 }
 0x15d   :  { %v453_v11 = vpop.f32.mrf.mxu1 }
 0x15e   :  { %v5203_v10 = vpop.f32.mrf.mxu0  ;;  %v454_v12 = vadd.f32 %v453_v11, %v348_v57 }
 0x15f   :  { %v455_v13 = vpop.f32.mrf.mxu1 }
 0x160   :  { %v549_v14 = vpop.f32.mrf.mxu0  ;;  %v456_v15 = vadd.f32 %v455_v13, %v350_v59 }
 0x161   :  { %v5205_v18 = vadd.f32 %v549_v14, %v432_v50  ;;  %v5207_v21 = vpop.f32.mrf.mxu1 }
 0x162   :  { %v551_v22 = vpop.f32.mrf.mxu0 }
 0x163   :  { %v5209_v23 = vadd.f32 %v551_v22, %v434_v53  ;;  %v461_v24 = vpop.f32.mrf.mxu1 }
 0x164   :  { %v553_v25 = vpop.f32.mrf.mxu0  ;;  %v462_v26 = vadd.f32 %v461_v24, %v356_v1 }
 0x165   :  { %v5211_v28 = vadd.f32 %v553_v25, %v436_v56  ;;  %v463_v29 = vpop.f32.mrf.mxu1 }
 0x166   :  { %v5213_v30 = vpop.f32.mrf.mxu0  ;;  %v464_v31 = vadd.f32 %v463_v29, %v358_v4 }
 0x167   :  { %v465_v32 = vpop.f32.mrf.mxu1 }
 0x168   :  { %v559_v34 = vpop.f32.mrf.mxu0  ;;  %v466_v35 = vadd.f32 %v465_v32, %v360_v7 }
 0x169   :  { %v5215_v36 = vadd.f32 %v559_v34, %v442_v61  ;;  %v5217_v37 = vpop.f32.mrf.mxu1 }
 0x16a   :  { %v561_v39 = vpop.f32.mrf.mxu0 }
 0x16b   :  { %v5219_v40 = vadd.f32 %v561_v39, %v444_v0  ;;  %v5221_v42 = vpop.f32.mrf.mxu1 }
 0x16c   :  { %v563_v41 = vpop.f32.mrf.mxu0 }
 0x16d   :  { %v5223_v44 = vadd.f32 %v563_v41, %v446_v3  ;;  %v5227_v47 = vpop.f32.mrf.mxu1 }
 0x16e   :  { %v5225_v46 = vpop.f32.mrf.mxu0 }
 0x16f   :  { %v5229_v49 = vpop.f32.mrf.mxu1 }
 0x170   :  { %v569_v48 = vpop.f32.mrf.mxu0 }
 0x171   :  { %v5231_v50 = vadd.f32 %v569_v48, %v452_v9  ;;  %v5233_v53 = vpop.f32.mrf.mxu1 }
 0x172   :  { %v571_v52 = vpop.f32.mrf.mxu0 }
 0x173   :  { %v5235_v54 = vadd.f32 %v571_v52, %v454_v12  ;;  %v5237_v56 = vpop.f32.mrf.mxu1 }
 0x174   :  { %v573_v55 = vpop.f32.mrf.mxu0 }
 0x175   :  { %v5239_v57 = vadd.f32 %v573_v55, %v456_v15  ;;  %v5243_v60 = vpop.f32.mrf.mxu1 }
 0x176   :  { %v5241_v59 = vpop.f32.mrf.mxu0 }
 0x177   :  { %v5245_v63 = vpop.f32.mrf.mxu1 }
 0x178   :  { %v579_v61 = vpop.f32.mrf.mxu0 }
 0x179   :  { %v5247_v0 = vadd.f32 %v579_v61, %v462_v26  ;;  %v5249_v2 = vpop.f32.mrf.mxu1 }
 0x17a   :  { %v581_v1 = vpop.f32.mrf.mxu0 }
 0x17b   :  { %v5251_v3 = vadd.f32 %v581_v1, %v464_v31  ;;  %v5253_v7 = vpop.f32.mrf.mxu1 }
 0x17c   :  { %v583_v4 = vpop.f32.mrf.mxu0 }
 0x17d   :  { %6872 = vst [vmem:[#allocation13_spill] sm:$0xff] %v5251_v3  ;;  %v5255_v8 = vadd.f32 %v583_v4, %v466_v35  ;;  %v5259_v11 = vpop.f32.mrf.mxu1  ;;  %v5351_v3 = vpop.permute.xlu0 %1417 }
 0x17e   :  { %v5257_v9 = vpop.f32.mrf.mxu0  ;;  %6905 = vst [vmem:[#allocation46_spill] sm:$0xff] %v5351_v3  ;;  %v438_v3 = vadd.f32 %v5197_v58, %v5193_v45  ;;  %v448_v45 = vadd.f32 %v5201_v5, %v5195_v51  ;;  %v458_v58 = vadd.f32 %v5207_v21, %v5199_v62  ;;  %v724_v51 = vadd.f32 %v5237_v56, %v5215_v36 }
 0x17f   :  { %6873 = vst [vmem:[#allocation14_spill] sm:$0xff] %v5255_v8  ;;  %v5261_v12 = vpop.f32.mrf.mxu1  ;;  %v726_v36 = vadd.f32 %v5245_v63, %v5223_v44 }
 0x180   :  { %v5263_v13 = vpop.f32.mrf.mxu0  ;;  %v599_v62 = vadd.f32 %v5241_v59, %v458_v58  ;;  %v730_v44 = vadd.f32 %v5261_v12, %v5239_v57 }
 0x181   :  { %v5265_v14 = vpop.f32.mrf.mxu1 }
 0x182   :  { %v5267_v15 = vpop.f32.mrf.mxu0 }
 0x183   :  { %v5269_v22 = vpop.f32.mrf.mxu1 }
 0x184   :  { %v5271_v24 = vpop.f32.mrf.mxu0 }
 0x185   :  { %v5273_v25 = vpop.f32.mrf.mxu1 }
 0x186   :  { %6874 = vst [vmem:[#allocation15_spill] sm:$0xff] %v5273_v25  ;;  %v5275_v26 = vpop.f32.mrf.mxu0 }
 0x187   :  { %v5277_v29 = vpop.f32.mrf.mxu1 }
 0x188   :  { %6875 = vst [vmem:[#allocation16_spill] sm:$0xff] %v5277_v29  ;;  %v5279_v31 = vpop.f32.mrf.mxu0 }
 0x189   :  { %v5281_v32 = vpop.f32.mrf.mxu1 }
 0x18a   :  { %6876 = vst [vmem:[#allocation17_spill] sm:$0xff] %v5281_v32  ;;  %v5283_v34 = vpop.f32.mrf.mxu0 }
 0x18b   :  { %v934_v39 = vpop.f32.mrf.mxu1 }
 0x18c   :  { %v5285_v35 = vpop.f32.mrf.mxu0 }
 0x18d   :  { %v936_v48 = vpop.f32.mrf.mxu1 }
 0x18e   :  { %v5287_v41 = vpop.f32.mrf.mxu0 }
 0x18f   :  { %6877 = vst [vmem:[#allocation18_spill] sm:$0xff] %v5287_v41  ;;  %v5291_v55 = vpop.f32.mrf.mxu1 }
 0x190   :  { %v5289_v52 = vpop.f32.mrf.mxu0 }
 0x191   :  { %6878 = vst [vmem:[#allocation19_spill] sm:$0xff] %v5289_v52  ;;  %v5295_v1 = vpop.f32.mrf.mxu1 }
 0x192   :  { %v5293_v61 = vpop.f32.mrf.mxu0 }
 0x193   :  { %6879 = vst [vmem:[#allocation20_spill] sm:$0xff] %v5293_v61  ;;  %v5299_v6 = vpop.f32.mrf.mxu1 }
 0x194   :  { %v5297_v4 = vpop.f32.mrf.mxu0 }
 0x195   :  { %6880 = vst [vmem:[#allocation21_spill] sm:$0xff] %v5297_v4  ;;  %v5303_v43 = vpop.f32.mrf.mxu1 }
 0x196   :  { %v5301_v38 = vpop.f32.mrf.mxu0  ;;  %6882 = vst [vmem:[#allocation23_spill] sm:$0xff] %v5303_v43 }
 0x197   :  { %6881 = vst [vmem:[#allocation22_spill] sm:$0xff] %v5301_v38  ;;  %v5307_v27 = vpop.f32.mrf.mxu1 }
 0x198   :  { %v5305_v33 = vpop.f32.mrf.mxu0  ;;  %6884 = vst [vmem:[#allocation25_spill] sm:$0xff] %v5307_v27 }
 0x199   :  { %6883 = vst [vmem:[#allocation24_spill] sm:$0xff] %v5305_v33  ;;  %v5311_v19 = vpop.f32.mrf.mxu1 }
 0x19a   :  { %v5309_v20 = vpop.f32.mrf.mxu0  ;;  %6886 = vst [vmem:[#allocation27_spill] sm:$0xff] %v5311_v19 }
 0x19b   :  { %6885 = vst [vmem:[#allocation26_spill] sm:$0xff] %v5309_v20  ;;  %v5315_v16 = vpop.f32.mrf.mxu1 }
 0x19c   :  { %v5313_v17 = vpop.f32.mrf.mxu0  ;;  %6888 = vst [vmem:[#allocation29_spill] sm:$0xff] %v5315_v16 }
 0x19d   :  { %6887 = vst [vmem:[#allocation28_spill] sm:$0xff] %v5313_v17  ;;  %v5319_v29 = vpop.f32.mrf.mxu1 }
 0x19e   :  { %v5317_v32 = vpop.f32.mrf.mxu0  ;;  %6890 = vst [vmem:[#allocation31_spill] sm:$0xff] %v5319_v29 }
 0x19f   :  { %6889 = vst [vmem:[#allocation30_spill] sm:$0xff] %v5317_v32  ;;  %v5321_v8 = vpop.f32.mrf.mxu1 }
 0x1a0   :  { %6891 = vst [vmem:[#allocation32_spill] sm:$0xff] %v5321_v8  ;;  %v1066_v38 = vpop.f32.mrf.mxu0 }
 0x1a1   :  { %v5323_v4 = vpop.f32.mrf.mxu1 }
 0x1a2   :  { %6892 = vst [vmem:[#allocation33_spill] sm:$0xff] %v5323_v4  ;;  %v1068_v33 = vpop.f32.mrf.mxu0 }
 0x1a3   :  { %v5325_v61 = vpop.f32.mrf.mxu1 }
 0x1a4   :  { %6893 = vst [vmem:[#allocation34_spill] sm:$0xff] %v5325_v61  ;;  %v1070_v52 = vpop.f32.mrf.mxu0 }
 0x1a5   :  { %v5327_v20 = vpop.f32.mrf.mxu1 }
 0x1a6   :  { %6894 = vst [vmem:[#allocation35_spill] sm:$0xff] %v5327_v20  ;;  %v5329_v19 = vpop.f32.mrf.mxu0  ;;  %v5345_v20 = vpop.permute.xlu1 %1422 }
 0x1a7   :  { %v5331_v17 = vpop.f32.mrf.mxu1  ;;  %6902 = vst [vmem:[#allocation43_spill] sm:$0xff] %v5345_v20 }
 0x1a8   :  { %6895 = vst [vmem:[#allocation36_spill] sm:$0xff] %v5331_v17  ;;  %v5333_v16 = vpop.f32.mrf.mxu0 }
 0x1a9   :  { %6896 = vst [vmem:[#allocation37_spill] sm:$0xff] %v5333_v16  ;;  %v5335_v32 = vpop.f32.mrf.mxu1 }
 0x1aa   :  { %6897 = vst [vmem:[#allocation38_spill] sm:$0xff] %v5335_v32  ;;  %v5337_v29 = vpop.f32.mrf.mxu0 }
 0x1ab   :  { %6898 = vst [vmem:[#allocation39_spill] sm:$0xff] %v5337_v29  ;;  %v1198_v27 = vpop.f32.mrf.mxu1 }
 0x1ac   :  { %v5339_v8 = vpop.f32.mrf.mxu0 }
 0x1ad   :  { %6899 = vst [vmem:[#allocation40_spill] sm:$0xff] %v5339_v8  ;;  %v1200_v43 = vpop.f32.mrf.mxu1 }
 0x1ae   :  { %v5341_v4 = vpop.f32.mrf.mxu0 }
 0x1af   :  { %6900 = vst [vmem:[#allocation41_spill] sm:$0xff] %v5341_v4  ;;  %v1202_v41 = vpop.f32.mrf.mxu1  ;;  %v5363_v4 = vpop.permute.xlu1 %1407 }
 0x1b0   :  { %v5343_v61 = vpop.f32.mrf.mxu0  ;;  %6910 = vst [vmem:[#allocation51_spill] sm:$0xff] %v5363_v4  ;;  %v6913_v12 = vld [vmem:[#allocation37_spill] sm:$0xff] }
 0x1b1   :  { %6901 = vst [vmem:[#allocation42_spill] sm:$0xff] %v5343_v61  ;;  %v5349_v17 = vpop.f32.mrf.mxu1  ;;  %v720_v61 = vadd.f32 %v5221_v42, %v5205_v18  ;;  %v591_v18 = vadd.f32 %v5213_v30, %v438_v3  ;;  %v722_v42 = vadd.f32 %v5229_v49, %v5211_v28  ;;  %v468_v28 = vadd.f32 %v5217_v37, %v5203_v10 }
 0x1b2   :  { %v5347_v25 = vpop.f32.mrf.mxu0  ;;  %6904 = vst [vmem:[#allocation45_spill] sm:$0xff] %v5349_v17  ;;  %v595_v49 = vadd.f32 %v5225_v46, %v448_v45  ;;  %v725_v10 = vadd.f32 %v5243_v60, %v5219_v40  ;;  %v845_v46 = vadd.f32 %v5279_v31, %v724_v51  ;;  %v729_v40 = vadd.f32 %v5259_v11, %v5235_v54 }
 0x1b3   :  { %6903 = vst [vmem:[#allocation44_spill] sm:$0xff] %v5347_v25  ;;  %v5355_v29 = vpop.f32.mrf.mxu1  ;;  %v5392_v3 = vpop.permute.xlu1 %1397  ;;  %v847_v54 = vadd.f32 %v5285_v35, %v726_v36  ;;  %v6919_v35 = vld [vmem:[#allocation25_spill] sm:$0xff] }
 0x1b4   :  { %v5353_v32 = vpop.f32.mrf.mxu0  ;;  %6907 = vst [vmem:[#allocation48_spill] sm:$0xff] %v5355_v29  ;;  %v841_v29 = vadd.f32 %v5263_v13, %v720_v61  ;;  %v843_v13 = vadd.f32 %v5271_v24, %v722_v42  ;;  %v727_v37 = vadd.f32 %v5249_v2, %v595_v49  ;;  %v977_v2 = vadd.f32 %v5299_v6, %v845_v46  ;;  %v6921_v49 = vld [vmem:[#allocation19_spill] sm:$0xff] }
 0x1b5   :  { %6906 = vst [vmem:[#allocation47_spill] sm:$0xff] %v5353_v32  ;;  %v5359_v16 = vpop.f32.mrf.mxu1  ;;  %v721_v32 = vadd.f32 %v5227_v47, %v5209_v23  ;;  %v723_v47 = vadd.f32 %v5233_v53, %v591_v18  ;;  %v979_v42 = vadd.f32 %v6919_v35, %v847_v54 }
 0x1b6   :  { %v5357_v8 = vpop.f32.mrf.mxu0  ;;  %6909 = vst [vmem:[#allocation50_spill] sm:$0xff] %v5359_v16 }
 0x1b7   :  { %6908 = vst [vmem:[#allocation49_spill] sm:$0xff] %v5357_v8  ;;  %v5367_v25 = vpop.f32.mrf.mxu1  ;;  %v5374_v8 = vpop.permute.xlu0 %1412  ;;  %v842_v4 = vadd.f32 %v5267_v15, %v721_v32  ;;  %v844_v53 = vadd.f32 %v5275_v26, %v723_v47 }
 0x1b8   :  { %v5365_v20 = vpop.f32.mrf.mxu0  ;;  %6912 = vst [vmem:[#allocation53_spill] sm:$0xff] %v5374_v8  ;;  %v5433_v11 = vpop.permute.xlu1 %1387 }
 0x1b9   :  { %6911 = vst [vmem:[#allocation52_spill] sm:$0xff] %v5365_v20  ;;  %v5378_v17 = vpop.f32.mrf.mxu1  ;;  %v973_v20 = vadd.f32 %v934_v39, %v841_v29  ;;  %v974_v61 = vadd.f32 %v936_v48, %v842_v4  ;;  %v976_v59 = vadd.f32 %v5295_v1, %v844_v53  ;;  %v1109_v48 = vadd.f32 %v6913_v12, %v977_v2  ;;  %v6916_v1 = vld [vmem:[#allocation15_spill] sm:$0xff]  ;;  %v6927_v2 = vld [vmem:[#allocation41_spill] sm:$0xff] }
 0x1ba   :  { %v5376_v16 = vpop.f32.mrf.mxu0 }
 0x1bb   :  { %v1105_v30 = vadd.f32 %v1066_v38, %v973_v20  ;;  %v5400_v5 = vpop.f32.mrf.mxu1  ;;  %v975_v20 = vadd.f32 %v5291_v55, %v843_v13  ;;  %v1106_v38 = vadd.f32 %v1068_v33, %v974_v61  ;;  %v5406_v24 = vpop.permute.xlu0 %1402  ;;  %v5418_v33 = vadd.f32 %v5257_v9, %v468_v28  ;;  %v6920_v47 = vld [vmem:[#allocation48_spill] sm:$0xff] }
 0x1bc   :  { %v5388_v23 = vpop.f32.mrf.mxu0  ;;  %v846_v9 = vadd.f32 %v5283_v34, %v725_v10  ;;  %v6918_v34 = vld [vmem:[#allocation23_spill] sm:$0xff]  ;;  %v1241_v13 = vadd.f32 %v6920_v47, %v1109_v48 }
 0x1bd   :  { %v1237_v15 = vadd.f32 %v1198_v27, %v1105_v30  ;;  %v1107_v26 = vadd.f32 %v1070_v52, %v975_v20  ;;  %v1238_v29 = vadd.f32 %v1200_v43, %v1106_v38  ;;  %v728_v27 = vadd.f32 %v5253_v7, %v5231_v50  ;;  %v5424_v60 = vpop.f32.mrf.mxu1  ;;  %v6914_v52 = vld [vmem:[#allocation45_spill] sm:$0xff]  ;;  %v6923_v20 = vld [vmem:[#allocation39_spill] sm:$0xff] }
 0x1be   :  { %v5402_v21 = vpop.f32.mrf.mxu0  ;;  %v1108_v43 = vadd.f32 %v5329_v19, %v976_v59  ;;  %v731_v50 = vadd.f32 %v5265_v14, %v599_v62  ;;  %v732_v7 = vadd.f32 %v5269_v22, %v5247_v0  ;;  %v6915_v14 = vld [vmem:[#allocation13_spill] sm:$0xff]  ;;  %v6917_v0 = vld [vmem:[#allocation18_spill] sm:$0xff]  ;;  %v978_v18 = vadd.f32 %v6918_v34, %v846_v9  ;;  %v6922_v62 = vld [vmem:[#allocation27_spill] sm:$0xff] }
 0x1bf   :  { %v1239_v31 = vadd.f32 %v1202_v41, %v1107_v26  ;;  %v5438_v41 = vpop.permute.xlu0 %1392  ;;  %v733_v4 = vadd.f32 %v6916_v1, %v6915_v14  ;;  %v848_v22 = vadd.f32 %v6917_v0, %v727_v37  ;;  %v1222_v45 = vpop.f32.mrf.mxu1  ;;  %v849_v51 = vadd.f32 %v6921_v49, %v728_v27  ;;  %v6925_v26 = vld [vmem:[#allocation20_spill] sm:$0xff]  ;;  %v6931_v14 = vld [vmem:[#allocation42_spill] sm:$0xff] }
 0x1c0   :  { %v1330_v56 = vpop.f32.mrf.mxu0  ;;  %v1240_v6 = vadd.f32 %v6914_v52, %v1108_v43  ;;  %v1110_v38 = vadd.f32 %v6923_v20, %v978_v18  ;;  %v6929_v52 = vld [vmem:[#allocation21_spill] sm:$0xff] }
 0x1c1   :  { %v1369_v32 = vadd.f32 %v1330_v56, %v1237_v15  ;;  %v980_v53 = vadd.f32 %v6922_v62, %v848_v22  ;;  %v6924_v15 = vld [vmem:[#allocation40_spill] sm:$0xff] }
 0x1c2   :  { %v1332_v63 = vpop.f32.mrf.mxu0  ;;  %v1111_v10 = vadd.f32 %v6924_v15, %v979_v42  ;;  %v6933_v42 = vld [vmem:[#allocation16_spill] sm:$0xff] }
 0x1c3   :  { %v1370_v39 = vadd.f32 %v1332_v63, %v1238_v29  ;;  %v1425_v19 = vadd.f32 %v5433_v11, %v1369_v32  ;;  %v850_v29 = vadd.f32 %v6925_v26, %v729_v40  ;;  %v6926_v32 = vld [vmem:[#allocation29_spill] sm:$0xff]  ;;  %v1112_v43 = vadd.f32 %v6927_v2, %v980_v53  ;;  %v6941_v2 = vld [vmem:[#allocation34_spill] sm:$0xff] }
 0x1c4   :  { %v1334_v57 = vpop.f32.mrf.mxu0  ;;  %v981_v63 = vadd.f32 %v6926_v32, %v849_v51  ;;  %v1243_v54 = vadd.f32 %v5367_v25, %v1111_v10  ;;  %v6932_v25 = vld [vmem:[#allocation14_spill] sm:$0xff]  ;;  %v6938_v10 = vld [vmem:[#allocation33_spill] sm:$0xff] }
 0x1c5   :  { %v1371_v55 = vadd.f32 %v1334_v57, %v1239_v31  ;;  %v1426_v61 = vadd.f32 %v5433_v11, %v1370_v39  ;;  %v1441_v37 = vmax.f32 %v1425_v19, 0.0  ;;  %v6928_v31 = vld [vmem:[#allocation50_spill] sm:$0xff]  ;;  %v1224_v39 = vpop.f32.mrf.mxu1  ;;  %v6930_v19 = vld [vmem:[#allocation31_spill] sm:$0xff]  ;;  %v1244_v22 = vadd.f32 %v5378_v17, %v1112_v43 }
 0x1c6   :  { %v1336_v58 = vpop.f32.mrf.mxu0  ;;  %v1242_v27 = vadd.f32 %v6928_v31, %v1110_v38  ;;  %v1113_v40 = vadd.f32 %v6931_v14, %v981_v63  ;;  %v6937_v38 = vld [vmem:[#allocation24_spill] sm:$0xff]  ;;  %v6940_v32 = vld [vmem:[#allocation26_spill] sm:$0xff]  ;;  %v6942_v31 = vld [vmem:[#allocation49_spill] sm:$0xff] }
 0x1c7   :  { %v1427_v30 = vadd.f32 %v5438_v41, %v1371_v55  ;;  %v1372_v28 = vadd.f32 %v1336_v58, %v1240_v6  ;;  %v1442_v57 = vmax.f32 %v1426_v61, 0.0  ;;  %v851_v6 = vadd.f32 %v6929_v52, %v730_v44  ;;  %v6934_v44 = vld [vmem:[#allocation22_spill] sm:$0xff]  ;;  %v1228_v49 = vpop.f32.mrf.mxu1 }
 0x1c8   :  { %v1340_v36 = vpop.f32.mrf.mxu0  ;;  %v982_v55 = vadd.f32 %v6930_v19, %v850_v29  ;;  %v734_v58 = vadd.f32 %v6933_v42, %v6932_v25  ;;  %v852_v47 = vadd.f32 %v6934_v44, %v731_v50  ;;  %v1245_v17 = vadd.f32 %v5400_v5, %v1113_v40  ;;  %v6945_v40 = vld [vmem:[#allocation35_spill] sm:$0xff]  ;;  %v6948_v44 = vld [vmem:[#allocation30_spill] sm:$0xff] }
 0x1c9   :  { %v1443_v46 = vmax.f32 %v1427_v30, 0.0  ;;  %v1428_v56 = vadd.f32 %v5438_v41, %v1372_v28  ;;  %v1373_v59 = vadd.f32 %v1340_v36, %v1241_v13  ;;  %v6935_v13 = vld [vmem:[#allocation32_spill] sm:$0xff]  ;;  %v853_v15 = vadd.f32 %v6937_v38, %v732_v7  ;;  %v6939_v36 = vld [vmem:[#allocation47_spill] sm:$0xff]  ;;  %v1230_v7 = vpop.f32.mrf.mxu1 }
 0x1ca   :  { %v1342_v9 = vpop.f32.mrf.mxu0  ;;  %v983_v61 = vadd.f32 %v6935_v13, %v851_v6  ;;  %v6936_v30 = vld [vmem:[#allocation44_spill] sm:$0xff]  ;;  %v984_v50 = vadd.f32 %v6938_v10, %v852_v47  ;;  %v854_v63 = vadd.f32 %v6940_v32, %v733_v4  ;;  %v6943_v6 = vld [vmem:[#allocation17_spill] sm:$0xff] }
 0x1cb   :  { %v5458_v12 = vpack.c.bf16 %v1443_v46, %v1441_v37  ;;  %v1444_v48 = vmax.f32 %v1428_v56, 0.0  ;;  %v1374_v1 = vadd.f32 %v1342_v9, %v1242_v27  ;;  %v1429_v18 = vadd.f32 %v5392_v3, %v1373_v59  ;;  %v6946_v4 = vld [vmem:[#allocation52_spill] sm:$0xff] }
 0x1cc   :  { %v1344_v0 = vpop.f32.mrf.mxu0  ;;  %v1114_v28 = vadd.f32 %v6936_v30, %v982_v55  ;;  %v1115_v37 = vadd.f32 %v6939_v36, %v983_v61  ;;  %v985_v43 = vadd.f32 %v6941_v2, %v853_v15  ;;  %v1116_v27 = vadd.f32 %v6942_v31, %v984_v50  ;;  %v6944_v55 = vld [vmem:[#allocation28_spill] sm:$0xff]  ;;  %v1232_v61 = vpop.f32.mrf.mxu1 }
 0x1cd   :  { %v5464_v34 = vpack.c.bf16 %v1444_v48, %v1442_v57  ;;  %v1375_v35 = vadd.f32 %v1344_v0, %v1243_v54  ;;  %1533 = vrot.lane.b32.xlu1 %v5458_v12, %s4841_s26  ;;  %v1430_v62 = vadd.f32 %v5392_v3, %v1374_v1  ;;  %v1445_v59 = vmax.f32 %v1429_v18, 0.0  ;;  %v6949_v13 = vld [vmem:[#allocation36_spill] sm:$0xff] }
 0x1ce   :  { %v1346_v51 = vpop.f32.mrf.mxu0  ;;  %v1246_v46 = vadd.f32 %v5424_v60, %v1114_v28  ;;  %v1247_v9 = vadd.f32 %v1222_v45, %v1115_v37  ;;  %v735_v19 = vadd.f32 %v6943_v6, %v5418_v33  ;;  %v855_v14 = vadd.f32 %v6944_v55, %v734_v58  ;;  %v6947_v45 = vld [vmem:[#allocation51_spill] sm:$0xff] }
 0x1cf   :  { %v1431_v53 = vadd.f32 %v5406_v24, %v1375_v35  ;;  %v1376_v20 = vadd.f32 %v1346_v51, %v1244_v22  ;;  %1535 = vrot.lane.b32.xlu0 %v5464_v34, %s4841_s26  ;;  %v1446_v57 = vmax.f32 %v1430_v62, 0.0  ;;  %v986_v1 = vadd.f32 %v6945_v40, %v854_v63  ;;  %v6950_v62 = vld [vmem:[#allocation38_spill] sm:$0xff] }
 0x1d0   :  { %v1350_v56 = vpop.f32.mrf.mxu0  ;;  %v1117_v0 = vadd.f32 %v6946_v4, %v985_v43  ;;  %v1248_v18 = vadd.f32 %v1224_v39, %v1116_v27  ;;  %v856_v47 = vadd.f32 %v6948_v44, %v735_v19  ;;  %v987_v33 = vadd.f32 %v6949_v13, %v855_v14 }
 0x1d1   :  { %v1447_v26 = vmax.f32 %v1431_v53, 0.0  ;;  %v1432_v5 = vadd.f32 %v5406_v24, %v1376_v20  ;;  %v1377_v29 = vadd.f32 %v1350_v56, %v1245_v17  ;;  %v1118_v58 = vadd.f32 %v5376_v16, %v986_v1 }
 0x1d2   :  { %v1352_v54 = vpop.f32.mrf.mxu0  ;;  %v1249_v28 = vadd.f32 %v1228_v49, %v1117_v0  ;;  %v988_v53 = vadd.f32 %v6950_v62, %v856_v47  ;;  %v1119_v20 = vadd.f32 %v5388_v23, %v987_v33  ;;  %v1474_v62 = vsel %vm6841_vm9, %v5464_v34, 0 }
 0x1d3   :  { %v5487_v48 = vpack.c.bf16 %v1447_v26, %v1445_v59  ;;  %v1448_v52 = vmax.f32 %v1432_v5, 0.0  ;;  %v1378_v60 = vadd.f32 %v1352_v54, %v1246_v46  ;;  %v1433_v25 = vadd.f32 %v6947_v45, %v1377_v29  ;;  %v1234_v59 = vpop.f32.mrf.mxu1 }
 0x1d4   :  { %v1354_v22 = vpop.f32.mrf.mxu0  ;;  %v1250_v38 = vadd.f32 %v1230_v7, %v1118_v58  ;;  %v1120_v46 = vadd.f32 %v5402_v21, %v988_v53  ;;  %v1251_v56 = vadd.f32 %v1232_v61, %v1119_v20  ;;  %v6953_v21 = vld [vmem:[#allocation46_spill] sm:$0xff]  ;;  %v4579_v53 = vld [vmem:[%s6814_s0 + $0x20] sm:$0xff]  ;;  %v4581_v20 = vld [vmem:[%s6814_s0 + $0x30] sm:$0xff] }
 0x1d5   :  { %v5494_v35 = vpack.c.bf16 %v1448_v52, %v1446_v57  ;;  %v1379_v42 = vadd.f32 %v1354_v22, %v1247_v9  ;;  %1537 = vrot.lane.b32.xlu1 %v5487_v48, %s4841_s26  ;;  %v1434_v51 = vadd.f32 %v6947_v45, %v1378_v60  ;;  %v5511_v16 = vsel %vm211_vm6, %v5487_v48, 0  ;;  %v6954_v52 = vld [vmem:[#allocation43_spill] sm:$0xff] }
 0x1d6   :  { %v1356_v30 = vpop.f32.mrf.mxu0  ;;  %v1449_v49 = vmax.f32 %v1433_v25, 0.0  ;;  %v1252_v31 = vadd.f32 %v1234_v59, %v1120_v46  ;;  %v1465_v25 = vsel %vm211_vm6, %v5458_v12, 0 }
 0x1d7   :  { %v1435_v39 = vadd.f32 %v5374_v8, %v1379_v42  ;;  %v1380_v17 = vadd.f32 %v1356_v30, %v1248_v18  ;;  %1539 = vrot.lane.b32.xlu0 %v5494_v35, %s4841_s26  ;;  %v5520_v5 = vsel %vm212_vm7, %v5494_v35, 0  ;;  %v1450_v29 = vmax.f32 %v1434_v51, 0.0 }
 0x1d8   :  { %v1360_v15 = vpop.f32.mrf.mxu0  ;;  %v1466_v42 = vsel %vm212_vm7, %v5464_v34, 0  ;;  %v1475_v51 = vsel %vm229_vm8, %v5487_v48, 0 }
 0x1d9   :  { %v1451_v50 = vmax.f32 %v1435_v39, 0.0  ;;  %v1436_v36 = vadd.f32 %v5374_v8, %v1380_v17  ;;  %v1381_v37 = vadd.f32 %v1360_v15, %v1249_v28  ;;  %1493 = vrot.lane.b32.xlu1 %v5511_v16, %s4842_s27  ;;  %v1476_v28 = vsel %vm6841_vm9, %v5494_v35, 0  ;;  %v4582_v15 = vld [vmem:[%s6814_s0 + $0x38] sm:$0xff] }
 0x1da   :  { %v1362_v23 = vpop.f32.mrf.mxu0  ;;  %v1473_v17 = vsel %vm229_vm8, %v5458_v12, 0 }
 0x1db   :  { %v5522_v32 = vpack.c.bf16 %v1451_v50, %v1449_v49  ;;  %v1452_v63 = vmax.f32 %v1436_v36, 0.0  ;;  %v1382_v2 = vadd.f32 %v1362_v23, %v1250_v38  ;;  %1495 = vrot.lane.b32.xlu0 %v5520_v5, %s4842_s27  ;;  %v1437_v9 = vadd.f32 %v6953_v21, %v1381_v37  ;;  %v4580_v38 = vld [vmem:[%s6814_s0 + $0x28] sm:$0xff] }
 0x1dc   :  { %v1364_v43 = vpop.f32.mrf.mxu0  ;;  %v5658_v49 = vpack.c.bf16 %v4582_v15, %v4580_v38 }
 0x1dd   :  { %v5526_v27 = vpack.c.bf16 %v1452_v63, %v1450_v29  ;;  %v1383_v7 = vadd.f32 %v1364_v43, %v1251_v56  ;;  %1541 = vrot.lane.b32.xlu1 %v5522_v32, %s4841_s26  ;;  %v1438_v57 = vadd.f32 %v6953_v21, %v1382_v2  ;;  %v1469_v19 = vsel %vm211_vm6, %v5522_v32, 0 }
 0x1de   :  { %v1366_v54 = vpop.f32.mrf.mxu0  ;;  %v1453_v55 = vmax.f32 %v1437_v9, 0.0  ;;  %v1477_v30 = vsel %vm229_vm8, %v5522_v32, 0  ;;  %v2523_v2 = vsel %vm212_vm7, %v5658_v49, 0 }
 0x1df   :  { %v1439_v60 = vadd.f32 %v6954_v52, %v1383_v7  ;;  %v1384_v6 = vadd.f32 %v1366_v54, %v1252_v31  ;;  %1543 = vrot.lane.b32.xlu0 %v5526_v27, %s4841_s26  ;;  %v1470_v1 = vsel %vm212_vm7, %v5526_v27, 0  ;;  %v1454_v4 = vmax.f32 %v1438_v57, 0.0 }
 0x1e0   :  { %v1478_v33 = vsel %vm6841_vm9, %v5526_v27, 0  ;;  %v2525_v7 = vsel %vm6841_vm9, %v5658_v49, 0 }
 0x1e1   :  { %v1455_v14 = vmax.f32 %v1439_v60, 0.0  ;;  %v1440_v40 = vadd.f32 %v6954_v52, %v1384_v6  ;;  %1497 = vrot.lane.b32.xlu1 %v1469_v19, %s4842_s27 }
 0x1e3   :  { %v5543_v0 = vpack.c.bf16 %v1455_v14, %v1453_v55  ;;  %v1456_v22 = vmax.f32 %v1440_v40, 0.0  ;;  %1499 = vrot.lane.b32.xlu0 %v1470_v1, %s4842_s27 }
 0x1e5   :  { %v5546_v18 = vpack.c.bf16 %v1456_v22, %v1454_v4  ;;  %1545 = vrot.lane.b32.xlu1 %v5543_v0, %s4841_s26  ;;  %v1471_v44 = vsel %vm211_vm6, %v5543_v0, 0  ;;  %v1479_v61 = vsel %vm229_vm8, %v5543_v0, 0 }
 0x1e7   :  { %1547 = vrot.lane.b32.xlu0 %v5546_v18, %s4841_s26  ;;  %v1472_v47 = vsel %vm212_vm7, %v5546_v18, 0  ;;  %v1480_v39 = vsel %vm6841_vm9, %v5546_v18, 0  ;;  %vm1579_vm9 = vcmask 523264  }
 0x1e9   :  { %1489 = vrot.lane.b32.xlu1 %v1465_v25, %s4842_s27 }
 0x1eb   :  { %1491 = vrot.lane.b32.xlu0 %v1466_v42, %s4842_s27 }
 0x1ed   :  { %1501 = vrot.lane.b32.xlu1 %v1471_v44, %s4842_s27 }
 0x1ef   :  { %1839 = vrot.lane.b32.xlu0 %v1470_v1, %s4844_s29 }
 0x1f1   :  { %1841 = vrot.lane.b32.xlu1 %v1471_v44, %s4844_s29 }
 0x1f3   :  { %1835 = vrot.lane.b32.xlu0 %v5520_v5, %s4844_s29 }
 0x1f5   :  { %1837 = vrot.lane.b32.xlu1 %v1469_v19, %s4844_s29 }
 0x1f7   :  { %1503 = vrot.lane.b32.xlu0 %v1472_v47, %s4842_s27 }
 0x1f9   :  { %1833 = vrot.lane.b32.xlu1 %v5511_v16, %s4844_s29 }
 0x1fb   :  { %1831 = vrot.lane.b32.xlu0 %v1466_v42, %s4844_s29 }
 0x1fd   :  { %1829 = vrot.lane.b32.xlu1 %v1465_v25, %s4844_s29 }
 0x1ff   :  { %1726 = vrot.lane.b32.xlu0 %v1478_v33, %s4843_s28 }
 0x201   :  { %1728 = vrot.lane.b32.xlu1 %v1479_v61, %s4843_s28 }
 0x203   :  { %2029 = vrot.lane.b32.xlu0 %v1478_v33, %s4845_s30 }
 0x205   :  { %2031 = vrot.lane.b32.xlu1 %v1479_v61, %s4845_s30 }
 0x207   :  { %1843 = vrot.lane.b32.xlu0 %v1472_v47, %s4844_s29 }
 0x209   :  { %1724 = vrot.lane.b32.xlu1 %v1477_v30, %s4843_s28 }
 0x20b   :  { %1722 = vrot.lane.b32.xlu0 %v1476_v28, %s4843_s28 }
 0x20d   :  { %2027 = vrot.lane.b32.xlu1 %v1477_v30, %s4845_s30 }
 0x20f   :  { %2025 = vrot.lane.b32.xlu0 %v1476_v28, %s4845_s30 }
 0x211   :  { %1720 = vrot.lane.b32.xlu1 %v1475_v51, %s4843_s28 }
 0x213   :  { %1730 = vrot.lane.b32.xlu0 %v1480_v39, %s4843_s28 }
 0x215   :  { %2023 = vrot.lane.b32.xlu1 %v1475_v51, %s4845_s30 }
 0x217   :  { %2033 = vrot.lane.b32.xlu0 %v1480_v39, %s4845_s30 }
 0x219   :  { %1716 = vrot.lane.b32.xlu1 %v1473_v17, %s4843_s28 }
 0x21b   :  { %1718 = vrot.lane.b32.xlu0 %v1474_v62, %s4843_s28 }
 0x21d   :  { %2019 = vrot.lane.b32.xlu1 %v1473_v17, %s4845_s30 }
 0x21f   :  { %2021 = vrot.lane.b32.xlu0 %v1474_v62, %s4845_s30 }
 0x221   :  { %2257 = vrot.lane.b32.xlu1 %v5543_v0, %s4847_s7 }
 0x223   :  { %2259 = vrot.lane.b32.xlu0 %v5546_v18, %s4847_s7 }
 0x225   :  { %2253 = vrot.lane.b32.xlu1 %v5522_v32, %s4847_s7 }
 0x227   :  { %2255 = vrot.lane.b32.xlu0 %v5526_v27, %s4847_s7 }
 0x229   :  { %2249 = vrot.lane.b32.xlu1 %v5487_v48, %s4847_s7 }
 0x22b   :  { %2251 = vrot.lane.b32.xlu0 %v5494_v35, %s4847_s7 }
 0x22d   :  { %2245 = vrot.lane.b32.xlu1 %v5458_v12, %s4847_s7 }
 0x22f   :  { %2247 = vrot.lane.b32.xlu0 %v5464_v34, %s4847_s7 }
 0x231   :  { %2144 = vrot.lane.b32.xlu1 %v1471_v44, %s4846_s6  ;;  %v4746_v44 = vld [vmem:[%s6817_s3 + $0x10] sm:$0xff]  }
 0x233   :  { %2142 = vrot.lane.b32.xlu0 %v1470_v1, %s4846_s6 }
 0x235   :  { %2140 = vrot.lane.b32.xlu1 %v1469_v19, %s4846_s6 }
 0x237   :  { %2146 = vrot.lane.b32.xlu0 %v1472_v47, %s4846_s6 }
 0x239   :  { %2136 = vrot.lane.b32.xlu1 %v5511_v16, %s4846_s6  ;;  %v5655_v16 = vpack.c.bf16 %v4581_v20, %v4579_v53 }
 0x23b   :  { %2138 = vrot.lane.b32.xlu0 %v5520_v5, %s4846_s6  ;;  %v2522_v29 = vsel %vm211_vm6, %v5655_v16, 0  ;;  %v2524_v31 = vsel %vm229_vm8, %v5655_v16, 0 }
 0x23d   :  { %2132 = vrot.lane.b32.xlu1 %v1465_v25, %s4846_s6 }
 0x23f   :  { %2134 = vrot.lane.b32.xlu0 %v1466_v42, %s4846_s6  ;;  %v1534_v50 = vpop.permute.xlu1 %1533 }
 0x241   :  { %2539 = vrot.lane.b32.xlu1 %v5655_v16, %s4841_s26  ;;  %v1536_v36 = vpop.permute.xlu0 %1535 }
 0x242   :  { %v1549_v22 = vsel %vm253_vm10, %v1534_v50, %v1536_v36 }
 0x243   :  { %2541 = vrot.lane.b32.xlu0 %v5658_v49, %s4841_s26 }
 0x245   :  { %2370 = vrot.lane.b32.xlu1 %v1479_v61, %s4848_s8 }
 0x247   :  { %2372 = vrot.lane.b32.xlu0 %v1480_v39, %s4848_s8  ;;  %v1538_v37 = vpop.permute.xlu1 %1537 }
 0x249   :  { %v1540_v46 = vpop.permute.xlu0 %1539  ;;  %2366 = vrot.lane.b32.xlu1 %v1477_v30, %s4848_s8 }
 0x24a   :  { %v1550_v40 = vsel %vm253_vm10, %v1538_v37, %v1540_v46 }
 0x24b   :  { %2368 = vrot.lane.b32.xlu0 %v1478_v33, %s4848_s8  ;;  %v5668_v56 = vpop.permute.xlu1 %1493 }
 0x24d   :  { %v5670_v59 = vpop.permute.xlu0 %1495  ;;  %2362 = vrot.lane.b32.xlu1 %v1475_v51, %s4848_s8  ;;  %v6959_v51 = vmov 0  }
 0x24e   :  { %v1506_v53 = vsel %vm239_vm12, %v5668_v56, %v5670_v59 }
 0x24f   :  { %2364 = vrot.lane.b32.xlu0 %v1476_v28, %s4848_s8  ;;  %v1542_v23 = vpop.permute.xlu1 %1541 }
 0x251   :  { %v1544_v5 = vpop.permute.xlu0 %1543  ;;  %2358 = vrot.lane.b32.xlu1 %v1473_v17, %s4848_s8 }
 0x252   :  { %v1551_v19 = vsel %vm253_vm10, %v1542_v23, %v1544_v5 }
 0x253   :  { %2360 = vrot.lane.b32.xlu0 %v1474_v62, %s4848_s8  ;;  %v1498_v63 = vpop.permute.xlu1 %1497  ;;  %v4747_v62 = vld [vmem:[%s6817_s3 + $0x18] sm:$0xff]  }
 0x255   :  { %v1500_v43 = vpop.permute.xlu0 %1499  ;;  %2528 = vrot.lane.b32.xlu1 %v2522_v29, %s4842_s27 }
 0x256   :  { %v1507_v28 = vsel %vm239_vm12, %v1498_v63, %v1500_v43 }
 0x257   :  { %2530 = vrot.lane.b32.xlu0 %v2523_v2, %s4842_s27  ;;  %v1546_v9 = vpop.permute.xlu1 %1545 }
 0x259   :  { %v1548_v54 = vpop.permute.xlu0 %1547  ;;  %2696 = vrot.lane.b32.xlu1 %v2524_v31, %s4843_s28 }
 0x25a   :  { %v1552_v57 = vsel %vm253_vm10, %v1546_v9, %v1548_v54 }
 0x25b   :  { %2698 = vrot.lane.b32.xlu0 %v2525_v7, %s4843_s28  ;;  %1594 = vmatprep.subr.bf16.mxu1 %v1552_v57  ;;  %v1490_v60 = vpop.permute.xlu1 %1489 }
 0x25c   :  { %4498 = vmatpush1.bf16.msk.msra.mxu1 %vm4948_vm11, %v1546_v9 }
 0x25d   :  { %v1492_v55 = vpop.permute.xlu0 %1491  ;;  %1596 = vmatprep.subr.bf16.mxu1 %v1551_v19  ;;  %2794 = vrot.lane.b32.xlu1 %v2522_v29, %s4844_s29  ;;  %v4750_v19 = vld [vmem:[%s6817_s3 + $0x30] sm:$0xff]  }
 0x25e   :  { %v1505_v15 = vsel %vm239_vm12, %v1490_v60, %v1492_v55 }
 0x25f   :  { %v1502_v14 = vpop.permute.xlu1 %1501  ;;  %2796 = vrot.lane.b32.xlu0 %v2523_v2, %s4844_s29 }
 0x260   :  { %4500 = vmatpush1.bf16.msk.msra.mxu1 %vm4948_vm11, %v1542_v23 }
 0x261   :  { %v1840_v1 = vpop.permute.xlu0 %1839  ;;  %1598 = vmatprep.subr.bf16.mxu1 %v1550_v40  ;;  %2981 = vrot.lane.b32.xlu1 %v2524_v31, %s4845_s30 }
 0x263   :  { %v1842_v4 = vpop.permute.xlu1 %1841  ;;  %2983 = vrot.lane.b32.xlu0 %v2525_v7, %s4845_s30 }
 0x264   :  { %4502 = vmatpush1.bf16.msk.msra.mxu1 %vm4948_vm11, %v1538_v37  ;;  %v4748_v37 = vld [vmem:[%s6817_s3] sm:$0xff]  }
 0x265   :  { %v1836_v25 = vpop.permute.xlu0 %1835  ;;  %1600 = vmatprep.subr.bf16.mxu1 %v1549_v22  ;;  %3079 = vrot.lane.b32.xlu1 %v2522_v29, %s4846_s6 }
 0x267   :  { %v1838_v42 = vpop.permute.xlu1 %1837  ;;  %3081 = vrot.lane.b32.xlu0 %v2523_v2, %s4846_s6  ;;  %v4749_v2 = vld [vmem:[%s6817_s3 + $0x8] sm:$0xff]  }
 0x268   :  { %4504 = vmatpush1.bf16.msk.msra.mxu1 %vm4948_vm11, %v1534_v50  ;;  %v1847_v5 = vsel %vm608_vm0, %v1838_v42, %v1840_v1 }
 0x269   :  { %v1504_v47 = vpop.permute.xlu0 %1503  ;;  %3177 = vrot.lane.b32.xlu1 %v5655_v16, %s4847_s7 }
 0x26a   :  { %v1508_v33 = vsel %vm239_vm12, %v1502_v14, %v1504_v47  ;;  %v4751_v47 = vld [vmem:[%s6817_s3 + $0x38] sm:$0xff]  }
 0x26b   :  { %4505 = vmatmul.mubr.msk.bf16.vlgmr.msra.gmra.mxu1 %vm1579_vm9, %v4746_v44  ;;  %1663 = vmatprep.subr.bf16.mxu1 %v1508_v33  ;;  %v1834_v61 = vpop.permute.xlu1 %1833 }
 0x26c   :  { %4510 = vmatpush1.bf16.msk.msra.mxu1 %vm4964_vm13, %v1502_v14  ;;  %1628 = vmatprep.mubr.bf16.mxu1 %v6959_v51  ;;  %v1846_v43 = vsel %vm608_vm0, %v1834_v61, %v1836_v25 }
 0x26d   :  { %v1832_v39 = vpop.permute.xlu0 %1831  ;;  %1665 = vmatprep.subr.bf16.mxu1 %v1507_v28  ;;  %3179 = vrot.lane.b32.xlu0 %v5658_v49, %s4847_s7 }
 0x26e   :  { %3275 = vrot.lane.b32.xlu1 %v2524_v31, %s4848_s8 }
 0x26f   :  { %v1830_v17 = vpop.permute.xlu1 %1829 }
 0x270   :  { %4512 = vmatpush1.bf16.msk.msra.mxu1 %vm4964_vm13, %v1498_v63 }
 0x271   :  { %v1727_v20 = vpop.permute.xlu0 %1726  ;;  %1667 = vmatprep.subr.bf16.mxu1 %v1506_v53  ;;  %3277 = vrot.lane.b32.xlu0 %v2525_v7, %s4848_s8  ;;  %v1845_v7 = vsel %vm608_vm0, %v1830_v17, %v1832_v39 }
 0x273   :  { %4506 = vmatmul.mubr.msk.bf16.gmra.mxu1 %vm1579_vm9, %v4747_v62  ;;  %v1729_v38 = vpop.permute.xlu1 %1728 }
 0x274   :  { %4514 = vmatpush1.bf16.msk.msra.mxu1 %vm4964_vm13, %v5668_v56  ;;  %1687 = vmatprep.mubr.bf16.mxu1 %v6959_v51 }
 0x275   :  { %v2030_v50 = vpop.permute.xlu0 %2029  ;;  %1669 = vmatprep.subr.bf16.mxu1 %v1505_v15 }
 0x277   :  { %v2032_v36 = vpop.permute.xlu1 %2031 }
 0x278   :  { %4516 = vmatpush1.bf16.msk.msra.mxu1 %vm4964_vm13, %v1490_v60 }
 0x279   :  { %v1844_v46 = vpop.permute.xlu0 %1843 }
 0x27a   :  { %v1848_v59 = vsel %vm608_vm0, %v1842_v4, %v1844_v46  ;;  %v4755_v46 = vld [vmem:[%s6817_s3 + $0x58] sm:$0xff]  }
 0x27b   :  { %4517 = vmatmul.mubr.msk.bf16.vlgmr.msra.gmra.mxu1 %vm1579_vm9, %v4748_v37  ;;  %1889 = vmatprep.subr.bf16.mxu1 %v1848_v59  ;;  %v1725_v56 = vpop.permute.xlu1 %1724 }
 0x27c   :  { %4534 = vmatpush1.bf16.msk.msra.mxu1 %vm4990_vm1, %v1842_v4  ;;  %1697 = vmatprep.mubr.bf16.mxu1 %v6959_v51  ;;  %v1734_v14 = vsel %vm476_vm14, %v1725_v56, %v1727_v20 }
 0x27d   :  { %v1723_v29 = vpop.permute.xlu0 %1722  ;;  %1891 = vmatprep.subr.bf16.mxu1 %v1847_v5 }
 0x27f   :  { %v2028_v63 = vpop.permute.xlu1 %2027 }
 0x280   :  { %4536 = vmatpush1.bf16.msk.msra.mxu1 %vm4990_vm1, %v1838_v42  ;;  %v2037_v42 = vsel %vm861_vm2, %v2028_v63, %v2030_v50 }
 0x281   :  { %v2026_v31 = vpop.permute.xlu0 %2025  ;;  %1893 = vmatprep.subr.bf16.mxu1 %v1846_v43  ;;  %v4758_v43 = vld [vmem:[%s6817_s3 + $0x48] sm:$0xff]  }
 0x283   :  { %4518 = vmatmul.mubr.msk.bf16.gmra.mxu1 %vm1579_vm9, %v4749_v2  ;;  %v1721_v9 = vpop.permute.xlu1 %1720 }
 0x284   :  { %4538 = vmatpush1.bf16.msk.msra.mxu1 %vm4990_vm1, %v1834_v61  ;;  %1913 = vmatprep.mubr.bf16.mxu1 %v6959_v51  ;;  %v1733_v22 = vsel %vm476_vm14, %v1721_v9, %v1723_v29  ;;  %v4757_v29 = vld [vmem:[%s6817_s3 + $0x70] sm:$0xff]  }
 0x285   :  { %v1731_v54 = vpop.permute.xlu0 %1730  ;;  %1895 = vmatprep.subr.bf16.mxu1 %v1845_v7 }
 0x286   :  { %v1735_v57 = vsel %vm476_vm14, %v1729_v38, %v1731_v54  ;;  %v4759_v54 = vld [vmem:[%s6817_s3 + $0x78] sm:$0xff]  }
 0x287   :  { %1776 = vmatprep.subr.bf16.mxu0 %v1735_v57  ;;  %v2024_v60 = vpop.permute.xlu1 %2023 }
 0x288   :  { %4522 = vmatpush1.bf16.msk.msra.mxu0 %vm4977_vm15, %v1729_v38  ;;  %4540 = vmatpush1.bf16.msk.msra.mxu1 %vm4990_vm1, %v1830_v17  ;;  %v2036_v28 = vsel %vm861_vm2, %v2024_v60, %v2026_v31  ;;  %v4752_v17 = vld [vmem:[%s6817_s3 + $0x20] sm:$0xff]   ;;  %v4753_v38 = vld [vmem:[%s6817_s3 + $0x50] sm:$0xff]  }
 0x289   :  { %v2034_v40 = vpop.permute.xlu0 %2033  ;;  %1778 = vmatprep.subr.bf16.mxu0 %v1734_v14 }
 0x28a   :  { %4549 = vmatprep.subr.msk.bf16.mxu1 %vm861_vm2, %v2034_v40  ;;  %v2038_v1 = vsel %vm861_vm2, %v2032_v36, %v2034_v40  ;;  %v4754_v36 = vld [vmem:[%s6817_s3 + $0x28] sm:$0xff]  }
 0x28b   :  { %4541 = vmatmul.mubr.msk.bf16.vlgmr.msra.gmra.mxu1 %vm1579_vm9, %v4750_v19  ;;  %v1717_v4 = vpop.permute.xlu1 %1716 }
 0x28c   :  { %4524 = vmatpush1.bf16.msk.msra.mxu0 %vm4977_vm15, %v1725_v56  ;;  %2080 = vmatpush1.bf16.msra.mxu1 %v2038_v1  ;;  %v4756_v56 = vld [vmem:[%s6817_s3 + $0x40] sm:$0xff]  }
 0x28d   :  { %v1719_v25 = vpop.permute.xlu0 %1718  ;;  %1780 = vmatprep.subr.bf16.mxu0 %v1733_v22  ;;  %4550 = vmatprep.subr.msk.bf16.mxu1 %vm861_vm2, %v2030_v50  ;;  %v4760_v22 = vld [vmem:[%s6817_s3 + $0x60] sm:$0xff]  }
 0x28e   :  { %1923 = vmatprep.mubr.bf16.mxu1 %v6959_v51  ;;  %v1732_v33 = vsel %vm476_vm14, %v1717_v4, %v1719_v25 }
 0x28f   :  { %v2020_v44 = vpop.permute.xlu1 %2019 }
 0x290   :  { %4526 = vmatpush1.bf16.msk.msra.mxu0 %vm4977_vm15, %v1721_v9  ;;  %2082 = vmatpush1.bf16.msra.mxu1 %v2037_v42 }
 0x291   :  { %v2022_v61 = vpop.permute.xlu0 %2021  ;;  %1782 = vmatprep.subr.bf16.mxu0 %v1732_v33  ;;  %4551 = vmatprep.subr.msk.bf16.mxu1 %vm861_vm2, %v2026_v31 }
 0x292   :  { %v2035_v20 = vsel %vm861_vm2, %v2020_v44, %v2022_v61  ;;  %v4764_v44 = vld [vmem:[%s6815_s1 + $0x20] sm:$0xff]  }
 0x293   :  { %4542 = vmatmul.mubr.msk.bf16.gmra.mxu1 %vm1579_vm9, %v4751_v47  ;;  %v2258_v39 = vpop.permute.xlu1 %2257 }
 0x294   :  { %4528 = vmatpush1.bf16.msk.msra.mxu0 %vm4977_vm15, %v1717_v4  ;;  %2084 = vmatpush1.bf16.msra.mxu1 %v2036_v28 }
 0x295   :  { %v2260_v62 = vpop.permute.xlu0 %2259  ;;  %1966 = vmatprep.subr.bf16.mxu0 %v5546_v18  ;;  %4552 = vmatprep.subr.msk.bf16.mxu1 %vm861_vm2, %v2022_v61 }
 0x296   :  { %2103 = vmatprep.mubr.bf16.mxu1 %v6959_v51  ;;  %v2264_v50 = vsel %vm1125_vm4, %v2258_v39, %v2260_v62  ;;  %v4761_v39 = vld [vmem:[%s6817_s3 + $0x68] sm:$0xff]  }
 0x297   :  { %4529 = vmatmul.mubr.msk.bf16.vlgmr.msra.gmra.mxu0 %vm1579_vm9, %v4752_v17  ;;  %v2254_v53 = vpop.permute.xlu1 %2253 }
 0x298   :  { %1967 = vmatpush1.bf16.msra.mxu0 %v5543_v0  ;;  %2086 = vmatpush1.bf16.msra.mxu1 %v2035_v20 }
 0x299   :  { %v2256_v15 = vpop.permute.xlu0 %2255  ;;  %1968 = vmatprep.subr.bf16.mxu0 %v5526_v27  ;;  %4565 = vmatprep.subr.msk.bf16.mxu1 %vm1125_vm4, %v2260_v62 }
 0x29a   :  { %1810 = vmatprep.mubr.bf16.mxu0 %v6959_v51  ;;  %v2263_v37 = vsel %vm1125_vm4, %v2254_v53, %v2256_v15  ;;  %v4765_v53 = vld [vmem:[%s6815_s1 + $0x28] sm:$0xff]  }
 0x29b   :  { %4553 = vmatmul.mubr.msk.bf16.vlgmr.msra.gmra.mxu1 %vm1579_vm9, %v4753_v38  ;;  %v2250_v18 = vpop.permute.xlu1 %2249 }
 0x29c   :  { %1969 = vmatpush1.bf16.msra.mxu0 %v5522_v32  ;;  %2306 = vmatpush1.bf16.msra.mxu1 %v2264_v50  ;;  %v4762_v50 = vld [vmem:[%s6817_s3 + $0x80] sm:$0xff]  }
 0x29d   :  { %v2252_v0 = vpop.permute.xlu0 %2251  ;;  %1970 = vmatprep.subr.bf16.mxu0 %v5494_v35  ;;  %4566 = vmatprep.subr.msk.bf16.mxu1 %vm1125_vm4, %v2256_v15 }
 0x29e   :  { %2113 = vmatprep.mubr.bf16.mxu1 %v6959_v51  ;;  %v2262_v59 = vsel %vm1125_vm4, %v2250_v18, %v2252_v0 }
 0x29f   :  { %4530 = vmatmul.mubr.msk.bf16.gmra.mxu0 %vm1579_vm9, %v4754_v36  ;;  %v2246_v27 = vpop.permute.xlu1 %2245 }
 0x2a0   :  { %1971 = vmatpush1.bf16.msra.mxu0 %v5487_v48  ;;  %2308 = vmatpush1.bf16.msra.mxu1 %v2263_v37 }
 0x2a1   :  { %v2248_v32 = vpop.permute.xlu0 %2247  ;;  %1972 = vmatprep.subr.bf16.mxu0 %v5464_v34  ;;  %4567 = vmatprep.subr.msk.bf16.mxu1 %vm1125_vm4, %v2252_v0 }
 0x2a2   :  { %1990 = vmatprep.mubr.bf16.mxu0 %v6959_v51  ;;  %v2261_v5 = vsel %vm1125_vm4, %v2246_v27, %v2248_v32  ;;  %v4766_v27 = vld [vmem:[%s6815_s1 + $0x30] sm:$0xff]  }
 0x2a3   :  { %4554 = vmatmul.mubr.msk.bf16.gmra.mxu1 %vm1579_vm9, %v4755_v46  ;;  %v2145_v35 = vpop.permute.xlu1 %2144 }
 0x2a4   :  { %1973 = vmatpush1.bf16.msra.mxu0 %v5458_v12  ;;  %2310 = vmatpush1.bf16.msra.mxu1 %v2262_v59 }
 0x2a5   :  { %v2143_v48 = vpop.permute.xlu0 %2142  ;;  %4568 = vmatprep.subr.msk.bf16.mxu1 %vm1125_vm4, %v2248_v32  ;;  %2329 = vmatprep.mubr.bf16.mxu1 %v6959_v51 }
 0x2a7   :  { %4545 = vmatmul.mubr.msk.bf16.vlgmr.msra.gmra.mxu0 %vm1579_vm9, %v4756_v56  ;;  %v2141_v34 = vpop.permute.xlu1 %2140 }
 0x2a8   :  { %2312 = vmatpush1.bf16.msra.mxu1 %v2261_v5  ;;  %2000 = vmatprep.mubr.bf16.mxu0 %v6959_v51  ;;  %v2150_v9 = vsel %vm993_vm3, %v2141_v34, %v2143_v48  ;;  %v4767_v34 = vld [vmem:[%s6815_s1 + $0x38] sm:$0xff]  }
 0x2a9   :  { %v2147_v63 = vpop.permute.xlu0 %2146 }
 0x2aa   :  { %v2151_v12 = vsel %vm993_vm3, %v2145_v35, %v2147_v63  ;;  %4557 = vmatprep.subr.msk.bf16.mxu0 %vm993_vm3, %v2147_v63  ;;  %v4763_v35 = vld [vmem:[%s6817_s3 + $0x88] sm:$0xff]  }
 0x2ab   :  { %2193 = vmatpush1.bf16.msra.mxu0 %v2151_v12  ;;  %4569 = vmatmul.mubr.msk.bf16.vlgmr.msra.gmra.mxu1 %vm1579_vm9, %v4757_v29  ;;  %v2137_v2 = vpop.permute.xlu1 %2136  ;;  %v4769_v29 = vld [vmem:[%s6815_s1 + $0x40] sm:$0xff]   ;;  %v4770_v12 = vld [vmem:[%s6815_s1 + $0x8] sm:$0xff]  }
 0x2ac   :  { %4558 = vmatprep.subr.msk.bf16.mxu0 %vm993_vm3, %v2143_v48  ;;  %2339 = vmatprep.mubr.bf16.mxu1 %v6959_v51 }
 0x2ad   :  { %v2139_v31 = vpop.permute.xlu0 %2138 }
 0x2ae   :  { %v2149_v60 = vsel %vm993_vm3, %v2137_v2, %v2139_v31  ;;  %v4771_v2 = vld [vmem:[%s6815_s1 + $0x48] sm:$0xff]  }
 0x2af   :  { %4546 = vmatmul.mubr.msk.bf16.gmra.mxu0 %vm1579_vm9, %v4758_v43  ;;  %v2133_v7 = vpop.permute.xlu1 %2132  ;;  %v4773_v43 = vld [vmem:[%s6815_s1 + $0x50] sm:$0xff]  }
 0x2b0   :  { %2195 = vmatpush1.bf16.msra.mxu0 %v2150_v9  ;;  %2216 = vmatprep.mubr.bf16.mxu0 %v6959_v51  ;;  %v4774_v9 = vld [vmem:[%s6815_s1 + $0x18] sm:$0xff]  }
 0x2b1   :  { %4559 = vmatprep.subr.msk.bf16.mxu0 %vm993_vm3, %v2139_v31  ;;  %v2135_v57 = vpop.permute.xlu0 %2134 }
 0x2b2   :  { %v2148_v1 = vsel %vm993_vm3, %v2133_v7, %v2135_v57  ;;  %v4775_v7 = vld [vmem:[%s6815_s1 + $0x58] sm:$0xff]  }
 0x2b3   :  { %4570 = vmatmul.mubr.msk.bf16.gmra.mxu1 %vm1579_vm9, %v4759_v54  ;;  %v2540_v19 = vpop.permute.xlu1 %2539 }
 0x2b4   :  { %2197 = vmatpush1.bf16.msra.mxu0 %v2149_v60  ;;  %2580 = vmatprep.mubr.bf16.mxu1 %v6959_v51 }
 0x2b5   :  { %4560 = vmatprep.subr.msk.bf16.mxu0 %vm993_vm3, %v2135_v57  ;;  %v2542_v14 = vpop.permute.xlu0 %2541 }
 0x2b6   :  { %v2543_v40 = vsel %vm253_vm10, %v2540_v19, %v2542_v14  ;;  %v4776_v14 = vld [vmem:[%s6815_s1 + $0x60] sm:$0xff]  }
 0x2b7   :  { %2562 = vmatprep.subr.bf16.mxu1 %v2543_v40  ;;  %v2371_v4 = vpop.permute.xlu1 %2370  ;;  %v4777_v40 = vld [vmem:[%s6815_s1 + $0x80] sm:$0xff]  }
 0x2b8   :  { %2199 = vmatpush1.bf16.msra.mxu0 %v2148_v1  ;;  %4584 = vmatpush1.bf16.msk.msra.mxu1 %vm4948_vm11, %v2540_v19 }
 0x2b9   :  { %v2373_v25 = vpop.permute.xlu0 %2372 }
 0x2ba   :  { %v2377_v42 = vsel %vm6855_vm5, %v2371_v4, %v2373_v25  ;;  %4573 = vmatprep.subr.msk.bf16.mxu0 %vm6855_vm5, %v2373_v25  ;;  %v4778_v4 = vld [vmem:[%s6815_s1 + $0x68] sm:$0xff]   ;;  %v4780_v25 = vld [vmem:[%s6815_s1 + $0x70] sm:$0xff]  }
 0x2bb   :  { %4561 = vmatmul.mubr.msk.bf16.vlgmr.msra.gmra.mxu0 %vm1579_vm9, %v4760_v22  ;;  %4585 = vmatmul.mubr.msk.bf16.vlgmr.msra.gmra.mxu1 %vm253_vm10, %v4764_v44  ;;  %v2367_v47 = vpop.permute.xlu1 %2366  ;;  %v4779_v22 = vld [vmem:[%s6815_s1 + $0x88] sm:$0xff]  }
 0x2bc   :  { %2419 = vmatpush1.bf16.msra.mxu0 %v2377_v42  ;;  %2226 = vmatprep.mubr.bf16.mxu0 %v6959_v51  ;;  %v4781_v42 = vld [vmem:[%s6815_s1 + $0x90] sm:$0xff]  }
 0x2bd   :  { %v2369_v33 = vpop.permute.xlu0 %2368  ;;  %2590 = vmatprep.mubr.bf16.mxu1 %v6959_v51 }
 0x2be   :  { %v2376_v61 = vsel %vm6855_vm5, %v2367_v47, %v2369_v33  ;;  %4574 = vmatprep.subr.msk.bf16.mxu0 %vm6855_vm5, %v2369_v33  ;;  %v4782_v47 = vld [vmem:[%s6815_s1 + $0x78] sm:$0xff]  }
 0x2bf   :  { %v2363_v28 = vpop.permute.xlu1 %2362  ;;  %v4783_v33 = vld [vmem:[%s6815_s1 + $0x98] sm:$0xff]  }
 0x2c0   :  { %2421 = vmatpush1.bf16.msra.mxu0 %v2376_v61 }
 0x2c1   :  { %v2365_v17 = vpop.permute.xlu0 %2364 }
 0x2c2   :  { %v2375_v62 = vsel %vm6855_vm5, %v2363_v28, %v2365_v17  ;;  %4575 = vmatprep.subr.msk.bf16.mxu0 %vm6855_vm5, %v2365_v17  ;;  %v4784_v17 = vld [vmem:[%s6815_s1 + $0xa0] sm:$0xff]  }
 0x2c3   :  { %4562 = vmatmul.mubr.msk.bf16.gmra.mxu0 %vm1579_vm9, %v4761_v39  ;;  %4586 = vmatmul.mubr.msk.bf16.gmra.mxu1 %vm253_vm10, %v4765_v53  ;;  %v2359_v20 = vpop.permute.xlu1 %2358  ;;  %v4786_v53 = vld [vmem:[%s6815_s1 + $0xa8] sm:$0xff]  }
 0x2c4   :  { %2423 = vmatpush1.bf16.msra.mxu0 %v2375_v62  ;;  %2442 = vmatprep.mubr.bf16.mxu0 %v6959_v51  ;;  %v4785_v62 = vld [vmem:[%s6815_s1 + $0xc0] sm:$0xff]  }
 0x2c5   :  { %v2361_v38 = vpop.permute.xlu0 %2360  ;;  %2600 = vmatprep.mubr.bf16.mxu1 %v6959_v51 }
 0x2c6   :  { %v2374_v15 = vsel %vm6855_vm5, %v2359_v20, %v2361_v38  ;;  %4576 = vmatprep.subr.msk.bf16.mxu0 %vm6855_vm5, %v2361_v38  ;;  %v4787_v20 = vld [vmem:[%s6815_s1 + $0xc8] sm:$0xff]   ;;  %v4788_v38 = vld [vmem:[%s6815_s1 + $0xb0] sm:$0xff]  }
 0x2c7   :  { %v2529_v18 = vpop.permute.xlu1 %2528 }
 0x2c8   :  { %2425 = vmatpush1.bf16.msra.mxu0 %v2374_v15 }
 0x2c9   :  { %v2531_v36 = vpop.permute.xlu0 %2530 }
 0x2ca   :  { %v2532_v0 = vsel %vm239_vm12, %v2529_v18, %v2531_v36 }
 0x2cb   :  { %4577 = vmatmul.mubr.msk.bf16.vlgmr.msra.gmra.mxu0 %vm1579_vm9, %v4762_v50  ;;  %4587 = vmatmul.mubr.msk.bf16.gmra.mxu1 %vm253_vm10, %v4766_v27  ;;  %v2697_v37 = vpop.permute.xlu1 %2696  ;;  %v4790_v27 = vld [vmem:[%s6815_s1 + $0xb8] sm:$0xff]  }
 0x2cc   :  { %2635 = vmatprep.subr.bf16.mxu0 %v2532_v0  ;;  %2452 = vmatprep.mubr.bf16.mxu0 %v6959_v51 }
 0x2cd   :  { %4590 = vmatpush1.bf16.msk.msra.mxu0 %vm4964_vm13, %v2529_v18  ;;  %v2699_v46 = vpop.permute.xlu0 %2698  ;;  %2610 = vmatprep.mubr.bf16.mxu1 %v6959_v51  ;;  %v4789_v18 = vld [vmem:[%s6815_s1 + $0xd0] sm:$0xff]  }
 0x2ce   :  { %v2700_v32 = vsel %vm476_vm14, %v2697_v37, %v2699_v46  ;;  %v4791_v46 = vld [vmem:[%s6815_s1 + $0xd8] sm:$0xff]  }
 0x2cf   :  { %2719 = vmatprep.subr.bf16.mxu1 %v2700_v32  ;;  %v2795_v59 = vpop.permute.xlu1 %2794 }
 0x2d0   :  { %4596 = vmatpush1.bf16.msk.msra.mxu1 %vm4977_vm15, %v2697_v37 }
 0x2d1   :  { %v2797_v56 = vpop.permute.xlu0 %2796  ;;  %2906 = vmatprep.subr.bf16.mxu1 %v5658_v49  ;;  %v4768_v49 = vld [vmem:[%s6815_s1] sm:$0xff]  }
 0x2d2   :  { %v2798_v48 = vsel %vm608_vm0, %v2795_v59, %v2797_v56  ;;  %v4792_v56 = vld [vmem:[%s6815_s1 + $0xe0] sm:$0xff]  }
 0x2d3   :  { %4578 = vmatmul.mubr.msk.bf16.gmra.mxu0 %vm1579_vm9, %v4763_v35  ;;  %4588 = vmatmul.mubr.msk.bf16.gmra.mxu1 %vm253_vm10, %v4767_v34  ;;  %v2982_v31 = vpop.permute.xlu1 %2981  ;;  %v4793_v34 = vld [vmem:[%s6815_s1 + $0x100] sm:$0xff]  }
 0x2d4   :  { %2653 = vmatprep.mubr.bf16.mxu0 %v6959_v51  ;;  %2737 = vmatprep.mubr.bf16.mxu1 %v6959_v51 }
 0x2d5   :  { %2817 = vmatprep.subr.bf16.mxu0 %v2798_v48  ;;  %v2984_v5 = vpop.permute.xlu0 %2983 }
 0x2d6   :  { %v2985_v60 = vsel %vm861_vm2, %v2982_v31, %v2984_v5  ;;  %v4795_v31 = vld [vmem:[%s6815_s1 + $0x108] sm:$0xff]  }
 0x2d7   :  { %v3080_v57 = vpop.permute.xlu1 %3079 }
 0x2d9   :  { %v3082_v63 = vpop.permute.xlu0 %3081 }
 0x2da   :  { %v3083_v19 = vsel %vm993_vm3, %v3080_v57, %v3082_v63 }
 0x2db   :  { %4591 = vmatmul.mubr.msk.bf16.vlgmr.msra.gmra.mxu0 %vm253_vm10, %v4768_v49  ;;  %4597 = vmatmul.mubr.msk.bf16.vlgmr.msra.gmra.mxu1 %vm253_vm10, %v4769_v29  ;;  %v3178_v44 = vpop.permute.xlu1 %3177 }
 0x2dc   :  { %2663 = vmatprep.mubr.bf16.mxu0 %v6959_v51  ;;  %2747 = vmatprep.mubr.bf16.mxu1 %v6959_v51 }
 0x2dd   :  { %4602 = vmatpush1.bf16.msk.msra.mxu0 %vm4990_vm1, %v2795_v59  ;;  %2907 = vmatpush1.bf16.msra.mxu1 %v5655_v16  ;;  %v4772_v16 = vld [vmem:[%s6815_s1 + $0x10] sm:$0xff]  }
 0x2de   :  { %4611 = vmatprep.subr.msk.bf16.mxu0 %vm861_vm2, %v2984_v5  ;;  %4616 = vmatprep.subr.msk.bf16.mxu1 %vm993_vm3, %v3082_v63 }
 0x2df   :  { %v3180_v54 = vpop.permute.xlu0 %3179 }
 0x2e0   :  { %v3276_v61 = vpop.permute.xlu1 %3275  ;;  %v3181_v28 = vsel %vm1125_vm4, %v3178_v44, %v3180_v54 }
 0x2e3   :  { %4592 = vmatmul.mubr.msk.bf16.gmra.mxu0 %vm253_vm10, %v4770_v12  ;;  %4598 = vmatmul.mubr.msk.bf16.gmra.mxu1 %vm253_vm10, %v4771_v2  ;;  %v3278_v1 = vpop.permute.xlu0 %3277 }
 0x2e4   :  { %2673 = vmatprep.mubr.bf16.mxu0 %v6959_v51  ;;  %2757 = vmatprep.mubr.bf16.mxu1 %v6959_v51  ;;  %v3279_v39 = vsel %vm6855_vm5, %v3276_v61, %v3278_v1 }
 0x2eb   :  { %4593 = vmatmul.mubr.msk.bf16.gmra.mxu0 %vm253_vm10, %v4772_v16  ;;  %4599 = vmatmul.mubr.msk.bf16.gmra.mxu1 %vm253_vm10, %v4773_v43  ;;  %v4794_v16 = vld [vmem:[%s6815_s1 + $0xe8] sm:$0xff]  }
 0x2ec   :  { %2683 = vmatprep.mubr.bf16.mxu0 %v6959_v51  ;;  %2767 = vmatprep.mubr.bf16.mxu1 %v6959_v51 }
 0x2f3   :  { %4594 = vmatmul.mubr.msk.bf16.gmra.mxu0 %vm253_vm10, %v4774_v9  ;;  %4600 = vmatmul.mubr.msk.bf16.gmra.mxu1 %vm253_vm10, %v4775_v7 }
 0x2f4   :  { %2835 = vmatprep.mubr.bf16.mxu0 %v6959_v51  ;;  %2924 = vmatprep.mubr.bf16.mxu1 %v6959_v51 }
 0x2fb   :  { %4603 = vmatmul.mubr.msk.bf16.vlgmr.msra.gmra.mxu0 %vm253_vm10, %v4776_v14  ;;  %4607 = vmatmul.mubr.msk.bf16.vlgmr.msra.gmra.mxu1 %vm253_vm10, %v4777_v40  ;;  %v4796_v14 = vld [vmem:[%s6815_s1 + $0xf0] sm:$0xff]  }
 0x2fc   :  { %2845 = vmatprep.mubr.bf16.mxu0 %v6959_v51  ;;  %2934 = vmatprep.mubr.bf16.mxu1 %v6959_v51 }
 0x2fd   :  { %3005 = vmatpush1.bf16.msra.mxu0 %v2985_v60  ;;  %3103 = vmatpush1.bf16.msra.mxu1 %v3083_v19 }
 0x2fe   :  { %4621 = vmatprep.subr.msk.bf16.mxu0 %vm1125_vm4, %v3180_v54  ;;  %4626 = vmatprep.subr.msk.bf16.mxu1 %vm6855_vm5, %v3278_v1  ;;  %v4797_v1 = vld [vmem:[%s6815_s1 + $0x110] sm:$0xff]  }
 0x303   :  { %4604 = vmatmul.mubr.msk.bf16.gmra.mxu0 %vm253_vm10, %v4778_v4  ;;  %4608 = vmatmul.mubr.msk.bf16.gmra.mxu1 %vm253_vm10, %v4779_v22 }
 0x304   :  { %2855 = vmatprep.mubr.bf16.mxu0 %v6959_v51  ;;  %2944 = vmatprep.mubr.bf16.mxu1 %v6959_v51 }
 0x30b   :  { %4605 = vmatmul.mubr.msk.bf16.gmra.mxu0 %vm253_vm10, %v4780_v25  ;;  %4609 = vmatmul.mubr.msk.bf16.gmra.mxu1 %vm253_vm10, %v4781_v42  ;;  %v4798_v42 = vld [vmem:[%s6815_s1 + $0xf8] sm:$0xff]  }
 0x30c   :  { %2865 = vmatprep.mubr.bf16.mxu0 %v6959_v51  ;;  %2954 = vmatprep.mubr.bf16.mxu1 %v6959_v51 }
 0x313   :  { %4606 = vmatmul.mubr.msk.bf16.gmra.mxu0 %vm253_vm10, %v4782_v47  ;;  %4610 = vmatmul.mubr.msk.bf16.gmra.mxu1 %vm253_vm10, %v4783_v33  ;;  %v4799_v47 = vld [vmem:[%s6815_s1 + $0x118] sm:$0xff]  }
 0x314   :  { %3022 = vmatprep.mubr.bf16.mxu0 %v6959_v51  ;;  %3120 = vmatprep.mubr.bf16.mxu1 %v6959_v51 }
 0x31b   :  { %4612 = vmatmul.mubr.msk.bf16.vlgmr.msra.gmra.mxu0 %vm253_vm10, %v4784_v17  ;;  %4617 = vmatmul.mubr.msk.bf16.vlgmr.msra.gmra.mxu1 %vm253_vm10, %v4785_v62 }
 0x31c   :  { %3032 = vmatprep.mubr.bf16.mxu0 %v6959_v51  ;;  %3130 = vmatprep.mubr.bf16.mxu1 %v6959_v51 }
 0x31d   :  { %3201 = vmatpush1.bf16.msra.mxu0 %v3181_v28  ;;  %3299 = vmatpush1.bf16.msra.mxu1 %v3279_v39 }
 0x323   :  { %4613 = vmatmul.mubr.msk.bf16.gmra.mxu0 %vm253_vm10, %v4786_v53  ;;  %4618 = vmatmul.mubr.msk.bf16.gmra.mxu1 %vm253_vm10, %v4787_v20 }
 0x324   :  { %3042 = vmatprep.mubr.bf16.mxu0 %v6959_v51  ;;  %3140 = vmatprep.mubr.bf16.mxu1 %v6959_v51 }
 0x32b   :  { %4614 = vmatmul.mubr.msk.bf16.gmra.mxu0 %vm253_vm10, %v4788_v38  ;;  %v1620_v15 = vpop.f32.mrf.mxu1  ;;  %4619 = vmatmul.mubr.msk.bf16.gmra.mxu1 %vm253_vm10, %v4789_v18 }
 0x32c   :  { %3052 = vmatprep.mubr.bf16.mxu0 %v6959_v51  ;;  %3150 = vmatprep.mubr.bf16.mxu1 %v6959_v51 }
 0x32d   :  { %v1622_v50 = vpop.f32.mrf.mxu1 }
 0x32f   :  { %v1624_v36 = vpop.f32.mrf.mxu1 }
 0x331   :  { %v6037_v0 = vpop.f32.mrf.mxu1 }
 0x333   :  { %4615 = vmatmul.mubr.msk.bf16.gmra.mxu0 %vm253_vm10, %v4790_v27  ;;  %v1630_v37 = vpop.f32.mrf.mxu1  ;;  %4620 = vmatmul.mubr.msk.bf16.gmra.mxu1 %vm253_vm10, %v4791_v46 }
 0x334   :  { %3218 = vmatprep.mubr.bf16.mxu0 %v6959_v51  ;;  %3316 = vmatprep.mubr.bf16.mxu1 %v6959_v51 }
 0x335   :  { %v1632_v32 = vpop.f32.mrf.mxu1 }
 0x337   :  { %v1634_v35 = vpop.f32.mrf.mxu1 }
 0x339   :  { %v6049_v59 = vpop.f32.mrf.mxu1 }
 0x33b   :  { %4622 = vmatmul.mubr.msk.bf16.vlgmr.msra.gmra.mxu0 %vm253_vm10, %v4792_v56  ;;  %v1689_v48 = vpop.f32.mrf.mxu1  ;;  %4627 = vmatmul.mubr.msk.bf16.vlgmr.msra.gmra.mxu1 %vm253_vm10, %v4793_v34 }
 0x33c   :  { %v1690_v5 = vadd.f32 %v1689_v48, %v1620_v15  ;;  %3228 = vmatprep.mubr.bf16.mxu0 %v6959_v51  ;;  %3326 = vmatprep.mubr.bf16.mxu1 %v6959_v51 }
 0x33d   :  { %v1691_v49 = vpop.f32.mrf.mxu1 }
 0x33e   :  { %v1692_v29 = vadd.f32 %v1691_v49, %v1622_v50 }
 0x33f   :  { %v1693_v63 = vpop.f32.mrf.mxu1 }
 0x340   :  { %v1694_v12 = vadd.f32 %v1693_v63, %v1624_v36 }
 0x341   :  { %v6061_v2 = vpop.f32.mrf.mxu1 }
 0x343   :  { %4623 = vmatmul.mubr.msk.bf16.gmra.mxu0 %vm253_vm10, %v4794_v16  ;;  %v1699_v43 = vpop.f32.mrf.mxu1  ;;  %4628 = vmatmul.mubr.msk.bf16.gmra.mxu1 %vm253_vm10, %v4795_v31 }
 0x344   :  { %v1700_v9 = vadd.f32 %v1699_v43, %v1630_v37  ;;  %3238 = vmatprep.mubr.bf16.mxu0 %v6959_v51  ;;  %3336 = vmatprep.mubr.bf16.mxu1 %v6959_v51 }
 0x345   :  { %v1701_v7 = vpop.f32.mrf.mxu1 }
 0x346   :  { %v1702_v54 = vadd.f32 %v1701_v7, %v1632_v32 }
 0x347   :  { %v1703_v57 = vpop.f32.mrf.mxu1 }
 0x348   :  { %v1704_v60 = vadd.f32 %v1703_v57, %v1634_v35 }
 0x349   :  { %v6073_v19 = vpop.f32.mrf.mxu1 }
 0x34b   :  { %4624 = vmatmul.mubr.msk.bf16.gmra.mxu0 %vm253_vm10, %v4796_v14  ;;  %v1915_v40 = vpop.f32.mrf.mxu1  ;;  %4629 = vmatmul.mubr.msk.bf16.gmra.mxu1 %vm253_vm10, %v4797_v1 }
 0x34c   :  { %3248 = vmatprep.mubr.bf16.mxu0 %v6959_v51  ;;  %3346 = vmatprep.mubr.bf16.mxu1 %v6959_v51 }
 0x34d   :  { %v1917_v4 = vpop.f32.mrf.mxu1 }
 0x34f   :  { %v1919_v22 = vpop.f32.mrf.mxu1 }
 0x351   :  { %v6085_v25 = vpop.f32.mrf.mxu1 }
 0x353   :  { %4625 = vmatmul.mubr.msk.bf16.gmra.mxu0 %vm253_vm10, %v4798_v42  ;;  %v1925_v44 = vpop.f32.mrf.mxu1  ;;  %4630 = vmatmul.mubr.msk.bf16.gmra.mxu1 %vm253_vm10, %v4799_v47 }
 0x354   :  { %3549 = vmatprep.mubr.bf16.mxu0 %v6959_v51  ;;  %3699 = vmatprep.mubr.bf16.mxu1 %v6959_v51 }
 0x355   :  { %v1927_v33 = vpop.f32.mrf.mxu1 }
 0x357   :  { %v1802_v61 = vpop.f32.mrf.mxu0  ;;  %v1929_v28 = vpop.f32.mrf.mxu1 }
 0x358   :  { %v1821_v39 = vadd.f32 %v1802_v61, %v1690_v5 }
 0x359   :  { %v1804_v17 = vpop.f32.mrf.mxu0  ;;  %v6097_v62 = vpop.f32.mrf.mxu1 }
 0x35a   :  { %v1822_v53 = vadd.f32 %v1804_v17, %v1692_v29  ;;  %v1934_v20 = vadd.f32 %v1915_v40, %v1821_v39 }
 0x35b   :  { %v1806_v38 = vpop.f32.mrf.mxu0  ;;  %v2105_v15 = vpop.f32.mrf.mxu1 }
 0x35c   :  { %v1823_v18 = vadd.f32 %v1806_v38, %v1694_v12  ;;  %v1935_v50 = vadd.f32 %v1917_v4, %v1822_v53 }
 0x35d   :  { %v1808_v36 = vpop.f32.mrf.mxu0  ;;  %v2107_v27 = vpop.f32.mrf.mxu1 }
 0x35e   :  { %v1936_v37 = vadd.f32 %v1919_v22, %v1823_v18 }
 0x35f   :  { %v1812_v46 = vpop.f32.mrf.mxu0  ;;  %v2109_v32 = vpop.f32.mrf.mxu1 }
 0x360   :  { %v1825_v35 = vadd.f32 %v1812_v46, %v1700_v9 }
 0x361   :  { %v1814_v56 = vpop.f32.mrf.mxu0  ;;  %v6099_v48 = vpop.f32.mrf.mxu1 }
 0x362   :  { %v1826_v34 = vadd.f32 %v1814_v56, %v1702_v54  ;;  %v1938_v5 = vadd.f32 %v1925_v44, %v1825_v35 }
 0x363   :  { %v1816_v49 = vpop.f32.mrf.mxu0  ;;  %v2115_v63 = vpop.f32.mrf.mxu1 }
 0x364   :  { %v1827_v16 = vadd.f32 %v1816_v49, %v1704_v60  ;;  %v1939_v29 = vadd.f32 %v1927_v33, %v1826_v34 }
 0x365   :  { %v1818_v43 = vpop.f32.mrf.mxu0  ;;  %v2117_v31 = vpop.f32.mrf.mxu1 }
 0x366   :  { %v1940_v7 = vadd.f32 %v1929_v28, %v1827_v16 }
 0x367   :  { %v1992_v12 = vpop.f32.mrf.mxu0  ;;  %v2119_v57 = vpop.f32.mrf.mxu1 }
 0x368   :  { %v2011_v14 = vadd.f32 %v1992_v12, %v1934_v20 }
 0x369   :  { %v1994_v40 = vpop.f32.mrf.mxu0  ;;  %v6101_v1 = vpop.f32.mrf.mxu1 }
 0x36a   :  { %v2012_v4 = vadd.f32 %v1994_v40, %v1935_v50  ;;  %v2124_v9 = vadd.f32 %v2105_v15, %v2011_v14 }
 0x36b   :  { %v1996_v22 = vpop.f32.mrf.mxu0  ;;  %v2331_v42 = vpop.f32.mrf.mxu1 }
 0x36c   :  { %v2013_v47 = vadd.f32 %v1996_v22, %v1936_v37  ;;  %v2125_v54 = vadd.f32 %v2107_v27, %v2012_v4 }
 0x36d   :  { %v1998_v44 = vpop.f32.mrf.mxu0  ;;  %v2333_v61 = vpop.f32.mrf.mxu1 }
 0x36e   :  { %v2126_v39 = vadd.f32 %v2109_v32, %v2013_v47 }
 0x36f   :  { %v2002_v60 = vpop.f32.mrf.mxu0  ;;  %v2335_v33 = vpop.f32.mrf.mxu1 }
 0x370   :  { %v2015_v17 = vadd.f32 %v2002_v60, %v1938_v5 }
 0x371   :  { %v2004_v53 = vpop.f32.mrf.mxu0  ;;  %v2337_v28 = vpop.f32.mrf.mxu1 }
 0x372   :  { %v2016_v38 = vadd.f32 %v2004_v53, %v1939_v29  ;;  %v2128_v18 = vadd.f32 %v2115_v63, %v2015_v17  ;;  %v1696_v63 = vadd.f32 %v6061_v2, %v6037_v0  ;;  %v1706_v2 = vadd.f32 %v6073_v19, %v6049_v59 }
 0x373   :  { %v2006_v20 = vpop.f32.mrf.mxu0  ;;  %v2341_v46 = vpop.f32.mrf.mxu1 }
 0x374   :  { %v2017_v35 = vadd.f32 %v2006_v20, %v1940_v7  ;;  %v2129_v56 = vadd.f32 %v2117_v31, %v2016_v38 }
 0x375   :  { %v2343_v50 = vpop.f32.mrf.mxu1  ;;  %v2008_v49 = vpop.f32.mrf.mxu0 }
 0x376   :  { %v2130_v15 = vadd.f32 %v2119_v57, %v2017_v35  ;;  %v1824_v57 = vadd.f32 %v1808_v36, %v1696_v63  ;;  %v1828_v35 = vadd.f32 %v1818_v43, %v1706_v2 }
 0x377   :  { %v2345_v34 = vpop.f32.mrf.mxu1 }
 0x378   :  { %v1937_v53 = vadd.f32 %v6085_v25, %v1824_v57  ;;  %v1941_v59 = vadd.f32 %v6097_v62, %v1828_v35 }
 0x379   :  { %v6103_v37 = vpop.f32.mrf.mxu1 }
 0x37a   :  { %v2018_v43 = vadd.f32 %v2008_v49, %v1941_v59 }
 0x37b   :  { %v2218_v27 = vpop.f32.mrf.mxu0  ;;  %v6105_v16 = vpop.f32.mrf.mxu1 }
 0x37c   :  { %v2237_v32 = vadd.f32 %v2218_v27, %v2124_v9  ;;  %v2131_v62 = vadd.f32 %v6101_v1, %v2018_v43 }
 0x37d   :  { %v2220_v12 = vpop.f32.mrf.mxu0  ;;  %v6107_v5 = vpop.f32.mrf.mxu1 }
 0x37e   :  { %v2238_v29 = vadd.f32 %v2220_v12, %v2125_v54  ;;  %v2350_v14 = vadd.f32 %v2331_v42, %v2237_v32  ;;  %v2014_v42 = vadd.f32 %v1998_v44, %v1937_v53 }
 0x37f   :  { %v2222_v7 = vpop.f32.mrf.mxu0  ;;  %v6111_v31 = vpop.f32.mrf.mxu1 }
 0x380   :  { %v2239_v40 = vadd.f32 %v2222_v7, %v2126_v39  ;;  %v2351_v4 = vadd.f32 %v2333_v61, %v2238_v29  ;;  %v2127_v25 = vadd.f32 %v6099_v48, %v2014_v42 }
 0x381   :  { %v2224_v22 = vpop.f32.mrf.mxu0  ;;  %v6113_v47 = vpop.f32.mrf.mxu1 }
 0x382   :  { %v2352_v60 = vadd.f32 %v2335_v33, %v2239_v40  ;;  %v2240_v19 = vadd.f32 %v2224_v22, %v2127_v25 }
 0x383   :  { %v2228_v17 = vpop.f32.mrf.mxu0  ;;  %v6115_v9 = vpop.f32.mrf.mxu1 }
 0x384   :  { %v2241_v38 = vadd.f32 %v2228_v17, %v2128_v18  ;;  %v2353_v48 = vadd.f32 %v2337_v28, %v2240_v19 }
 0x385   :  { %v2230_v20 = vpop.f32.mrf.mxu0  ;;  %v6118_v0 = vpop.f32.mrf.mxu1 }
 0x386   :  { %v2242_v36 = vadd.f32 %v2230_v20, %v2129_v56  ;;  %v2354_v54 = vadd.f32 %v2341_v46, %v2241_v38 }
 0x387   :  { %v2232_v61 = vpop.f32.mrf.mxu0  ;;  %v6122_v39 = vpop.f32.mrf.mxu1 }
 0x388   :  { %v2243_v33 = vadd.f32 %v2232_v61, %v2130_v15  ;;  %v2355_v27 = vadd.f32 %v2343_v50, %v2242_v36 }
 0x389   :  { %v2234_v32 = vpop.f32.mrf.mxu0  ;;  %v6124_v12 = vpop.f32.mrf.mxu1 }
 0x38a   :  { %v2356_v18 = vadd.f32 %v2345_v34, %v2243_v33  ;;  %v2244_v53 = vadd.f32 %v2234_v32, %v2131_v62 }
 0x38b   :  { %v2444_v63 = vpop.f32.mrf.mxu0  ;;  %v6127_v29 = vpop.f32.mrf.mxu1 }
 0x38c   :  { %v6130_v44 = vadd.f32 %v2444_v63, %v2350_v14  ;;  %v2357_v1 = vadd.f32 %v6103_v37, %v2244_v53 }
 0x38d   :  { %v2446_v46 = vpop.f32.mrf.mxu0  ;;  %v6132_v56 = vpop.f32.mrf.mxu1 }
 0x38e   :  { %6962 = vst [vmem:[#allocation37_spill] sm:$0xff] %v6130_v44  ;;  %v6134_v15 = vadd.f32 %v2446_v46, %v2351_v4 }
 0x38f   :  { %v2448_v50 = vpop.f32.mrf.mxu0  ;;  %v6136_v7 = vpop.f32.mrf.mxu1 }
 0x390   :  { %6963 = vst [vmem:[#allocation45_spill] sm:$0xff] %v6134_v15  ;;  %v6138_v57 = vadd.f32 %v2448_v50, %v2352_v60 }
 0x391   :  { %v2450_v34 = vpop.f32.mrf.mxu0  ;;  %v6140_v40 = vpop.f32.mrf.mxu1 }
 0x392   :  { %6964 = vst [vmem:[#allocation13_spill] sm:$0xff] %v6138_v57  ;;  %v6143_v22 = vadd.f32 %v2450_v34, %v2353_v48 }
 0x393   :  { %v2454_v14 = vpop.f32.mrf.mxu0  ;;  %v6145_v17 = vpop.f32.mrf.mxu1 }
 0x394   :  { %6965 = vst [vmem:[#allocation15_spill] sm:$0xff] %v6143_v22  ;;  %v6147_v49 = vadd.f32 %v2454_v14, %v2354_v54 }
 0x395   :  { %v2456_v4 = vpop.f32.mrf.mxu0  ;;  %v6149_v38 = vpop.f32.mrf.mxu1 }
 0x396   :  { %6966 = vst [vmem:[#allocation18_spill] sm:$0xff] %v6147_v49  ;;  %v6151_v20 = vadd.f32 %v2456_v4, %v2355_v27 }
 0x397   :  { %v2458_v60 = vpop.f32.mrf.mxu0  ;;  %v6153_v28 = vpop.f32.mrf.mxu1 }
 0x398   :  { %6967 = vst [vmem:[#allocation23_spill] sm:$0xff] %v6151_v20  ;;  %v6155_v2 = vadd.f32 %v2458_v60, %v2356_v18 }
 0x399   :  { %v2460_v42 = vpop.f32.mrf.mxu0  ;;  %v6158_v36 = vpop.f32.mrf.mxu1 }
 0x39a   :  { %6968 = vst [vmem:[#allocation25_spill] sm:$0xff] %v6155_v2  ;;  %v6160_v61 = vadd.f32 %v2460_v42, %v2357_v1 }
 0x39b   :  { %v2655_v35 = vpop.f32.mrf.mxu0  ;;  %v2739_v54 = vpop.f32.mrf.mxu1 }
 0x39c   :  { %6969 = vst [vmem:[#allocation48_spill] sm:$0xff] %v6160_v61  ;;  %v2656_v33 = vadd.f32 %v2655_v35, %v6105_v16 }
 0x39d   :  { %v2657_v32 = vpop.f32.mrf.mxu0  ;;  %v2741_v25 = vpop.f32.mrf.mxu1 }
 0x39e   :  { %v6163_v27 = vadd.f32 %v2739_v54, %v2656_v33  ;;  %v2658_v63 = vadd.f32 %v2657_v32, %v6107_v5 }
 0x39f   :  { %v2659_v59 = vpop.f32.mrf.mxu0  ;;  %v2743_v18 = vpop.f32.mrf.mxu1 }
 0x3a0   :  { %v6166_v19 = vadd.f32 %v2741_v25, %v2658_v63  ;;  %v2660_v37 = vadd.f32 %v2659_v59, %v6111_v31 }
 0x3a1   :  { %v2661_v46 = vpop.f32.mrf.mxu0  ;;  %v2745_v43 = vpop.f32.mrf.mxu1 }
 0x3a2   :  { %v6169_v50 = vadd.f32 %v2743_v18, %v2660_v37  ;;  %v2662_v48 = vadd.f32 %v2661_v46, %v6113_v47 }
 0x3a3   :  { %v2665_v34 = vpop.f32.mrf.mxu0  ;;  %v2749_v16 = vpop.f32.mrf.mxu1 }
 0x3a4   :  { %v6172_v62 = vadd.f32 %v2745_v43, %v2662_v48  ;;  %v2666_v14 = vadd.f32 %v2665_v34, %v6115_v9 }
 0x3a5   :  { %v2667_v53 = vpop.f32.mrf.mxu0  ;;  %v2751_v5 = vpop.f32.mrf.mxu1 }
 0x3a6   :  { %v2782_v4 = vadd.f32 %v2749_v16, %v2666_v14  ;;  %v2668_v60 = vadd.f32 %v2667_v53, %v6118_v0 }
 0x3a7   :  { %v2669_v1 = vpop.f32.mrf.mxu0  ;;  %v2753_v42 = vpop.f32.mrf.mxu1 }
 0x3a8   :  { %v2783_v31 = vadd.f32 %v2751_v5, %v2668_v60  ;;  %v2670_v35 = vadd.f32 %v2669_v1, %v6122_v39 }
 0x3a9   :  { %v2671_v54 = vpop.f32.mrf.mxu0  ;;  %v2755_v33 = vpop.f32.mrf.mxu1 }
 0x3aa   :  { %v6177_v32 = vadd.f32 %v2753_v42, %v2670_v35  ;;  %v2672_v47 = vadd.f32 %v2671_v54, %v6124_v12 }
 0x3ab   :  { %v2675_v25 = vpop.f32.mrf.mxu0  ;;  %v2759_v63 = vpop.f32.mrf.mxu1 }
 0x3ac   :  { %v6180_v59 = vadd.f32 %v2755_v33, %v2672_v47  ;;  %v2676_v9 = vadd.f32 %v2675_v25, %v6127_v29 }
 0x3ad   :  { %v2677_v18 = vpop.f32.mrf.mxu0  ;;  %v2761_v37 = vpop.f32.mrf.mxu1 }
 0x3ae   :  { %v2786_v0 = vadd.f32 %v2759_v63, %v2676_v9  ;;  %v2678_v46 = vadd.f32 %v2677_v18, %v6132_v56 }
 0x3af   :  { %v2679_v43 = vpop.f32.mrf.mxu0  ;;  %v2763_v48 = vpop.f32.mrf.mxu1 }
 0x3b0   :  { %v2787_v39 = vadd.f32 %v2761_v37, %v2678_v46  ;;  %v2680_v34 = vadd.f32 %v2679_v43, %v6136_v7 }
 0x3b1   :  { %v2681_v16 = vpop.f32.mrf.mxu0  ;;  %v2765_v14 = vpop.f32.mrf.mxu1 }
 0x3b2   :  { %v2788_v53 = vadd.f32 %v2763_v48, %v2680_v34  ;;  %v2682_v12 = vadd.f32 %v2681_v16, %v6140_v40 }
 0x3b3   :  { %v2685_v5 = vpop.f32.mrf.mxu0  ;;  %v2769_v60 = vpop.f32.mrf.mxu1 }
 0x3b4   :  { %v2789_v1 = vadd.f32 %v2765_v14, %v2682_v12  ;;  %v2686_v29 = vadd.f32 %v2685_v5, %v6145_v17 }
 0x3b5   :  { %v2687_v42 = vpop.f32.mrf.mxu0  ;;  %v2771_v35 = vpop.f32.mrf.mxu1 }
 0x3b6   :  { %v2790_v54 = vadd.f32 %v2769_v60, %v2686_v29  ;;  %v2688_v56 = vadd.f32 %v2687_v42, %v6149_v38 }
 0x3b7   :  { %v2689_v33 = vpop.f32.mrf.mxu0  ;;  %v2773_v47 = vpop.f32.mrf.mxu1 }
 0x3b8   :  { %v2791_v25 = vadd.f32 %v2771_v35, %v2688_v56  ;;  %v2690_v7 = vadd.f32 %v2689_v33, %v6153_v28 }
 0x3b9   :  { %v2691_v63 = vpop.f32.mrf.mxu0  ;;  %v2775_v9 = vpop.f32.mrf.mxu1 }
 0x3ba   :  { %v2792_v18 = vadd.f32 %v2773_v47, %v2690_v7  ;;  %v2692_v40 = vadd.f32 %v2691_v63, %v6158_v36 }
 0x3bb   :  { %v6190_v37 = vpop.f32.mrf.mxu0  ;;  %v6192_v46 = vpop.f32.mrf.mxu1 }
 0x3bc   :  { %v2793_v17 = vadd.f32 %v2775_v9, %v2692_v40  ;;  %v2876_v30 = vadd.f32 %v6190_v37, %v6163_v27 }
 0x3bd   :  { %v6194_v43 = vpop.f32.mrf.mxu0  ;;  %v6196_v48 = vpop.f32.mrf.mxu1 }
 0x3be   :  { %v2877_v21 = vadd.f32 %v6194_v43, %v6166_v19 }
 0x3bf   :  { %v6198_v38 = vpop.f32.mrf.mxu0  ;;  %v6200_v34 = vpop.f32.mrf.mxu1 }
 0x3c0   :  { %v2878_v58 = vadd.f32 %v6198_v38, %v6169_v50  ;;  %v2966_v27 = vadd.f32 %v6196_v48, %v2877_v21 }
 0x3c1   :  { %v6202_v16 = vpop.f32.mrf.mxu0  ;;  %v6204_v28 = vpop.f32.mrf.mxu1 }
 0x3c2   :  { %v2879_v37 = vadd.f32 %v6202_v16, %v6172_v62 }
 0x3c3   :  { %v2847_v14 = vpop.f32.mrf.mxu0  ;;  %v2936_v12 = vpop.f32.mrf.mxu1 }
 0x3c4   :  { %v2880_v36 = vadd.f32 %v2847_v14, %v2782_v4  ;;  %v2968_v38 = vadd.f32 %v6204_v28, %v2879_v37 }
 0x3c5   :  { %v2849_v5 = vpop.f32.mrf.mxu0  ;;  %v2938_v60 = vpop.f32.mrf.mxu1 }
 0x3c6   :  { %v6206_v29 = vadd.f32 %v2936_v12, %v2880_v36  ;;  %v2881_v42 = vadd.f32 %v2849_v5, %v2783_v31 }
 0x3c7   :  { %v6208_v35 = vpop.f32.mrf.mxu0  ;;  %v6210_v56 = vpop.f32.mrf.mxu1 }
 0x3c8   :  { %v6212_v33 = vadd.f32 %v2938_v60, %v2881_v42  ;;  %v2882_v21 = vadd.f32 %v6208_v35, %v6177_v32 }
 0x3c9   :  { %v6214_v47 = vpop.f32.mrf.mxu0  ;;  %v6216_v7 = vpop.f32.mrf.mxu1 }
 0x3cb   :  { %v2857_v63 = vpop.f32.mrf.mxu0  ;;  %v2946_v9 = vpop.f32.mrf.mxu1 }
 0x3cc   :  { %v2884_v40 = vadd.f32 %v2857_v63, %v2786_v0 }
 0x3cd   :  { %v2859_v61 = vpop.f32.mrf.mxu0  ;;  %v2948_v4 = vpop.f32.mrf.mxu1 }
 0x3ce   :  { %v6218_v14 = vadd.f32 %v2946_v9, %v2884_v40  ;;  %v2885_v12 = vadd.f32 %v2859_v61, %v2787_v39 }
 0x3cf   :  { %v2861_v36 = vpop.f32.mrf.mxu0  ;;  %v2950_v31 = vpop.f32.mrf.mxu1 }
 0x3d0   :  { %v6220_v5 = vadd.f32 %v2948_v4, %v2885_v12  ;;  %v2886_v2 = vadd.f32 %v2861_v36, %v2788_v53 }
 0x3d1   :  { %v2863_v20 = vpop.f32.mrf.mxu0  ;;  %v2952_v60 = vpop.f32.mrf.mxu1 }
 0x3d2   :  { %v6222_v42 = vadd.f32 %v2950_v31, %v2886_v2  ;;  %v2887_v49 = vadd.f32 %v2863_v20, %v2789_v1 }
 0x3d3   :  { %v2867_v22 = vpop.f32.mrf.mxu0  ;;  %v2956_v57 = vpop.f32.mrf.mxu1 }
 0x3d4   :  { %v6224_v15 = vadd.f32 %v2952_v60, %v2887_v49  ;;  %v2888_v0 = vadd.f32 %v2867_v22, %v2790_v54 }
 0x3d5   :  { %v2869_v63 = vpop.f32.mrf.mxu0  ;;  %v2958_v44 = vpop.f32.mrf.mxu1 }
 0x3d6   :  { %v6226_v9 = vadd.f32 %v2956_v57, %v2888_v0  ;;  %v2889_v61 = vadd.f32 %v2869_v63, %v2791_v25 }
 0x3d7   :  { %v2871_v39 = vpop.f32.mrf.mxu0  ;;  %v2960_v40 = vpop.f32.mrf.mxu1 }
 0x3d8   :  { %v6228_v4 = vadd.f32 %v2958_v44, %v2889_v61  ;;  %v2890_v53 = vadd.f32 %v2871_v39, %v2792_v18 }
 0x3d9   :  { %v2873_v12 = vpop.f32.mrf.mxu0  ;;  %v2962_v36 = vpop.f32.mrf.mxu1 }
 0x3da   :  { %v6230_v2 = vadd.f32 %v2960_v40, %v2890_v53  ;;  %v2891_v20 = vadd.f32 %v2873_v12, %v2793_v17 }
 0x3db   :  { %v3024_v1 = vpop.f32.mrf.mxu0  ;;  %v3122_v31 = vpop.f32.mrf.mxu1 }
 0x3dc   :  { %6970 = vst [vmem:[#allocation19_spill] sm:$0xff] %v6230_v2  ;;  %v6232_v49 = vadd.f32 %v2962_v36, %v2891_v20 }
 0x3dd   :  { %v3026_v22 = vpop.f32.mrf.mxu0  ;;  %v3124_v54 = vpop.f32.mrf.mxu1 }
 0x3de   :  { %6971 = vst [vmem:[#allocation27_spill] sm:$0xff] %v6232_v49  ;;  %v2965_v49 = vadd.f32 %v6192_v46, %v2876_v30  ;;  %v3064_v30 = vadd.f32 %v3026_v22, %v2966_v27 }
 0x3df   :  { %v3028_v60 = vpop.f32.mrf.mxu0  ;;  %v3126_v57 = vpop.f32.mrf.mxu1 }
 0x3e0   :  { %v3063_v26 = vadd.f32 %v3024_v1, %v2965_v49  ;;  %v3162_v16 = vadd.f32 %v3124_v54, %v3064_v30 }
 0x3e1   :  { %v3030_v0 = vpop.f32.mrf.mxu0  ;;  %v3128_v25 = vpop.f32.mrf.mxu1 }
 0x3e2   :  { %v3066_v1 = vadd.f32 %v3030_v0, %v2968_v38 }
 0x3e3   :  { %v3034_v63 = vpop.f32.mrf.mxu0  ;;  %v3132_v23 = vpop.f32.mrf.mxu1 }
 0x3e5   :  { %v3036_v44 = vpop.f32.mrf.mxu0  ;;  %v3134_v61 = vpop.f32.mrf.mxu1 }
 0x3e7   :  { %v3038_v18 = vpop.f32.mrf.mxu0  ;;  %v6234_v39 = vpop.f32.mrf.mxu1 }
 0x3e9   :  { %v3040_v40 = vpop.f32.mrf.mxu0  ;;  %v6236_v53 = vpop.f32.mrf.mxu1 }
 0x3eb   :  { %v6238_v17 = vpop.f32.mrf.mxu0  ;;  %v6240_v12 = vpop.f32.mrf.mxu1 }
 0x3ed   :  { %v6242_v36 = vpop.f32.mrf.mxu0  ;;  %v6244_v20 = vpop.f32.mrf.mxu1 }
 0x3ef   :  { %v6246_v51 = vpop.f32.mrf.mxu0  ;;  %v6248_v55 = vpop.f32.mrf.mxu1 }
 0x3f1   :  { %v6252_v6 = vpop.f32.mrf.mxu0  ;;  %v6254_v52 = vpop.f32.mrf.mxu1 }
 0x3f3   :  { %v6258_v8 = vpop.f32.mrf.mxu0  ;;  %v6260_v13 = vpop.f32.mrf.mxu1 }
 0x3f4   :  { %6972 = vst [vmem:[#allocation39_spill] sm:$0xff] %v6260_v13  ;;  %v2967_v13 = vadd.f32 %v6200_v34, %v2878_v58  ;;  %v2883_v58 = vadd.f32 %v6214_v47, %v6180_v59 }
 0x3f5   :  { %v6265_v45 = vpop.f32.mrf.mxu0  ;;  %v6267_v2 = vpop.f32.mrf.mxu1 }
 0x3f6   :  { %6973 = vst [vmem:[#allocation40_spill] sm:$0xff] %v6265_v45  ;;  %6974 = vst [vmem:[#allocation20_spill] sm:$0xff] %v6267_v2  ;;  %v3161_v2 = vadd.f32 %v3122_v31, %v3063_v26  ;;  %v3065_v45 = vadd.f32 %v3028_v60, %v2967_v13  ;;  %v2971_v26 = vadd.f32 %v6210_v56, %v2882_v21 }
 0x3f7   :  { %v6272_v19 = vpop.f32.mrf.mxu0  ;;  %v6274_v43 = vpop.f32.mrf.mxu1  ;;  %v3068_v13 = vadd.f32 %v3036_v44, %v6212_v33  ;;  %v3164_v31 = vadd.f32 %v3128_v25, %v3066_v1 }
 0x3f8   :  { %6975 = vst [vmem:[#allocation29_spill] sm:$0xff] %v6274_v43  ;;  %v3163_v27 = vadd.f32 %v3126_v57, %v3065_v45  ;;  %v3069_v0 = vadd.f32 %v3038_v18, %v2971_v26  ;;  %v3071_v18 = vadd.f32 %v6238_v17, %v6218_v14  ;;  %v3073_v17 = vadd.f32 %v6246_v51, %v6222_v42 }
 0x3f9   :  { %v6277_v46 = vpop.f32.mrf.mxu0  ;;  %v6279_v50 = vpop.f32.mrf.mxu1  ;;  %v3166_v37 = vadd.f32 %v3134_v61, %v3068_v13 }
 0x3fa   :  { %6976 = vst [vmem:[#allocation41_spill] sm:$0xff] %v6279_v50  ;;  %v3067_v50 = vadd.f32 %v3034_v63, %v6206_v29 }
 0x3fb   :  { %v3220_v62 = vpop.f32.mrf.mxu0  ;;  %v3318_v48 = vpop.f32.mrf.mxu1 }
 0x3fc   :  { %v3259_v49 = vadd.f32 %v3220_v62, %v3161_v2  ;;  %v2972_v2 = vadd.f32 %v6216_v7, %v2883_v58  ;;  %v3165_v57 = vadd.f32 %v3132_v23, %v3067_v50  ;;  %v3167_v7 = vadd.f32 %v6234_v39, %v3069_v0 }
 0x3fd   :  { %v3222_v34 = vpop.f32.mrf.mxu0  ;;  %v3320_v22 = vpop.f32.mrf.mxu1 }
 0x3fe   :  { %v3357_v43 = vadd.f32 %v3318_v48, %v3259_v49  ;;  %v3260_v28 = vadd.f32 %v3222_v34, %v3162_v16  ;;  %v3070_v30 = vadd.f32 %v3040_v40, %v2972_v2  ;;  %v3075_v2 = vadd.f32 %v6258_v8, %v6226_v9  ;;  %v6977_v8 = vld [vmem:[#allocation40_spill] sm:$0xff] }
 0x3ff   :  { %v3224_v32 = vpop.f32.mrf.mxu0  ;;  %v3322_v35 = vpop.f32.mrf.mxu1  ;;  %v3076_v9 = vadd.f32 %v6977_v8, %v6228_v4 }
 0x400   :  { %v3358_v54 = vadd.f32 %v3320_v22, %v3260_v28  ;;  %v3261_v60 = vadd.f32 %v3224_v32, %v3163_v27  ;;  %v3373_v59 = vadd.f32 %v3357_v43, %v5433_v11  ;;  %v3168_v16 = vadd.f32 %v6236_v53, %v3070_v30 }
 0x401   :  { %v3226_v47 = vpop.f32.mrf.mxu0  ;;  %v3324_v45 = vpop.f32.mrf.mxu1  ;;  %v3169_v53 = vadd.f32 %v6240_v12, %v3071_v18  ;;  %v3074_v32 = vadd.f32 %v6252_v6, %v6224_v15 }
 0x402   :  { %v3359_v29 = vadd.f32 %v3322_v35, %v3261_v60  ;;  %v3262_v63 = vadd.f32 %v3226_v47, %v3164_v31  ;;  %v3374_v33 = vadd.f32 %v3358_v54, %v5433_v11  ;;  %v3389_v43 = vmax.f32 %v3373_v59, 0.0 }
 0x403   :  { %v3230_v56 = vpop.f32.mrf.mxu0  ;;  %v3328_v38 = vpop.f32.mrf.mxu1  ;;  %v3072_v11 = vadd.f32 %v6242_v36, %v6220_v5  ;;  %v3171_v60 = vadd.f32 %v6248_v55, %v3073_v17  ;;  %v3172_v55 = vadd.f32 %v6254_v52, %v3074_v32  ;;  %v6987_v17 = vld [vmem:[#allocation53_spill] sm:$0xff] }
 0x404   :  { %v3375_v25 = vadd.f32 %v3359_v29, %v5438_v41  ;;  %v3360_v44 = vadd.f32 %v3324_v45, %v3262_v63  ;;  %v3263_v21 = vadd.f32 %v3230_v56, %v3165_v57  ;;  %v3390_v58 = vmax.f32 %v3374_v33, 0.0  ;;  %v6979_v33 = vld [vmem:[#allocation19_spill] sm:$0xff] }
 0x405   :  { %v3232_v62 = vpop.f32.mrf.mxu0  ;;  %v3330_v23 = vpop.f32.mrf.mxu1  ;;  %v3170_v13 = vadd.f32 %v6244_v20, %v3072_v11  ;;  %v3077_v52 = vadd.f32 %v6272_v19, %v6979_v33  ;;  %v6983_v19 = vld [vmem:[#allocation20_spill] sm:$0xff] }
 0x406   :  { %v3391_v50 = vmax.f32 %v3375_v25, 0.0  ;;  %v3376_v61 = vadd.f32 %v3360_v44, %v5438_v41  ;;  %v3264_v40 = vadd.f32 %v3232_v62, %v3166_v37  ;;  %v3361_v48 = vadd.f32 %v3328_v38, %v3263_v21  ;;  %v6980_v25 = vld [vmem:[#allocation51_spill] sm:$0xff] }
 0x407   :  { %v3234_v1 = vpop.f32.mrf.mxu0  ;;  %v3332_v49 = vpop.f32.mrf.mxu1  ;;  %v6982_v62 = vld [vmem:[#allocation39_spill] sm:$0xff] }
 0x408   :  { %v6300_v39 = vpack.c.bf16 %v3391_v50, %v3389_v43  ;;  %v3392_v34 = vmax.f32 %v3376_v61, 0.0  ;;  %v3265_v14 = vadd.f32 %v3234_v1, %v3167_v7  ;;  %v3377_v22 = vadd.f32 %v3361_v48, %v5392_v3 }
 0x409   :  { %v3362_v41 = vadd.f32 %v3330_v23, %v3264_v40  ;;  %v3236_v27 = vpop.f32.mrf.mxu0  ;;  %v3334_v28 = vpop.f32.mrf.mxu1  ;;  %v3173_v23 = vadd.f32 %v6982_v62, %v3075_v2  ;;  %v3174_v48 = vadd.f32 %v6983_v19, %v3076_v9 }
 0x40a   :  { %v6306_v26 = vpack.c.bf16 %v3392_v34, %v3390_v58  ;;  %v3266_v5 = vadd.f32 %v3236_v27, %v3168_v16  ;;  %v3363_v36 = vadd.f32 %v3332_v49, %v3265_v14  ;;  %3481 = vrot.lane.b32.xlu1 %v6300_v39, %s4841_s26  ;;  %v3393_v20 = vmax.f32 %v3377_v22, 0.0  ;;  %v6984_v16 = vld [vmem:[#allocation27_spill] sm:$0xff] }
 0x40b   :  { %v3240_v51 = vpop.f32.mrf.mxu0  ;;  %v3338_v42 = vpop.f32.mrf.mxu1  ;;  %v3378_v35 = vadd.f32 %v3362_v41, %v5392_v3  ;;  %v6323_v6 = vsel %vm211_vm6, %v6300_v39, 0  ;;  %v6346_v18 = vsel %vm229_vm8, %v6300_v39, 0  ;;  %v3078_v11 = vadd.f32 %v6277_v46, %v6984_v16  ;;  %v6985_v49 = vld [vmem:[#allocation7_spill] sm:$0xff] }
 0x40c   :  { %v3379_v31 = vadd.f32 %v3363_v36, %v5406_v24  ;;  %v3267_v54 = vadd.f32 %v3240_v51, %v3169_v53  ;;  %v3364_v12 = vadd.f32 %v3334_v28, %v3266_v5  ;;  %3483 = vrot.lane.b32.xlu0 %v6306_v26, %s4841_s26  ;;  %v6334_v63 = vsel %vm212_vm7, %v6306_v26, 0  ;;  %v6988_v28 = vld [vmem:[#allocation29_spill] sm:$0xff] }
 0x40d   :  { %v3242_v0 = vpop.f32.mrf.mxu0  ;;  %v3340_v3 = vpop.f32.mrf.mxu1  ;;  %v3394_v30 = vmax.f32 %v3378_v35, 0.0  ;;  %vm6986_vm5 = vcmp.ne.s16.totalorder %v6985_v49, 0  ;;  %v3175_v53 = vadd.f32 %v6988_v28, %v3077_v52  ;;  %v6989_v35 = vld [vmem:[#allocation41_spill] sm:$0xff]  ;;  %v189_v28 = vld [vmem:[%s6818_s4 + $0x10] sm:$0xff] }
 0x40e   :  { %v3395_v15 = vmax.f32 %v3379_v31, 0.0  ;;  %v3380_v59 = vadd.f32 %v3364_v12, %v5406_v24  ;;  %v3268_v47 = vadd.f32 %v3242_v0, %v3170_v13  ;;  %v3365_v45 = vadd.f32 %v3338_v42, %v3267_v54  ;;  %3437 = vrot.lane.b32.xlu1 %v6323_v6, %s4842_s27 }
 0x40f   :  { %v3244_v57 = vpop.f32.mrf.mxu0  ;;  %v3342_v37 = vpop.f32.mrf.mxu1  ;;  %v6359_v58 = vsel %vm6986_vm5, %v6306_v26, 0  ;;  %v3176_v31 = vadd.f32 %v6989_v35, %v3078_v11 }
 0x410   :  { %v6336_v56 = vpack.c.bf16 %v3395_v15, %v3393_v20  ;;  %v3396_v24 = vmax.f32 %v3380_v59, 0.0  ;;  %v3269_v38 = vadd.f32 %v3244_v57, %v3171_v60  ;;  %3439 = vrot.lane.b32.xlu0 %v6334_v63, %s4842_s27  ;;  %v3381_v4 = vadd.f32 %v3365_v45, %v6980_v25 }
 0x411   :  { %v3366_v44 = vadd.f32 %v3340_v3, %v3268_v47  ;;  %v3246_v21 = vpop.f32.mrf.mxu0  ;;  %v3344_v43 = vpop.f32.mrf.mxu1 }
 0x412   :  { %v6349_v50 = vpack.c.bf16 %v3396_v24, %v3394_v30  ;;  %v3270_v61 = vadd.f32 %v3246_v21, %v3172_v55  ;;  %v3367_v40 = vadd.f32 %v3342_v37, %v3269_v38  ;;  %3631 = vrot.lane.b32.xlu1 %v6346_v18, %s4843_s28  ;;  %v3397_v5 = vmax.f32 %v3381_v4, 0.0  ;;  %v6990_v55 = vld [vmem:[#allocation46_spill] sm:$0xff]  ;;  %v6991_v24 = vld [vmem:[#allocation43_spill] sm:$0xff] }
 0x413   :  { %v3250_v1 = vpop.f32.mrf.mxu0  ;;  %v3348_v34 = vpop.f32.mrf.mxu1  ;;  %v3382_v14 = vadd.f32 %v3366_v44, %v6980_v25  ;;  %v3415_v59 = vsel %vm211_vm6, %v6336_v56, 0  ;;  %v6390_v52 = vsel %vm229_vm8, %v6336_v56, 0 }
 0x414   :  { %v3383_v22 = vadd.f32 %v3367_v40, %v6987_v17  ;;  %v3271_v41 = vadd.f32 %v3250_v1, %v3173_v23  ;;  %v3368_v27 = vadd.f32 %v3344_v43, %v3270_v61  ;;  %3633 = vrot.lane.b32.xlu0 %v6359_v58, %s4843_s28  ;;  %v3416_v37 = vsel %vm212_vm7, %v6349_v50, 0 }
 0x415   :  { %v3252_v46 = vpop.f32.mrf.mxu0  ;;  %v3350_v36 = vpop.f32.mrf.mxu1  ;;  %v3398_v60 = vmax.f32 %v3382_v14, 0.0  ;;  %v6398_v21 = vsel %vm6986_vm5, %v6349_v50, 0 }
 0x416   :  { %v3399_v13 = vmax.f32 %v3383_v22, 0.0  ;;  %v3384_v32 = vadd.f32 %v3368_v27, %v6987_v17  ;;  %v3272_v51 = vadd.f32 %v3252_v46, %v3174_v48  ;;  %v3369_v42 = vadd.f32 %v3348_v34, %v3271_v41  ;;  %3485 = vrot.lane.b32.xlu1 %v6336_v56, %s4841_s26  ;;  %v187_v17 = vld [vmem:[%s6818_s4] sm:$0xff]  ;;  %v188_v41 = vld [vmem:[%s6818_s4 + $0x8] sm:$0xff] }
 0x417   :  { %v3254_v54 = vpop.f32.mrf.mxu0  ;;  %v3352_v12 = vpop.f32.mrf.mxu1 }
 0x418   :  { %v6370_v2 = vpack.c.bf16 %v3399_v13, %v3397_v5  ;;  %v3400_v20 = vmax.f32 %v3384_v32, 0.0  ;;  %v3273_v0 = vadd.f32 %v3254_v54, %v3175_v53  ;;  %3487 = vrot.lane.b32.xlu0 %v6349_v50, %s4841_s26  ;;  %v3370_v3 = vadd.f32 %v3350_v36, %v3272_v51 }
 0x419   :  { %v3256_v15 = vpop.f32.mrf.mxu0  ;;  %v3354_v47 = vpop.f32.mrf.mxu1  ;;  %v3385_v8 = vadd.f32 %v3369_v42, %v6990_v55 }
 0x41a   :  { %v6377_v45 = vpack.c.bf16 %v3400_v20, %v3398_v60  ;;  %v3274_v9 = vadd.f32 %v3256_v15, %v3176_v31  ;;  %v3371_v57 = vadd.f32 %v3352_v12, %v3273_v0  ;;  %3441 = vrot.lane.b32.xlu1 %v3415_v59, %s4842_s27  ;;  %v3386_v30 = vadd.f32 %v3370_v3, %v6990_v55 }
 0x41b   :  { %v3401_v25 = vmax.f32 %v3385_v8, 0.0  ;;  %v3417_v40 = vsel %vm211_vm6, %v6370_v2, 0  ;;  %v3425_v48 = vsel %vm229_vm8, %v6370_v2, 0 }
 0x41c   :  { %v3387_v38 = vadd.f32 %v3371_v57, %v6991_v24  ;;  %v3372_v33 = vadd.f32 %v3354_v47, %v3274_v9  ;;  %3443 = vrot.lane.b32.xlu0 %v3416_v37, %s4842_s27  ;;  %v3402_v43 = vmax.f32 %v3386_v30, 0.0  ;;  %v3418_v19 = vsel %vm212_vm7, %v6377_v45, 0 }
 0x41d   :  { %v3426_v16 = vsel %vm6986_vm5, %v6377_v45, 0 }
 0x41e   :  { %v3403_v4 = vmax.f32 %v3387_v38, 0.0  ;;  %v3388_v44 = vadd.f32 %v3372_v33, %v6991_v24  ;;  %3635 = vrot.lane.b32.xlu1 %v6390_v52, %s4843_s28 }
 0x420   :  { %v6400_v62 = vpack.c.bf16 %v3403_v4, %v3401_v25  ;;  %v3404_v23 = vmax.f32 %v3388_v44, 0.0  ;;  %3637 = vrot.lane.b32.xlu0 %v6398_v21, %s4843_s28  ;;  %v4800_v44 = vld [vmem:[%s6817_s3 + $0x10] sm:$0xff]  }
 0x422   :  { %v6404_v61 = vpack.c.bf16 %v3404_v23, %v3402_v43  ;;  %3732 = vrot.lane.b32.xlu1 %v3415_v59, %s4844_s29  ;;  %v3419_v11 = vsel %vm211_vm6, %v6400_v62, 0  ;;  %v3427_v1 = vsel %vm229_vm8, %v6400_v62, 0  ;;  %vm6992_vm6 = vmmov %vm6986_vm5 }
 0x424   :  { %3734 = vrot.lane.b32.xlu0 %v3416_v37, %s4844_s29  ;;  %v3420_v34 = vsel %vm212_vm7, %v6404_v61, 0  ;;  %v3428_v10 = vsel %vm6992_vm6, %v6404_v61, 0  ;;  %vm6998_vm7 = vcmask 908288  }
 0x425   :  { %vm6999_vm8 = vmmov %vm6998_vm7 }
 0x426   :  { %3489 = vrot.lane.b32.xlu1 %v6370_v2, %s4841_s26 }
 0x428   :  { %3491 = vrot.lane.b32.xlu0 %v6377_v45, %s4841_s26 }
 0x42a   :  { %3445 = vrot.lane.b32.xlu1 %v3417_v40, %s4842_s27 }
 0x42c   :  { %3447 = vrot.lane.b32.xlu0 %v3418_v19, %s4842_s27 }
 0x42e   :  { %3639 = vrot.lane.b32.xlu1 %v3425_v48, %s4843_s28 }
 0x430   :  { %3641 = vrot.lane.b32.xlu0 %v3426_v16, %s4843_s28 }
 0x432   :  { %3736 = vrot.lane.b32.xlu1 %v3417_v40, %s4844_s29 }
 0x434   :  { %3738 = vrot.lane.b32.xlu0 %v3418_v19, %s4844_s29 }
 0x436   :  { %3493 = vrot.lane.b32.xlu1 %v6400_v62, %s4841_s26 }
 0x438   :  { %3495 = vrot.lane.b32.xlu0 %v6404_v61, %s4841_s26 }
 0x43a   :  { %3728 = vrot.lane.b32.xlu1 %v6323_v6, %s4844_s29 }
 0x43c   :  { %3730 = vrot.lane.b32.xlu0 %v6334_v63, %s4844_s29 }
 0x43e   :  { %3449 = vrot.lane.b32.xlu1 %v3419_v11, %s4842_s27 }
 0x440   :  { %3896 = vrot.lane.b32.xlu0 %v3426_v16, %s4845_s30 }
 0x442   :  { %3643 = vrot.lane.b32.xlu1 %v3427_v1, %s4843_s28 }
 0x444   :  { %3451 = vrot.lane.b32.xlu0 %v3420_v34, %s4842_s27 }
 0x446   :  { %3740 = vrot.lane.b32.xlu1 %v3419_v11, %s4844_s29 }
 0x448   :  { %3645 = vrot.lane.b32.xlu0 %v3428_v10, %s4843_s28 }
 0x44a   :  { %3898 = vrot.lane.b32.xlu1 %v3427_v1, %s4845_s30 }
 0x44c   :  { %3993 = vrot.lane.b32.xlu0 %v3418_v19, %s4846_s6 }
 0x44e   :  { %3995 = vrot.lane.b32.xlu1 %v3419_v11, %s4846_s6 }
 0x450   :  { %3892 = vrot.lane.b32.xlu0 %v6398_v21, %s4845_s30 }
 0x452   :  { %3894 = vrot.lane.b32.xlu1 %v3425_v48, %s4845_s30 }
 0x454   :  { %3989 = vrot.lane.b32.xlu0 %v3416_v37, %s4846_s6 }
 0x456   :  { %3991 = vrot.lane.b32.xlu1 %v3417_v40, %s4846_s6 }
 0x458   :  { %3742 = vrot.lane.b32.xlu0 %v3420_v34, %s4844_s29 }
 0x45a   :  { %3890 = vrot.lane.b32.xlu1 %v6390_v52, %s4845_s30 }
 0x45c   :  { %3888 = vrot.lane.b32.xlu0 %v6359_v58, %s4845_s30 }
 0x45e   :  { %3987 = vrot.lane.b32.xlu1 %v3415_v59, %s4846_s6 }
 0x460   :  { %3985 = vrot.lane.b32.xlu0 %v6334_v63, %s4846_s6 }
 0x462   :  { %3886 = vrot.lane.b32.xlu1 %v6346_v18, %s4845_s30 }
 0x464   :  { %4094 = vrot.lane.b32.xlu0 %v6404_v61, %s4847_s7 }
 0x466   :  { %3983 = vrot.lane.b32.xlu1 %v6323_v6, %s4846_s6 }
 0x468   :  { %3900 = vrot.lane.b32.xlu0 %v3428_v10, %s4845_s30 }
 0x46a   :  { %4092 = vrot.lane.b32.xlu1 %v6400_v62, %s4847_s7 }
 0x46c   :  { %3997 = vrot.lane.b32.xlu0 %v3420_v34, %s4846_s6 }
 0x46e   :  { %4189 = vrot.lane.b32.xlu1 %v3427_v1, %s4848_s8 }
 0x470   :  { %4090 = vrot.lane.b32.xlu0 %v6377_v45, %s4847_s7 }
 0x472   :  { %4088 = vrot.lane.b32.xlu1 %v6370_v2, %s4847_s7 }
 0x474   :  { %4187 = vrot.lane.b32.xlu0 %v3426_v16, %s4848_s8 }
 0x476   :  { %4185 = vrot.lane.b32.xlu1 %v3425_v48, %s4848_s8  ;;  %v6996_v48 = vmov 0  }
 0x478   :  { %4086 = vrot.lane.b32.xlu0 %v6349_v50, %s4847_s7 }
 0x47a   :  { %4084 = vrot.lane.b32.xlu1 %v6336_v56, %s4847_s7 }
 0x47c   :  { %v3482_v6 = vpop.permute.xlu1 %3481  ;;  %4191 = vrot.lane.b32.xlu0 %v3428_v10, %s4848_s8 }
 0x47e   :  { %v3484_v29 = vpop.permute.xlu0 %3483  ;;  %4181 = vrot.lane.b32.xlu1 %v6390_v52, %s4848_s8 }
 0x47f   :  { %v3497_v30 = vsel %vm253_vm10, %v3482_v6, %v3484_v29 }
 0x480   :  { %v6496_v63 = vpop.permute.xlu1 %3437  ;;  %4183 = vrot.lane.b32.xlu0 %v6398_v21, %s4848_s8 }
 0x482   :  { %v6500_v7 = vpop.permute.xlu0 %3439  ;;  %4080 = vrot.lane.b32.xlu1 %v6300_v39, %s4847_s7 }
 0x483   :  { %v3453_v29 = vsel %vm239_vm12, %v6496_v63, %v6500_v7 }
 0x484   :  { %v6504_v49 = vpop.permute.xlu1 %3631  ;;  %4082 = vrot.lane.b32.xlu0 %v6306_v26, %s4847_s7 }
 0x486   :  { %v6508_v14 = vpop.permute.xlu0 %3633  ;;  %4177 = vrot.lane.b32.xlu1 %v6346_v18, %s4848_s8  ;;  %v190_v18 = vld [vmem:[%s6818_s4 + $0x18] sm:$0xff] }
 0x488   :  { %v3486_v22 = vpop.permute.xlu1 %3485  ;;  %4179 = vrot.lane.b32.xlu0 %v6359_v58, %s4848_s8 }
 0x48a   :  { %v3488_v27 = vpop.permute.xlu0 %3487  ;;  %2473 = vperm.xlu1 %4709, %v187_v17   ;;  %v3647_v17 = vsel %vm476_vm14, %v6504_v49, %v6508_v14 }
 0x48b   :  { %v3498_v9 = vsel %vm253_vm10, %v3486_v22, %v3488_v27 }
 0x48c   :  { %v6523_v53 = vpop.permute.xlu1 %3441  ;;  %2478 = vperm.xlu0 %4708, %v188_v41  }
 0x48e   :  { %v3444_v5 = vpop.permute.xlu0 %3443  ;;  %2483 = vperm.xlu1 %4709, %v189_v28   ;;  %v4802_v28 = vld [vmem:[%s6817_s3] sm:$0xff]  }
 0x48f   :  { %v3454_v11 = vsel %vm239_vm12, %v6523_v53, %v3444_v5 }
 0x490   :  { %v3636_v58 = vpop.permute.xlu1 %3635  ;;  %2488 = vperm.xlu0 %4708, %v190_v18  }
 0x492   :  { %v3638_v46 = vpop.permute.xlu0 %3637 }
 0x493   :  { %v3648_v1 = vsel %vm476_vm14, %v3636_v58, %v3638_v46 }
 0x494   :  { %v6528_v36 = vpop.permute.xlu1 %3732 }
 0x496   :  { %v6530_v13 = vpop.permute.xlu0 %3734 }
 0x497   :  { %v3745_v5 = vsel %vm608_vm0, %v6528_v36, %v6530_v13 }
 0x498   :  { %v3490_v32 = vpop.permute.xlu1 %3489 }
 0x49a   :  { %v3492_v51 = vpop.permute.xlu0 %3491 }
 0x49b   :  { %v3499_v47 = vsel %vm253_vm10, %v3490_v32, %v3492_v51  ;;  %v4807_v51 = vld [vmem:[%s6817_s3 + $0x40] sm:$0xff]  }
 0x49c   :  { %v3446_v42 = vpop.permute.xlu1 %3445 }
 0x49e   :  { %v3448_v35 = vpop.permute.xlu0 %3447 }
 0x49f   :  { %v3455_v23 = vsel %vm239_vm12, %v3446_v42, %v3448_v35 }
 0x4a0   :  { %v3640_v31 = vpop.permute.xlu1 %3639 }
 0x4a2   :  { %v3642_v54 = vpop.permute.xlu0 %3641 }
 0x4a3   :  { %v3649_v40 = vsel %vm476_vm14, %v3640_v31, %v3642_v54 }
 0x4a4   :  { %v6532_v12 = vpop.permute.xlu1 %3736 }
 0x4a6   :  { %v6534_v60 = vpop.permute.xlu0 %3738 }
 0x4a8   :  { %v3494_v20 = vpop.permute.xlu1 %3493 }
 0x4aa   :  { %v3496_v0 = vpop.permute.xlu0 %3495 }
 0x4ab   :  { %v3500_v3 = vsel %vm253_vm10, %v3494_v20, %v3496_v0  ;;  %v4808_v0 = vld [vmem:[%s6817_s3 + $0x38] sm:$0xff]   ;;  %vm7000_vm10 = vmmov %vm6998_vm7 }
 0x4ac   :  { %v6537_v15 = vpop.permute.xlu1 %3728  ;;  %3525 = vmatprep.subr.bf16.mxu0 %v3500_v3  ;;  %v4809_v3 = vld [vmem:[%s6817_s3 + $0x48] sm:$0xff]  }
 0x4ad   :  { %4632 = vmatpush1.bf16.msk.msra.mxu0 %vm4948_vm11, %v3494_v20 }
 0x4ae   :  { %3527 = vmatprep.subr.bf16.mxu0 %v3499_v47  ;;  %v6542_v55 = vpop.permute.xlu0 %3730 }
 0x4b0   :  { %v3450_v8 = vpop.permute.xlu1 %3449 }
 0x4b1   :  { %4634 = vmatpush1.bf16.msk.msra.mxu0 %vm4948_vm11, %v3490_v32 }
 0x4b2   :  { %3529 = vmatprep.subr.bf16.mxu0 %v3498_v9  ;;  %v6547_v57 = vpop.permute.xlu0 %3896 }
 0x4b4   :  { %v3644_v37 = vpop.permute.xlu1 %3643 }
 0x4b5   :  { %4636 = vmatpush1.bf16.msk.msra.mxu0 %vm4948_vm11, %v3486_v22 }
 0x4b6   :  { %3531 = vmatprep.subr.bf16.mxu0 %v3497_v30  ;;  %v3452_v24 = vpop.permute.xlu0 %3451  ;;  %v4810_v30 = vld [vmem:[%s6817_s3 + $0x50] sm:$0xff]  }
 0x4b7   :  { %v3456_v33 = vsel %vm239_vm12, %v3450_v8, %v3452_v24  ;;  %vm7002_vm12 = vmmov %vm6998_vm7 }
 0x4b8   :  { %v3741_v38 = vpop.permute.xlu1 %3740 }
 0x4b9   :  { %4638 = vmatpush1.bf16.msk.msra.mxu0 %vm4948_vm11, %v3482_v6  ;;  %v4801_v6 = vld [vmem:[%s6817_s3 + $0x18] sm:$0xff]   ;;  %vm7001_vm11 = vmmov %vm6998_vm7 }
 0x4ba   :  { %3578 = vmatprep.subr.bf16.mxu0 %v3456_v33  ;;  %v3646_v52 = vpop.permute.xlu0 %3645  ;;  %v4811_v33 = vld [vmem:[%s6817_s3 + $0x60] sm:$0xff]  }
 0x4bb   :  { %v3650_v25 = vsel %vm476_vm14, %v3644_v37, %v3646_v52  ;;  %vm7004_vm14 = vmmov %vm6998_vm7 }
 0x4bc   :  { %v6556_v4 = vpop.permute.xlu1 %3898  ;;  %4639 = vmatmul.mubr.msk.bf16.vlgmr.msra.gmra.mxu0 %vm1579_vm9, %v4800_v44  ;;  %3675 = vmatprep.subr.bf16.mxu1 %v3650_v25 }
 0x4bd   :  { %4642 = vmatpush1.bf16.msk.msra.mxu0 %vm4964_vm13, %v3450_v8  ;;  %4652 = vmatpush1.bf16.msk.msra.mxu1 %vm4977_vm15, %v3644_v37 }
 0x4be   :  { %3580 = vmatprep.subr.bf16.mxu0 %v3455_v23  ;;  %3677 = vmatprep.subr.bf16.mxu1 %v3649_v40  ;;  %v6568_v19 = vpop.permute.xlu0 %3993  ;;  %v4812_v23 = vld [vmem:[%s6817_s3 + $0x58] sm:$0xff]  }
 0x4bf   :  { %3559 = vmatprep.mubr.bf16.mxu0 %v6996_v48 }
 0x4c0   :  { %v6571_v16 = vpop.permute.xlu1 %3995 }
 0x4c1   :  { %4644 = vmatpush1.bf16.msk.msra.mxu0 %vm4964_vm13, %v3446_v42  ;;  %4654 = vmatpush1.bf16.msk.msra.mxu1 %vm4977_vm15, %v3640_v31 }
 0x4c2   :  { %3582 = vmatprep.subr.bf16.mxu0 %v3454_v11  ;;  %3679 = vmatprep.subr.bf16.mxu1 %v3648_v1  ;;  %v6580_v34 = vpop.permute.xlu0 %3892  ;;  %v4813_v11 = vld [vmem:[%s6817_s3 + $0x68] sm:$0xff]  }
 0x4c4   :  { %v6582_v10 = vpop.permute.xlu1 %3894  ;;  %4640 = vmatmul.mubr.msk.bf16.gmra.mxu0 %vm1579_vm9, %v4801_v6  ;;  %v4814_v6 = vld [vmem:[%s6817_s3 + $0x70] sm:$0xff]  }
 0x4c5   :  { %4646 = vmatpush1.bf16.msk.msra.mxu0 %vm4964_vm13, %v6523_v53  ;;  %4656 = vmatpush1.bf16.msk.msra.mxu1 %vm4977_vm15, %v3636_v58  ;;  %v4804_v58 = vld [vmem:[%s6817_s3 + $0x8] sm:$0xff]   ;;  %v3904_v35 = vsel %vm861_vm2, %v6582_v10, %v6547_v57 }
 0x4c6   :  { %3584 = vmatprep.subr.bf16.mxu0 %v3453_v29  ;;  %3681 = vmatprep.subr.bf16.mxu1 %v3647_v17  ;;  %v6599_v22 = vpop.permute.xlu0 %3989  ;;  %v4815_v29 = vld [vmem:[%s6817_s3 + $0x80] sm:$0xff]   ;;  %v4816_v17 = vld [vmem:[%s6817_s3 + $0x78] sm:$0xff]  }
 0x4c7   :  { %3602 = vmatprep.mubr.bf16.mxu0 %v6996_v48 }
 0x4c8   :  { %v6602_v41 = vpop.permute.xlu1 %3991 }
 0x4c9   :  { %4648 = vmatpush1.bf16.msk.msra.mxu0 %vm4964_vm13, %v6496_v63  ;;  %4658 = vmatpush1.bf16.msk.msra.mxu1 %vm4977_vm15, %v6504_v49  ;;  %v4803_v63 = vld [vmem:[%s6817_s3 + $0x20] sm:$0xff]   ;;  %vm7003_vm13 = vmmov %vm6998_vm7 }
 0x4ca   :  { %3833 = vmatprep.subr.bf16.mxu1 %v6404_v61  ;;  %v3743_v7 = vpop.permute.xlu0 %3742  ;;  %v3746_v61 = vsel %vm608_vm0, %v6532_v12, %v6534_v60  ;;  %vm7005_vm15 = vmmov %vm6998_vm7 }
 0x4cb   :  { %v3747_v14 = vsel %vm608_vm0, %v3741_v38, %v3743_v7 }
 0x4cc   :  { %v3891_v27 = vpop.permute.xlu1 %3890  ;;  %4649 = vmatmul.mubr.msk.bf16.vlgmr.msra.gmra.mxu0 %vm1579_vm9, %v4802_v28  ;;  %3772 = vmatprep.subr.bf16.mxu0 %v3747_v14  ;;  %v7007_v14 = vld [vmem:[#allocation45_spill] sm:$0xff]  ;;  %v4817_v28 = vld [vmem:[%s6817_s3 + $0x88] sm:$0xff]  }
 0x4cd   :  { %4659 = vmatmul.mubr.msk.bf16.vlgmr.msra.gmra.mxu1 %vm1579_vm9, %v4803_v63  ;;  %4662 = vmatpush1.bf16.msk.msra.mxu0 %vm4990_vm1, %v3741_v38  ;;  %v3903_v60 = vsel %vm861_vm2, %v3891_v27, %v6580_v34 }
 0x4ce   :  { %3834 = vmatpush1.bf16.msra.mxu1 %v6400_v62  ;;  %3774 = vmatprep.subr.bf16.mxu0 %v3746_v61  ;;  %v6626_v53 = vpop.permute.xlu0 %3888  ;;  %v7008_v61 = vld [vmem:[#allocation13_spill] sm:$0xff] }
 0x4cf   :  { %3835 = vmatprep.subr.bf16.mxu1 %v6377_v45  ;;  %3612 = vmatprep.mubr.bf16.mxu0 %v6996_v48 }
 0x4d0   :  { %v3988_v18 = vpop.permute.xlu1 %3987  ;;  %3709 = vmatprep.mubr.bf16.mxu1 %v6996_v48 }
 0x4d1   :  { %4664 = vmatpush1.bf16.msk.msra.mxu0 %vm4990_vm1, %v6532_v12  ;;  %v4001_v12 = vsel %vm993_vm3, %v6602_v41, %v6568_v19  ;;  %v4000_v59 = vsel %vm993_vm3, %v3988_v18, %v6599_v22  ;;  %v7006_v41 = vld [vmem:[#allocation37_spill] sm:$0xff]  ;;  %v7009_v18 = vld [vmem:[#allocation15_spill] sm:$0xff] }
 0x4d2   :  { %3836 = vmatpush1.bf16.msra.mxu1 %v6370_v2  ;;  %3776 = vmatprep.subr.bf16.mxu0 %v3745_v5  ;;  %v6638_v62 = vpop.permute.xlu0 %3985  ;;  %v4805_v2 = vld [vmem:[%s6817_s3 + $0x28] sm:$0xff]  }
 0x4d3   :  { %3837 = vmatprep.subr.bf16.mxu1 %v6349_v50  ;;  %v3744_v50 = vsel %vm608_vm0, %v6537_v15, %v6542_v55 }
 0x4d4   :  { %v3887_v45 = vpop.permute.xlu1 %3886  ;;  %4650 = vmatmul.mubr.msk.bf16.gmra.mxu0 %vm1579_vm9, %v4804_v58 }
 0x4d5   :  { %4666 = vmatpush1.bf16.msk.msra.mxu0 %vm4990_vm1, %v6528_v36  ;;  %4660 = vmatmul.mubr.msk.bf16.gmra.mxu1 %vm1579_vm9, %v4805_v2  ;;  %v3902_v47 = vsel %vm861_vm2, %v3887_v45, %v6626_v53  ;;  %v7010_v2 = vld [vmem:[#allocation18_spill] sm:$0xff] }
 0x4d6   :  { %3838 = vmatpush1.bf16.msra.mxu1 %v6336_v56  ;;  %3778 = vmatprep.subr.bf16.mxu0 %v3744_v50  ;;  %v4095_v46 = vpop.permute.xlu0 %4094 }
 0x4d7   :  { %3839 = vmatprep.subr.bf16.mxu1 %v6306_v26  ;;  %3796 = vmatprep.mubr.bf16.mxu0 %v6996_v48  ;;  %v4806_v26 = vld [vmem:[%s6817_s3 + $0x30] sm:$0xff]   ;;  %s4849_s3 = smov [#allocation2]  }
 0x4d8   :  { %v3984_v13 = vpop.permute.xlu1 %3983  ;;  %3857 = vmatprep.mubr.bf16.mxu1 %v6996_v48  ;;  %s4304_s17 = sshll.u32 %s4849_s3, 4  ;;  %s4305_s17 = int_to_ptr.vmem [resolvable:$true] %s4304_s17 }
 0x4d9   :  { %4668 = vmatpush1.bf16.msk.msra.mxu0 %vm4990_vm1, %v6537_v15  ;;  %v3999_v9 = vsel %vm993_vm3, %v3984_v13, %v6638_v62  ;;  %s4818_s18 = scalar_lea.vmem %s4305_s17, 2048  ;;  %p4823_p1 = scmp.lt.s32.totalorder %s4305_s17, %s4305_s17 }
 0x4da   :  { %3840 = vmatpush1.bf16.msra.mxu1 %v6300_v39  ;;  %v3901_v36 = vpop.permute.xlu0 %3900  ;;  %p4819_p0 = scmp.ne.s32.totalorder %s4305_s17, %s4818_s18  ;;  %p4824_p2 = scmp.lt.s32.totalorder %s4818_s18, %s4818_s18 }
 0x4db   :  { %v3905_v32 = vsel %vm861_vm2, %v6556_v4, %v3901_v36  ;;  %4673 = vmatprep.subr.msk.bf16.mxu0 %vm861_vm2, %v3901_v36 }
 0x4dc   :  { %v4093_v56 = vpop.permute.xlu1 %4092  ;;  %4669 = vmatmul.mubr.msk.bf16.vlgmr.msra.gmra.mxu0 %vm1579_vm9, %v4806_v26  ;;  %v7012_v26 = vld [vmem:[#allocation25_spill] sm:$0xff]  ;;  %p4825_p3 = por %p4824_p2, %p4823_p1 }
 0x4dd   :  { %3931 = vmatpush1.bf16.msra.mxu0 %v3905_v32  ;;  %4671 = vmatmul.mubr.msk.bf16.vlgmr.msra.gmra.mxu1 %vm1579_vm9, %v4807_v51 }
 0x4de   :  { %4674 = vmatprep.subr.msk.bf16.mxu0 %vm861_vm2, %v6547_v57  ;;  %v3998_v39 = vpop.permute.xlu0 %3997  ;;  %3806 = vmatprep.mubr.bf16.mxu0 %v6996_v48  ;;  %v4099_v57 = vsel %vm1125_vm4, %v4093_v56, %v4095_v46  ;;  %p4826_p4 = pnand %p4825_p3, %p4819_p0 }
 0x4df   :  { %v4002_v42 = vsel %vm993_vm3, %v6571_v16, %v3998_v39  ;;  %4679 = vmatprep.subr.msk.bf16.mxu1 %vm993_vm3, %v3998_v39  ;;  %3867 = vmatprep.mubr.bf16.mxu1 %v6996_v48  ;;  %v7013_v39 = vld [vmem:[#allocation48_spill] sm:$0xff] }
 0x4e0   :  { %v4190_v31 = vpop.permute.xlu1 %4189  ;;  %4028 = vmatpush1.bf16.msra.mxu1 %v4002_v42 }
 0x4e1   :  { %3933 = vmatpush1.bf16.msra.mxu0 %v3904_v35  ;;  %4680 = vmatprep.subr.msk.bf16.mxu1 %vm993_vm3, %v6568_v19 }
 0x4e2   :  { %4675 = vmatprep.subr.msk.bf16.mxu0 %vm861_vm2, %v6580_v34  ;;  %v4091_v54 = vpop.permute.xlu0 %4090 }
 0x4e4   :  { %v4089_v20 = vpop.permute.xlu1 %4088  ;;  %4670 = vmatmul.mubr.msk.bf16.gmra.mxu0 %vm1579_vm9, %v4808_v0  ;;  %4030 = vmatpush1.bf16.msra.mxu1 %v4001_v12 }
 0x4e5   :  { %3935 = vmatpush1.bf16.msra.mxu0 %v3903_v60  ;;  %4681 = vmatprep.subr.msk.bf16.mxu1 %vm993_vm3, %v6599_v22  ;;  %v4098_v52 = vsel %vm1125_vm4, %v4089_v20, %v4091_v54 }
 0x4e6   :  { %4672 = vmatmul.mubr.msk.bf16.gmra.mxu1 %vm1579_vm9, %v4809_v3  ;;  %4676 = vmatprep.subr.msk.bf16.mxu0 %vm861_vm2, %v6626_v53  ;;  %v4188_v15 = vpop.permute.xlu0 %4187 }
 0x4e7   :  { %3954 = vmatprep.mubr.bf16.mxu0 %v6996_v48  ;;  %4051 = vmatprep.mubr.bf16.mxu1 %v6996_v48 }
 0x4e8   :  { %v4186_v55 = vpop.permute.xlu1 %4185  ;;  %4032 = vmatpush1.bf16.msra.mxu1 %v4000_v59 }
 0x4e9   :  { %3937 = vmatpush1.bf16.msra.mxu0 %v3902_v47  ;;  %4682 = vmatprep.subr.msk.bf16.mxu1 %vm993_vm3, %v6638_v62  ;;  %v4195_v44 = vsel %vm7001_vm11, %v4186_v55, %v4188_v15 }
 0x4ea   :  { %4685 = vmatprep.subr.msk.bf16.mxu0 %vm1125_vm4, %v4095_v46  ;;  %v4087_v8 = vpop.permute.xlu0 %4086  ;;  %v7011_v46 = vld [vmem:[#allocation23_spill] sm:$0xff] }
 0x4ec   :  { %v4085_v37 = vpop.permute.xlu1 %4084  ;;  %4677 = vmatmul.mubr.msk.bf16.vlgmr.msra.gmra.mxu0 %vm1579_vm9, %v4810_v30  ;;  %4034 = vmatpush1.bf16.msra.mxu1 %v3999_v9 }
 0x4ed   :  { %4125 = vmatpush1.bf16.msra.mxu0 %v4099_v57  ;;  %3964 = vmatprep.mubr.bf16.mxu0 %v6996_v48  ;;  %v4097_v21 = vsel %vm1125_vm4, %v4085_v37, %v4087_v8 }
 0x4ee   :  { %4686 = vmatprep.subr.msk.bf16.mxu0 %vm1125_vm4, %v4091_v54  ;;  %v4192_v24 = vpop.permute.xlu0 %4191 }
 0x4ef   :  { %v4196_v38 = vsel %vm6998_vm7, %v4190_v31, %v4192_v24  ;;  %4683 = vmatmul.mubr.msk.bf16.vlgmr.msra.gmra.mxu1 %vm1579_vm9, %v4811_v33  ;;  %4691 = vmatprep.subr.msk.bf16.mxu1 %vm6999_vm8, %v4192_v24 }
 0x4f0   :  { %v4182_v25 = vpop.permute.xlu1 %4181  ;;  %4222 = vmatpush1.bf16.msra.mxu1 %v4196_v38  ;;  %4061 = vmatprep.mubr.bf16.mxu1 %v6996_v48 }
 0x4f1   :  { %4127 = vmatpush1.bf16.msra.mxu0 %v4098_v52  ;;  %4692 = vmatprep.subr.msk.bf16.mxu1 %vm7000_vm10, %v4188_v15 }
 0x4f2   :  { %4687 = vmatprep.subr.msk.bf16.mxu0 %vm1125_vm4, %v4087_v8  ;;  %v4184_v4 = vpop.permute.xlu0 %4183 }
 0x4f3   :  { %v4194_v19 = vsel %vm7003_vm13, %v4182_v25, %v4184_v4 }
 0x4f4   :  { %v4081_v43 = vpop.permute.xlu1 %4080  ;;  %4678 = vmatmul.mubr.msk.bf16.gmra.mxu0 %vm1579_vm9, %v4812_v23  ;;  %4224 = vmatpush1.bf16.msra.mxu1 %v4195_v44 }
 0x4f5   :  { %4129 = vmatpush1.bf16.msra.mxu0 %v4097_v21  ;;  %4693 = vmatprep.subr.msk.bf16.mxu1 %vm7002_vm12, %v4184_v4 }
 0x4f6   :  { %v4083_v40 = vpop.permute.xlu0 %4082  ;;  %4148 = vmatprep.mubr.bf16.mxu0 %v6996_v48 }
 0x4f7   :  { %v4096_v16 = vsel %vm1125_vm4, %v4081_v43, %v4083_v40  ;;  %4684 = vmatmul.mubr.msk.bf16.gmra.mxu1 %vm1579_vm9, %v4813_v11  ;;  %4688 = vmatprep.subr.msk.bf16.mxu0 %vm1125_vm4, %v4083_v40 }
 0x4f8   :  { %4226 = vmatpush1.bf16.msra.mxu1 %v4194_v19  ;;  %4245 = vmatprep.mubr.bf16.mxu1 %v6996_v48  ;;  %v4178_v1 = vpop.permute.xlu1 %4177 }
 0x4f9   :  { %4131 = vmatpush1.bf16.msra.mxu0 %v4096_v16 }
 0x4fa   :  { %v4180_v34 = vpop.permute.xlu0 %4179 }
 0x4fb   :  { %v4193_v10 = vsel %vm7004_vm14, %v4178_v1, %v4180_v34  ;;  %4694 = vmatprep.subr.msk.bf16.mxu1 %vm7005_vm15, %v4180_v34 }
 0x4fc   :  { %4689 = vmatmul.mubr.msk.bf16.vlgmr.msra.gmra.mxu0 %vm1579_vm9, %v4814_v6  ;;  %4228 = vmatpush1.bf16.msra.mxu1 %v4193_v10 }
 0x4fd   :  { %4158 = vmatprep.mubr.bf16.mxu0 %v6996_v48 }
 0x4ff   :  { %4695 = vmatmul.mubr.msk.bf16.vlgmr.msra.gmra.mxu1 %vm1579_vm9, %v4815_v29 }
 0x500   :  { %4255 = vmatprep.mubr.bf16.mxu1 %v6996_v48 }
 0x504   :  { %4690 = vmatmul.mubr.msk.bf16.gmra.mxu0 %vm1579_vm9, %v4816_v17 }
 0x505   :  { %v6765_v22 = vpop.permute.xlu1 %2473 }
 0x506   :  { %v2491_v7 = vadd.f32 %v6765_v22, %v7006_v41  ;;  %v2492_v27 = vadd.f32 %v6765_v22, %v7007_v14 }
 0x507   :  { %4696 = vmatmul.mubr.msk.bf16.gmra.mxu1 %vm1579_vm9, %v4817_v28  ;;  %v6775_v48 = vpop.permute.xlu0 %2478 }
 0x508   :  { %v2499_v63 = vmax.f32 %v2491_v7, 0.0  ;;  %v2500_v49 = vmax.f32 %v2492_v27, 0.0  ;;  %v2493_v53 = vadd.f32 %v6775_v48, %v7008_v61  ;;  %v2494_v5 = vadd.f32 %v6775_v48, %v7009_v18 }
 0x509   :  { %v6781_v62 = vpop.permute.xlu1 %2483 }
 0x50a   :  { %2507 = vst [vmem:[#allocation2] sm:$0xff] %v2499_v63  ;;  %2508 = vst [vmem:[#allocation2 + $0x8] sm:$0xff] %v2500_v49  ;;  %v2501_v45 = vmax.f32 %v2493_v53, 0.0  ;;  %v2502_v58 = vmax.f32 %v2494_v5, 0.0  ;;  %v2495_v50 = vadd.f32 %v6781_v62, %v7010_v2  ;;  %v2496_v13 = vadd.f32 %v6781_v62, %v7011_v46 }
 0x50b   :  { %v6787_v36 = vpop.permute.xlu0 %2488 }
 0x50c   :  { %2509 = vst [vmem:[#allocation2 + $0x10] sm:$0xff] %v2501_v45  ;;  %2510 = vst [vmem:[#allocation2 + $0x18] sm:$0xff] %v2502_v58  ;;  %v2503_v32 = vmax.f32 %v2495_v50, 0.0  ;;  %v2504_v56 = vmax.f32 %v2496_v13, 0.0  ;;  %v2497_v51 = vadd.f32 %v6787_v36, %v7012_v26  ;;  %v2498_v42 = vadd.f32 %v6787_v36, %v7013_v39 }
 0x50e   :  { %2511 = vst [vmem:[#allocation2 + $0x20] sm:$0xff] %v2503_v32  ;;  %2512 = vst [vmem:[#allocation2 + $0x28] sm:$0xff] %v2504_v56  ;;  %v2505_v35 = vmax.f32 %v2497_v51, 0.0  ;;  %v2506_v31 = vmax.f32 %v2498_v42, 0.0 }
 0x510   :  { %2513 = vst [vmem:[#allocation2 + $0x30] sm:$0xff] %v2505_v35  ;;  %2514 = vst [vmem:[#allocation2 + $0x38] sm:$0xff] %v2506_v31 }
 0x57c   :  { %v3551_v54 = vpop.f32.mrf.mxu0 }
 0x57e   :  { %v3553_v12 = vpop.f32.mrf.mxu0 }
 0x580   :  { %v3555_v60 = vpop.f32.mrf.mxu0 }
 0x582   :  { %v3557_v20 = vpop.f32.mrf.mxu0 }
 0x584   :  { %v3561_v0 = vpop.f32.mrf.mxu0 }
 0x586   :  { %v3563_v3 = vpop.f32.mrf.mxu0 }
 0x588   :  { %v3565_v15 = vpop.f32.mrf.mxu0 }
 0x58a   :  { %v6793_v59 = vpop.f32.mrf.mxu0 }
 0x58c   :  { %v3604_v47 = vpop.f32.mrf.mxu0 }
 0x58d   :  { %v3701_v55 = vpop.f32.mrf.mxu1  ;;  %v3605_v28 = vadd.f32 %v3604_v47, %v3551_v54 }
 0x58e   :  { %v3606_v8 = vpop.f32.mrf.mxu0 }
 0x58f   :  { %v3703_v9 = vpop.f32.mrf.mxu1  ;;  %v3607_v49 = vadd.f32 %v3606_v8, %v3553_v12  ;;  %v3720_v18 = vadd.f32 %v3701_v55, %v3605_v28 }
 0x590   :  { %v3608_v57 = vpop.f32.mrf.mxu0 }
 0x591   :  { %v3705_v37 = vpop.f32.mrf.mxu1  ;;  %v3609_v5 = vadd.f32 %v3608_v57, %v3555_v60  ;;  %v3721_v2 = vadd.f32 %v3703_v9, %v3607_v49 }
 0x592   :  { %v3610_v30 = vpop.f32.mrf.mxu0 }
 0x593   :  { %v3707_v24 = vpop.f32.mrf.mxu1  ;;  %v3611_v50 = vadd.f32 %v3610_v30, %v3557_v20  ;;  %v3722_v26 = vadd.f32 %v3705_v37, %v3609_v5 }
 0x594   :  { %v3614_v38 = vpop.f32.mrf.mxu0 }
 0x595   :  { %v3711_v33 = vpop.f32.mrf.mxu1  ;;  %v3615_v32 = vadd.f32 %v3614_v38, %v3561_v0  ;;  %v3723_v31 = vadd.f32 %v3707_v24, %v3611_v50 }
 0x596   :  { %v3616_v52 = vpop.f32.mrf.mxu0 }
 0x597   :  { %v3713_v25 = vpop.f32.mrf.mxu1  ;;  %v3617_v42 = vadd.f32 %v3616_v52, %v3563_v3  ;;  %v3724_v8 = vadd.f32 %v3711_v33, %v3615_v32 }
 0x598   :  { %v3618_v4 = vpop.f32.mrf.mxu0 }
 0x599   :  { %v3715_v44 = vpop.f32.mrf.mxu1  ;;  %v3619_v60 = vadd.f32 %v3618_v4, %v3565_v15  ;;  %v3725_v30 = vadd.f32 %v3713_v25, %v3617_v42 }
 0x59a   :  { %v3620_v21 = vpop.f32.mrf.mxu0 }
 0x59b   :  { %v3717_v43 = vpop.f32.mrf.mxu1  ;;  %v3621_v0 = vadd.f32 %v3620_v21, %v6793_v59 }
 0x59c   :  { %v3798_v23 = vpop.f32.mrf.mxu0 }
 0x59d   :  { %v3859_v40 = vpop.f32.mrf.mxu1  ;;  %v3817_v46 = vadd.f32 %v3798_v23, %v3720_v18  ;;  %v3727_v15 = vadd.f32 %v3717_v43, %v3621_v0 }
 0x59e   :  { %v3800_v19 = vpop.f32.mrf.mxu0 }
 0x59f   :  { %v3861_v16 = vpop.f32.mrf.mxu1  ;;  %v3818_v51 = vadd.f32 %v3800_v19, %v3721_v2  ;;  %v3878_v54 = vadd.f32 %v3859_v40, %v3817_v46  ;;  %v3726_v40 = vadd.f32 %v3715_v44, %v3619_v60 }
 0x5a0   :  { %v3802_v11 = vpop.f32.mrf.mxu0 }
 0x5a1   :  { %v3863_v1 = vpop.f32.mrf.mxu1  ;;  %v3819_v12 = vadd.f32 %v3802_v11, %v3722_v26  ;;  %v3879_v57 = vadd.f32 %v3861_v16, %v3818_v51 }
 0x5a2   :  { %v3804_v34 = vpop.f32.mrf.mxu0 }
 0x5a3   :  { %v3865_v10 = vpop.f32.mrf.mxu1  ;;  %v3820_v28 = vadd.f32 %v3804_v34, %v3723_v31  ;;  %v3880_v23 = vadd.f32 %v3863_v1, %v3819_v12 }
 0x5a4   :  { %v3808_v6 = vpop.f32.mrf.mxu0 }
 0x5a5   :  { %v3821_v38 = vadd.f32 %v3808_v6, %v3724_v8  ;;  %v3881_v11 = vadd.f32 %v3865_v10, %v3820_v28 }
 0x5a6   :  { %v3810_v29 = vpop.f32.mrf.mxu0  ;;  %v3869_v17 = vpop.f32.mrf.mxu1 }
 0x5a7   :  { %v3822_v52 = vadd.f32 %v3810_v29, %v3725_v30  ;;  %v3882_v4 = vadd.f32 %v3869_v17, %v3821_v38 }
 0x5a8   :  { %v3812_v41 = vpop.f32.mrf.mxu0  ;;  %v3871_v7 = vpop.f32.mrf.mxu1 }
 0x5a9   :  { %v3823_v34 = vadd.f32 %v3812_v41, %v3726_v40  ;;  %v3883_v21 = vadd.f32 %v3871_v7, %v3822_v52 }
 0x5aa   :  { %v3814_v14 = vpop.f32.mrf.mxu0  ;;  %v6795_v27 = vpop.f32.mrf.mxu1 }
 0x5ab   :  { %v3824_v1 = vadd.f32 %v3814_v14, %v3727_v15 }
 0x5ac   :  { %v3956_v63 = vpop.f32.mrf.mxu0  ;;  %v6797_v61 = vpop.f32.mrf.mxu1 }
 0x5ad   :  { %v3975_v9 = vadd.f32 %v3956_v63, %v3878_v54  ;;  %v3885_v7 = vadd.f32 %v6797_v61, %v3824_v1 }
 0x5ae   :  { %v3958_v53 = vpop.f32.mrf.mxu0 }
 0x5af   :  { %v4053_v45 = vpop.f32.mrf.mxu1  ;;  %v3976_v19 = vadd.f32 %v3958_v53, %v3879_v57 }
 0x5b0   :  { %v3960_v58 = vpop.f32.mrf.mxu0  ;;  %v4072_v49 = vadd.f32 %v4053_v45, %v3975_v9  ;;  %v3884_v45 = vadd.f32 %v6795_v27, %v3823_v34 }
 0x5b1   :  { %v4055_v13 = vpop.f32.mrf.mxu1  ;;  %v3977_v33 = vadd.f32 %v3960_v58, %v3880_v23 }
 0x5b2   :  { %v3962_v56 = vpop.f32.mrf.mxu0  ;;  %v4073_v63 = vadd.f32 %v4055_v13, %v3976_v19 }
 0x5b3   :  { %v4057_v39 = vpop.f32.mrf.mxu1  ;;  %v3978_v25 = vadd.f32 %v3962_v56, %v3881_v11 }
 0x5b4   :  { %v3966_v35 = vpop.f32.mrf.mxu0  ;;  %v4074_v53 = vadd.f32 %v4057_v39, %v3977_v33 }
 0x5b5   :  { %v4059_v47 = vpop.f32.mrf.mxu1  ;;  %v3979_v2 = vadd.f32 %v3966_v35, %v3882_v4 }
 0x5b6   :  { %v3968_v55 = vpop.f32.mrf.mxu0  ;;  %v4075_v58 = vadd.f32 %v4059_v47, %v3978_v25 }
 0x5b7   :  { %v4063_v20 = vpop.f32.mrf.mxu1  ;;  %v3980_v43 = vadd.f32 %v3968_v55, %v3883_v21 }
 0x5b8   :  { %v3970_v37 = vpop.f32.mrf.mxu0  ;;  %v4076_v56 = vadd.f32 %v4063_v20, %v3979_v2 }
 0x5b9   :  { %v4065_v3 = vpop.f32.mrf.mxu1  ;;  %v3981_v14 = vadd.f32 %v3970_v37, %v3884_v45 }
 0x5ba   :  { %v3972_v24 = vpop.f32.mrf.mxu0  ;;  %v4077_v27 = vadd.f32 %v4065_v3, %v3980_v43 }
 0x5bb   :  { %v4067_v18 = vpop.f32.mrf.mxu1  ;;  %v3982_v54 = vadd.f32 %v3972_v24, %v3885_v7 }
 0x5bc   :  { %v4150_v16 = vpop.f32.mrf.mxu0  ;;  %v4078_v61 = vadd.f32 %v4067_v18, %v3981_v14 }
 0x5bd   :  { %v4169_v5 = vadd.f32 %v4150_v16, %v4072_v49  ;;  %v4069_v59 = vpop.f32.mrf.mxu1 }
 0x5be   :  { %v4152_v6 = vpop.f32.mrf.mxu0  ;;  %v4079_v38 = vadd.f32 %v4069_v59, %v3982_v54 }
 0x5bf   :  { %v4170_v29 = vadd.f32 %v4152_v6, %v4073_v63  ;;  %v4247_v50 = vpop.f32.mrf.mxu1 }
 0x5c0   :  { %v4266_v44 = vadd.f32 %v4247_v50, %v4169_v5  ;;  %v4154_v10 = vpop.f32.mrf.mxu0 }
 0x5c1   :  { %v4171_v17 = vadd.f32 %v4154_v10, %v4074_v53  ;;  %v4249_v46 = vpop.f32.mrf.mxu1 }
 0x5c2   :  { %v4274_v41 = vadd.f32 %v4266_v44, %v6765_v22  ;;  %v4267_v13 = vadd.f32 %v4249_v46, %v4170_v29  ;;  %v4156_v32 = vpop.f32.mrf.mxu0 }
 0x5c3   :  { %v4172_v26 = vadd.f32 %v4156_v32, %v4075_v58  ;;  %v4251_v51 = vpop.f32.mrf.mxu1 }
 0x5c4   :  { %v4282_v39 = vmax.f32 %v4274_v41, 0.0  ;;  %v4275_v42 = vadd.f32 %v4267_v13, %v6765_v22  ;;  %v4268_v35 = vadd.f32 %v4251_v51, %v4171_v17  ;;  %v4160_v31 = vpop.f32.mrf.mxu0 }
 0x5c5   :  { %v4173_v12 = vadd.f32 %v4160_v31, %v4076_v56  ;;  %v4253_v47 = vpop.f32.mrf.mxu1 }
 0x5c6   :  { %4291 = vst [vmem:[#allocation2 + $0x40] sm:$0xff] %v4282_v39  ;;  %v4283_v8 = vmax.f32 %v4275_v42, 0.0  ;;  %v4276_v55 = vadd.f32 %v4268_v35, %v6775_v48  ;;  %v4269_v60 = vadd.f32 %v4253_v47, %v4172_v26  ;;  %v4162_v57 = vpop.f32.mrf.mxu0 }
 0x5c7   :  { %v4174_v28 = vadd.f32 %v4162_v57, %v4077_v27  ;;  %v4257_v9 = vpop.f32.mrf.mxu1 }
 0x5c8   :  { %4292 = vst [vmem:[#allocation2 + $0x48] sm:$0xff] %v4283_v8  ;;  %v4284_v20 = vmax.f32 %v4276_v55, 0.0  ;;  %v4277_v30 = vadd.f32 %v4269_v60, %v6775_v48  ;;  %v4270_v22 = vadd.f32 %v4257_v9, %v4173_v12  ;;  %v4164_v0 = vpop.f32.mrf.mxu0 }
 0x5c9   :  { %v4175_v37 = vadd.f32 %v4164_v0, %v4078_v61  ;;  %v4259_v23 = vpop.f32.mrf.mxu1 }
 0x5ca   :  { %4293 = vst [vmem:[#allocation2 + $0x50] sm:$0xff] %v4284_v20  ;;  %v4285_v19 = vmax.f32 %v4277_v30, 0.0  ;;  %v4278_v3 = vadd.f32 %v4270_v22, %v6781_v62  ;;  %v4271_v52 = vadd.f32 %v4259_v23, %v4174_v28  ;;  %v4166_v24 = vpop.f32.mrf.mxu0 }
 0x5cb   :  { %v4176_v40 = vadd.f32 %v4166_v24, %v4079_v38  ;;  %v4261_v11 = vpop.f32.mrf.mxu1 }
 0x5cc   :  { %4294 = vst [vmem:[#allocation2 + $0x58] sm:$0xff] %v4285_v19  ;;  %v4286_v49 = vmax.f32 %v4278_v3, 0.0  ;;  %v4279_v33 = vadd.f32 %v4271_v52, %v6781_v62  ;;  %v4272_v18 = vadd.f32 %v4261_v11, %v4175_v37 }
 0x5cd   :  { %v4263_v15 = vpop.f32.mrf.mxu1 }
 0x5ce   :  { %4295 = vst [vmem:[#allocation2 + $0x60] sm:$0xff] %v4286_v49  ;;  %v4287_v48 = vmax.f32 %v4279_v33, 0.0  ;;  %v4280_v4 = vadd.f32 %v4272_v18, %v6787_v36  ;;  %v4273_v16 = vadd.f32 %v4263_v15, %v4176_v40 }
 0x5d0   :  { %4296 = vst [vmem:[#allocation2 + $0x68] sm:$0xff] %v4287_v48  ;;  %v4288_v34 = vmax.f32 %v4280_v4, 0.0  ;;  %v4281_v63 = vadd.f32 %v4273_v16, %v6787_v36 }
 0x5d2   :  { %4297 = vst [vmem:[#allocation2 + $0x70] sm:$0xff] %v4288_v34  ;;  %v4289_v25 = vmax.f32 %v4281_v63, 0.0 }
 0x5d4   :  { %4298 = vst [vmem:[#allocation2 + $0x78] sm:$0xff] %v4289_v25 }
 0x5d5   :  { %4829 = shalt.err (!%p4826_p4)
}
 0x5d6   :  { %s4850_s19 = smov 256  }
 0x5d7   :  { %4310 = dma.vmem_to_hbm [thread:$0]  %s4305_s17, 2048, %s6819_s5, [#allocation3], %s4850_s19, %s4850_s19, %s4841_s26  }
 0x5d8   :  { %4838 = dma.done.wait [#allocation3], 2048  }
 0x5d9   :  { %4839 = vsyncadd [#allocation3], 4294965248 }
 0x5da   :  { %4314 = vsyncpa [#allocation3], 1 }

</bundles_post_ra>
